<compile_context>
chip_gen: v7x
topology: tpu7x:2x2x1
jax: 0.10.0
libtpu: 0.0.40
codegen_flags: <defaults>
</compile_context>

<pallas_src>
import functools

import jax
import jax.numpy as jnp
from jax import lax
from jax.experimental import pallas as pl
from jax.experimental.pallas import tpu as pltpu

IN_FEATURES = 6400
HIDDEN = 200
HIDDEN_PAD = 256        # lane-pad 200 -> 256: 2 full vregs, contiguous W1 DMA
HEAD_PAD = 128          # fused head lanes: [actions | value | zero pad]
NUM_ACTIONS = 2


def _ac_kernel(x_ref, w1_ref, b1_ref, wh_ref, bh_ref, out_ref, *, num_actions):
    # In-kernel bf16 cast of the activations (hidden under the W1 DMA).
    x = x_ref[...].astype(jnp.bfloat16)

    # (tb, 6400) bf16 @ (6400, 256) bf16 -> f32 on the MXU, single pass.
    acc = jnp.dot(x, w1_ref[...], preferred_element_type=jnp.float32)
    h = jnp.maximum(acc + b1_ref[...], 0.0)                       # ReLU (tb, 256)

    # Fused action/value heads: one (256, 128) matmul instead of two tiny
    # N=2 / N=1 MXU passes.
    head = jnp.dot(h.astype(wh_ref.dtype), wh_ref[...],
                   preferred_element_type=jnp.float32) + bh_ref[...]

    lane = lax.broadcasted_iota(jnp.int32, head.shape, 1)
    is_action = lane < num_actions
    is_value = lane == num_actions

    # Softmax over the action lanes only (padded lanes masked out).
    scores = jnp.where(is_action, head, -1e30)
    m = jnp.max(scores, axis=-1, keepdims=True)
    e = jnp.where(is_action, jnp.exp(scores - m), 0.0)
    denom = jnp.sum(e, axis=-1, keepdims=True)
    probs = e / denom                                             # exact normalize

    # One lane-dense slab: [softmax(actions) | state_value | zeros].
    out = jnp.where(is_action, probs, jnp.where(is_value, head, 0.0))
    out_ref[...] = out.astype(out_ref.dtype)


def pack_params(w1, b1, wa, ba, wv, bv):
    """Pack nn.Linear-layout params ([out, in] weights) into the kernel layout."""
    num_actions = wa.shape[0]
    assert num_actions + 1 <= HEAD_PAD

    # affine1: transpose to [in, out], pad 200 -> 256 lanes, store bf16.
    w1_t = jnp.zeros((IN_FEATURES, HIDDEN_PAD), jnp.float32)
    w1_t = w1_t.at[:, :HIDDEN].set(w1.T).astype(jnp.bfloat16)
    b1_p = jnp.zeros((1, HIDDEN_PAD), jnp.float32).at[0, :HIDDEN].set(b1)

    # Fused heads: columns [0:num_actions] = action head, column num_actions =
    # value head, remaining lanes zero.  Padded hidden rows are zero, which is
    # consistent with the zero-padded (and hence zero) hidden activations.
    wh = jnp.zeros((HIDDEN_PAD, HEAD_PAD), jnp.float32)
    wh = wh.at[:HIDDEN, :num_actions].set(wa.T)
    wh = wh.at[:HIDDEN, num_actions].set(wv[0])
    wh = wh.astype(jnp.bfloat16)
    bh = jnp.zeros((1, HEAD_PAD), jnp.float32)
    bh = bh.at[0, :num_actions].set(ba)
    bh = bh.at[0, num_actions].set(bv[0])

    # Invariants the kernel's padding math relies on.
    assert bool(jnp.all(b1_p[0, HIDDEN:] == 0.0))
    assert bool(jnp.all(wh[HIDDEN:, :] == 0))
    assert bool(jnp.all(bh[0, num_actions + 1:] == 0.0))
    return w1_t, b1_p, wh, bh, num_actions


def ac_forward(x, w1_t, b1_p, wh, bh, num_actions, *, tb=None):
    """x: [B, 6400] f32.  Returns (action_probs [B, num_actions], values [B, 1])."""
    B, K = x.shape
    assert K == IN_FEATURES
    if tb is None:
        tb = B
    assert B % tb == 0

    kernel = functools.partial(_ac_kernel, num_actions=num_actions)

    flops = 2 * B * IN_FEATURES * HIDDEN_PAD + 2 * B * HIDDEN_PAD * HEAD_PAD
    bytes_accessed = (x.size * x.dtype.itemsize
                      + w1_t.size * 2 + wh.size * 2
                      + b1_p.size * 4 + bh.size * 4
                      + B * HEAD_PAD * 4)

    slab = pl.pallas_call(
        kernel,
        out_shape=jax.ShapeDtypeStruct((B, HEAD_PAD), jnp.float32),
        grid_spec=pltpu.PrefetchScalarGridSpec(
            num_scalar_prefetch=0,
            grid=(B // tb,),
            in_specs=[
                pl.BlockSpec((tb, IN_FEATURES), lambda i: (i, 0)),            # x (f32)
                pl.BlockSpec((IN_FEATURES, HIDDEN_PAD), lambda i: (0, 0)),    # W1^T (bf16)
                pl.BlockSpec((1, HIDDEN_PAD), lambda i: (0, 0)),              # b1
                pl.BlockSpec((HIDDEN_PAD, HEAD_PAD), lambda i: (0, 0)),       # fused heads
                pl.BlockSpec((1, HEAD_PAD), lambda i: (0, 0)),                # fused bias
            ],
            out_specs=pl.BlockSpec((tb, HEAD_PAD), lambda i: (i, 0)),
        ),
        compiler_params=pltpu.CompilerParams(
            dimension_semantics=("parallel",),
            vmem_limit_bytes=64 << 20),
        cost_estimate=pl.CostEstimate(
            flops=flops,
            transcendentals=B * num_actions,
            bytes_accessed=bytes_accessed),
    )(x, w1_t, b1_p, wh, bh)

    probs = slab[:, :num_actions]
    values = slab[:, num_actions:num_actions + 1]
    return probs, values


def init_params(key, num_actions=NUM_ACTIONS):
    """Deterministic synthetic params in PyTorch nn.Linear layout ([out, in])."""
    k1, k2, k3, k4, k5, k6 = jax.random.split(key, 6)
    w1 = jax.random.normal(k1, (HIDDEN, IN_FEATURES), jnp.float32) * 0.01
    b1 = jax.random.normal(k2, (HIDDEN,), jnp.float32) * 0.01
    wa = jax.random.normal(k3, (num_actions, HIDDEN), jnp.float32) * 0.05
    ba = jax.random.normal(k4, (num_actions,), jnp.float32) * 0.05
    wv = jax.random.normal(k5, (1, HIDDEN), jnp.float32) * 0.05
    bv = jax.random.normal(k6, (1,), jnp.float32) * 0.05
    return w1, b1, wa, ba, wv, bv


def ac_forward_ref(x, w1, b1, wa, ba, wv, bv):
    """Pure-JAX reference using the same bf16 weight/activation quantization."""
    xq = x.astype(jnp.bfloat16).astype(jnp.float32)
    w1q = w1.astype(jnp.bfloat16).astype(jnp.float32)
    waq = wa.astype(jnp.bfloat16).astype(jnp.float32)
    wvq = wv.astype(jnp.bfloat16).astype(jnp.float32)
    h = jnp.maximum(xq @ w1q.T + b1, 0.0)
    scores = h @ waq.T + ba
    vals = h @ wvq.T + bv
    return jax.nn.softmax(scores, axis=-1), vals


if __name__ == "__main__":
    key = jax.random.PRNGKey(0)
    kx, kp = jax.random.split(key)

    B = 8  # small, sublane-aligned batch
    x = jax.random.normal(kx, (B, IN_FEATURES), jnp.float32)
    torch_layout_params = init_params(kp)
    packed = pack_params(*torch_layout_params)

    probs, values = ac_forward(x, *packed)
    probs, values = jax.block_until_ready((probs, values))

    # Sanity check against the pure-JAX reference (tolerances account for bf16
    # weight/activation quantization).
    probs_ref, values_ref = ac_forward_ref(x, *torch_layout_params)
    assert probs.shape == (B, NUM_ACTIONS)
    assert values.shape == (B, 1)
    assert jnp.allclose(probs, probs_ref, atol=1e-2, rtol=1e-2)
    assert jnp.allclose(values, values_ref, atol=1e-2, rtol=1e-2)
    assert jnp.allclose(jnp.sum(probs, axis=-1), 1.0, atol=1e-3)

    print("KERNEL_OK")
</pallas_src>

<mosaic_0001>
module attributes {stable_mosaic.version = 11 : i64} {
  func.func @_ac_kernel(%arg0: i32, %arg1: memref<8x6400xf32, #tpu.memory_space<vmem>>, %arg2: memref<6400x256xbf16, #tpu.memory_space<vmem>>, %arg3: memref<1x256xf32, #tpu.memory_space<vmem>>, %arg4: memref<256x128xbf16, #tpu.memory_space<vmem>>, %arg5: memref<1x128xf32, #tpu.memory_space<vmem>>, %arg6: memref<8x128xf32, #tpu.memory_space<vmem>>) attributes {dimension_semantics = [#tpu.dimension_semantics<parallel>], iteration_bounds = array<i64: 1>, scalar_prefetch = 0 : i64, scratch_operands = 0 : i64, tpu.core_type = #tpu.core_type<tc>, window_params = [{transform_indices = @transform_0, window_bounds = array<i64: 8, 6400>}, {pipeline_mode = #tpu.pipeline_mode<synchronous>, transform_indices = @transform_1, window_bounds = array<i64: 6400, 256>}, {pipeline_mode = #tpu.pipeline_mode<synchronous>, transform_indices = @transform_2, window_bounds = array<i64: 1, 256>}, {pipeline_mode = #tpu.pipeline_mode<synchronous>, transform_indices = @transform_3, window_bounds = array<i64: 256, 128>}, {pipeline_mode = #tpu.pipeline_mode<synchronous>, transform_indices = @transform_4, window_bounds = array<i64: 1, 128>}, {transform_indices = @transform_5, window_bounds = array<i64: 8, 128>}]} {
    %c0 = arith.constant 0 : index
    %c0_0 = arith.constant 0 : index
    %0 = vector.load %arg1[%c0, %c0_0] : memref<8x6400xf32, #tpu.memory_space<vmem>>, vector<8x6400xf32>
    %1 = arith.truncf %0 : vector<8x6400xf32> to vector<8x6400xbf16>
    %c0_1 = arith.constant 0 : index
    %c0_2 = arith.constant 0 : index
    %2 = vector.load %arg2[%c0_1, %c0_2] : memref<6400x256xbf16, #tpu.memory_space<vmem>>, vector<6400x256xbf16>
    %cst = arith.constant dense<0.000000e+00> : vector<8x256xf32>
    %3 = tpu.matmul %1, %2, %cst {dimension_numbers = #tpu.dot_dimension_numbers<[1], [0], [0], [1], [0, 0, 1, 1], [], []>} : vector<8x6400xbf16>, vector<6400x256xbf16>, vector<8x256xf32> -> vector<8x256xf32>
    %c0_3 = arith.constant 0 : index
    %c0_4 = arith.constant 0 : index
    %4 = vector.load %arg3[%c0_3, %c0_4] : memref<1x256xf32, #tpu.memory_space<vmem>>, vector<1x256xf32>
    %5 = vector.broadcast %4 : vector<1x256xf32> to vector<8x256xf32>
    %6 = arith.addf %3, %5 : vector<8x256xf32>
    %cst_5 = arith.constant 0.000000e+00 : f32
    %7 = vector.broadcast %cst_5 : f32 to vector<8x256xf32>
    %8 = arith.maximumf %6, %7 : vector<8x256xf32>
    %9 = arith.truncf %8 : vector<8x256xf32> to vector<8x256xbf16>
    %c0_6 = arith.constant 0 : index
    %c0_7 = arith.constant 0 : index
    %10 = vector.load %arg4[%c0_6, %c0_7] : memref<256x128xbf16, #tpu.memory_space<vmem>>, vector<256x128xbf16>
    %cst_8 = arith.constant dense<0.000000e+00> : vector<8x128xf32>
    %11 = tpu.matmul %9, %10, %cst_8 {dimension_numbers = #tpu.dot_dimension_numbers<[1], [0], [0], [1], [0, 0, 1, 1], [], []>} : vector<8x256xbf16>, vector<256x128xbf16>, vector<8x128xf32> -> vector<8x128xf32>
    %c0_9 = arith.constant 0 : index
    %c0_10 = arith.constant 0 : index
    %12 = vector.load %arg5[%c0_9, %c0_10] : memref<1x128xf32, #tpu.memory_space<vmem>>, vector<1x128xf32>
    %13 = vector.broadcast %12 : vector<1x128xf32> to vector<8x128xf32>
    %14 = arith.addf %11, %13 : vector<8x128xf32>
    %15 = tpu.iota {dimensions = array<i32: 1>} : vector<8x128xi32>
    %c2_i32 = arith.constant 2 : i32
    %16 = vector.broadcast %c2_i32 : i32 to vector<8x128xi32>
    %17 = arith.cmpi slt, %15, %16 : vector<8x128xi32>
    %c2_i32_11 = arith.constant 2 : i32
    %18 = vector.broadcast %c2_i32_11 : i32 to vector<8x128xi32>
    %19 = arith.cmpi eq, %15, %18 : vector<8x128xi32>
    %cst_12 = arith.constant -1.000000e+30 : f32
    %20 = vector.broadcast %cst_12 : f32 to vector<8x128xf32>
    %21 = arith.select %17, %14, %20 : vector<8x128xi1>, vector<8x128xf32>
    %cst_13 = arith.constant dense<0xFF800000> : vector<8xf32>
    %22 = vector.multi_reduction <maximumf>, %21, %cst_13 [1] : vector<8x128xf32> to vector<8xf32>
    %23 = vector.shape_cast %22 : vector<8xf32> to vector<8x1xf32>
    %24 = vector.broadcast %23 : vector<8x1xf32> to vector<8x128xf32>
    %25 = arith.subf %21, %24 : vector<8x128xf32>
    %26 = math.exp %25 : vector<8x128xf32>
    %cst_14 = arith.constant 0.000000e+00 : f32
    %27 = vector.broadcast %cst_14 : f32 to vector<8x128xf32>
    %28 = arith.select %17, %26, %27 : vector<8x128xi1>, vector<8x128xf32>
    %cst_15 = arith.constant dense<0.000000e+00> : vector<8xf32>
    %29 = vector.multi_reduction <add>, %28, %cst_15 [1] : vector<8x128xf32> to vector<8xf32>
    %30 = vector.shape_cast %29 : vector<8xf32> to vector<8x1xf32>
    %31 = vector.broadcast %30 : vector<8x1xf32> to vector<8x128xf32>
    %32 = arith.divf %28, %31 : vector<8x128xf32>
    %cst_16 = arith.constant 0.000000e+00 : f32
    %33 = vector.broadcast %cst_16 : f32 to vector<8x128xf32>
    %34 = arith.select %19, %14, %33 : vector<8x128xi1>, vector<8x128xf32>
    %35 = arith.select %17, %32, %34 : vector<8x128xi1>, vector<8x128xf32>
    %c0_17 = arith.constant 0 : index
    %c0_18 = arith.constant 0 : index
    %36 = vector.load %arg6[%c0_17, %c0_18] : memref<8x128xf32, #tpu.memory_space<vmem>>, vector<8x128xf32>
    tpu.vector_store %arg6[%c0_17, %c0_18], %35 {strides = array<i32>} : memref<8x128xf32, #tpu.memory_space<vmem>>, vector<8x128xf32>,
    return
  }
  func.func @transform_0(%arg0: i32) -> (i32, i32) {
    %c0_i32 = arith.constant 0 : i32
    %c0_i32_0 = arith.constant 0 : i32
    return %arg0, %c0_i32 : i32, i32
  }
  func.func @transform_1(%arg0: i32) -> (i32, i32) {
    %c0_i32 = arith.constant 0 : i32
    %c0_i32_0 = arith.constant 0 : i32
    %c0_i32_1 = arith.constant 0 : i32
    return %c0_i32, %c0_i32_0 : i32, i32
  }
  func.func @transform_2(%arg0: i32) -> (i32, i32) {
    %c0_i32 = arith.constant 0 : i32
    %c0_i32_0 = arith.constant 0 : i32
    %c0_i32_1 = arith.constant 0 : i32
    return %c0_i32, %c0_i32_0 : i32, i32
  }
  func.func @transform_3(%arg0: i32) -> (i32, i32) {
    %c0_i32 = arith.constant 0 : i32
    %c0_i32_0 = arith.constant 0 : i32
    %c0_i32_1 = arith.constant 0 : i32
    return %c0_i32, %c0_i32_0 : i32, i32
  }
  func.func @transform_4(%arg0: i32) -> (i32, i32) {
    %c0_i32 = arith.constant 0 : i32
    %c0_i32_0 = arith.constant 0 : i32
    %c0_i32_1 = arith.constant 0 : i32
    return %c0_i32, %c0_i32_0 : i32, i32
  }
  func.func @transform_5(%arg0: i32) -> (i32, i32) {
    %c0_i32 = arith.constant 0 : i32
    %c0_i32_0 = arith.constant 0 : i32
    return %arg0, %c0_i32 : i32, i32
  }
}

</mosaic_0001>

<bundles_post_ra>
// kernel: tpu_custom_call.1
= control target key start
LH: loop header
LB: loop body
LE: loop exit
PB: predicated region body
PF: predicated region fallthrough
CT: control target
= control target key end

     0   :  { %10 = vsyncpa [#allocation3], 0  ;;  %s8655_s0 = inlined_call_operand.hbm [shape: f32[8,6400], index: 0, kind: input, shape index: {}]   ;;  %s8656_s1 = inlined_call_operand.hbm [shape: bf16[6400,256], index: 1, kind: input, shape index: {}]   ;;  %s8657_s2 = inlined_call_operand.hbm [shape: f32[1,256], index: 2, kind: input, shape index: {}]   ;;  %s8658_s3 = inlined_call_operand.hbm [shape: bf16[256,128], index: 3, kind: input, shape index: {}]   ;;  %s8659_s4 = inlined_call_operand.hbm [shape: f32[1,128], index: 4, kind: input, shape index: {}]   ;;  %s8660_s5 = inlined_call_operand.hbm [shape: f32[8,128], index: 5, kind: output, shape index: {}]  }
   0x1   :  { %11 = vsyncpa [#allocation6], 0 }
   0x2   :  { %12 = vsyncpa [#allocation9], 0 }
   0x3   :  { %13 = vsyncpa [#allocation4], 0  ;;  %s8540_s18 = smov [#allocation5]   ;;  %s8400_s22 = scalar_lea.hbm %s8656_s1, 102400 }
   0x4   :  { %s29_s19 = sshll.u32 %s8540_s18, 4  ;;  %p8401_p0 = scmp.ne.s32.totalorder %s8656_s1, %s8400_s22  ;;  %s30_s19 = int_to_ptr.vmem [resolvable:$true] %s29_s19 }
   0x5   :  { %p8404_p1 = scmp.lt.u32.totalorder %s8400_s22, %s8656_s1 }
   0x7   :  { %p8406_p2 = pnand %p8404_p1, %p8401_p0 }
   0x9   :  { %8409 = shalt.err (!%p8406_p2)
}
   0xa   :  { %s8410_s27 = scalar_lea.vmem %s30_s19, 102400  ;;  %p8415_p4 = scmp.lt.s32.totalorder %s30_s19, %s30_s19 }
   0xb   :  { %p8411_p3 = scmp.ne.s32.totalorder %s30_s19, %s8410_s27  ;;  %p8416_p5 = scmp.lt.s32.totalorder %s8410_s27, %s8410_s27 }
   0xd   :  { %p8417_p6 = por %p8416_p5, %p8415_p4 }
   0xf   :  { %p8418_p7 = pnand %p8417_p6, %p8411_p3 }
  0x11   :  { %8421 = shalt.err (!%p8418_p7)
}
  0x12   :  { %s8541_s28 = smov 128   ;;  %s8542_s29 = smov 8  }
  0x13   :  { %35 = dma.hbm_to_vmem [thread:$0]  %s8656_s1, 102400, %s30_s19, [#allocation6], %s8541_s28, %s8541_s28, %s8542_s29  }
  0x14   :  { %s8543_s7 = smov [#allocation8]   ;;  %s8422_s11 = scalar_lea.hbm %s8658_s3, 2048 }
  0x15   :  { %s51_s8 = sshll.u32 %s8543_s7, 4  ;;  %p8423_p8 = scmp.ne.s32.totalorder %s8658_s3, %s8422_s11  ;;  %s52_s8 = int_to_ptr.vmem [resolvable:$true] %s51_s8 }
  0x16   :  { %p8426_p9 = scmp.lt.u32.totalorder %s8422_s11, %s8658_s3 }
  0x18   :  { %p8428_p10 = pnand %p8426_p9, %p8423_p8 }
  0x1a   :  { %8431 = shalt.err (!%p8428_p10)
}
  0x1b   :  { %s8432_s16 = scalar_lea.vmem %s52_s8, 2048  ;;  %p8437_p12 = scmp.lt.s32.totalorder %s52_s8, %s52_s8 }
  0x1c   :  { %p8433_p11 = scmp.ne.s32.totalorder %s52_s8, %s8432_s16  ;;  %p8438_p13 = scmp.lt.s32.totalorder %s8432_s16, %s8432_s16 }
  0x1e   :  { %p8439_p0 = por %p8438_p13, %p8437_p12 }
  0x20   :  { %p8440_p1 = pnand %p8439_p0, %p8433_p11 }
  0x22   :  { %8443 = shalt.err (!%p8440_p1)
}
  0x23   :  { %s8544_s1 = smov 64   ;;  %s8545_s17 = smov 4  }
  0x24   :  { %57 = dma.hbm_to_vmem [thread:$0]  %s8658_s3, 2048, %s52_s8, [#allocation9], %s8544_s1, %s8544_s1, %s8545_s17  }
  0x25   :  { %s8546_s20 = smov [#allocation2]   ;;  %s8547_s22 = smov [#allocation7]  }
  0x26   :  { %s20_s21 = sshll.u32 %s8546_s20, 4  ;;  %s42_s23 = sshll.u32 %s8547_s22, 4  ;;  %s21_s21 = int_to_ptr.vmem [resolvable:$true] %s20_s21  ;;  %s43_s23 = int_to_ptr.vmem [resolvable:$true] %s42_s23 }
  0x27   :  { %s8444_s26 = scalar_lea.hbm %s8655_s0, 6400 }
  0x28   :  { %p8445_p2 = scmp.ne.s32.totalorder %s8655_s0, %s8444_s26  ;;  %p8448_p3 = scmp.lt.u32.totalorder %s8444_s26, %s8655_s0 }
  0x2a   :  { %p8450_p4 = pnand %p8448_p3, %p8445_p2 }
  0x2c   :  { %8453 = shalt.err (!%p8450_p4)
}
  0x2d   :  { %s8454_s3 = scalar_lea.vmem %s21_s21, 6400  ;;  %p8459_p6 = scmp.lt.s32.totalorder %s21_s21, %s21_s21 }
  0x2e   :  { %p8455_p5 = scmp.ne.s32.totalorder %s21_s21, %s8454_s3  ;;  %p8460_p7 = scmp.lt.s32.totalorder %s8454_s3, %s8454_s3 }
  0x30   :  { %p8461_p8 = por %p8460_p7, %p8459_p6 }
  0x32   :  { %p8462_p9 = pnand %p8461_p8, %p8455_p5 }
  0x34   :  { %8465 = shalt.err (!%p8462_p9)
}
  0x35   :  { %23 = dma.hbm_to_vmem [thread:$0]  %s8655_s0, 6400, %s21_s21, [#allocation3]  }
  0x36   :  { %s8466_s10 = scalar_lea.hbm %s8657_s2, 32 }
  0x37   :  { %p8467_p10 = scmp.ne.s32.totalorder %s8657_s2, %s8466_s10  ;;  %p8470_p11 = scmp.lt.u32.totalorder %s8466_s10, %s8657_s2 }
  0x39   :  { %p8472_p12 = pnand %p8470_p11, %p8467_p10 }
  0x3b   :  { %8475 = shalt.err (!%p8472_p12)
}
  0x3c   :  { %s8476_s15 = scalar_lea.vmem %s43_s23, 32  ;;  %p8481_p0 = scmp.lt.s32.totalorder %s43_s23, %s43_s23 }
  0x3d   :  { %p8477_p13 = scmp.ne.s32.totalorder %s43_s23, %s8476_s15  ;;  %p8482_p1 = scmp.lt.s32.totalorder %s8476_s15, %s8476_s15 }
  0x3f   :  { %p8483_p2 = por %p8482_p1, %p8481_p0 }
  0x41   :  { %p8484_p3 = pnand %p8483_p2, %p8477_p13 }
  0x43   :  { %8487 = shalt.err (!%p8484_p3)
}
  0x44   :  { %45 = dma.hbm_to_vmem [thread:$0]  %s8657_s2, 32, %s43_s23, [#allocation6]  }
  0x45   :  { %s8548_s1 = smov [#allocation10]   ;;  %s8488_s20 = scalar_lea.hbm %s8659_s4, 16 }
  0x46   :  { %s64_s17 = sshll.u32 %s8548_s1, 4  ;;  %p8489_p4 = scmp.ne.s32.totalorder %s8659_s4, %s8488_s20  ;;  %s65_s17 = int_to_ptr.vmem [resolvable:$true] %s64_s17 }
  0x47   :  { %p8492_p5 = scmp.lt.u32.totalorder %s8488_s20, %s8659_s4 }
  0x49   :  { %p8494_p6 = pnand %p8492_p5, %p8489_p4 }
  0x4b   :  { %8497 = shalt.err (!%p8494_p6)
}
  0x4c   :  { %s8498_s26 = scalar_lea.vmem %s65_s17, 16  ;;  %s8502_s2 = scalar_lea.vmem %s65_s17, 32 }
  0x4d   :  { %p8499_p7 = scmp.ne.s32.totalorder %s65_s17, %s8498_s26  ;;  %p8503_p8 = scmp.lt.s32.totalorder %s65_s17, %s65_s17 }
  0x4e   :  { %p8504_p9 = scmp.lt.s32.totalorder %s8502_s2, %s8498_s26 }
  0x50   :  { %p8505_p10 = por %p8504_p9, %p8503_p8 }
  0x52   :  { %p8506_p11 = pnand %p8505_p10, %p8499_p7 }
  0x54   :  { %8509 = shalt.err (!%p8506_p11)
}
  0x55   :  { %67 = dma.hbm_to_vmem [thread:$0]  %s8659_s4, 16, %s65_s17, [#allocation9]  }
  0x56   :  { %8532 = dma.done.wait [#allocation3], 6400  }
  0x57   :  { %8533 = vsyncadd [#allocation3], 4294960896 }
  0x58   :  { %8534 = dma.done.wait [#allocation6], 102432  }
  0x59   :  { %8535 = vsyncadd [#allocation6], 4294864864 }
  0x5a   :  { %8536 = dma.done.wait [#allocation9], 2064  }
  0x5b   :  { %8537 = vsyncadd [#allocation9], 4294965232  ;;  %v7180_v0 = vld [vmem:[#allocation5 + $0x4] ss:$8 sps:$4 sm:$0xff]   ;;  %v7184_v2 = vld [vmem:[#allocation5] ss:$8 sps:$4 sm:$0xff]  }
  0x5c   :  { %v7182_v1 = vld [vmem:[#allocation5 + $0xc04] ss:$8 sps:$4 sm:$0xff]   ;;  %4996 = vmatprep.subr.bf16.mxu1 %v7180_v0  ;;  %v7185_v3 = vld [vmem:[#allocation5 + $0xc00] ss:$8 sps:$4 sm:$0xff]   ;;  %v7186_v4 = vld [vmem:[#allocation5 + $0x14] ss:$8 sps:$4 sm:$0xff]  }
  0x5d   :  { %5488 = vmatprep.subr.bf16.mxu0 %v7182_v1  ;;  %4997 = vmatpush1.bf16.msra.mxu1 %v7184_v2  ;;  %v7188_v5 = vld [vmem:[#allocation5 + $0xc14] ss:$8 sps:$4 sm:$0xff]   ;;  %v7190_v6 = vld [vmem:[#allocation5 + $0x10] ss:$8 sps:$4 sm:$0xff]   ;;  %v7192_v8 = vld [vmem:[#allocation5 + $0x24] ss:$8 sps:$4 sm:$0xff]  }
  0x5e   :  { %5489 = vmatpush1.bf16.msra.mxu0 %v7185_v3  ;;  %4998 = vmatprep.subr.bf16.mxu1 %v7186_v4  ;;  %v7191_v7 = vld [vmem:[#allocation5 + $0xc10] ss:$8 sps:$4 sm:$0xff]   ;;  %v7194_v9 = vld [vmem:[#allocation5 + $0xc24] ss:$8 sps:$4 sm:$0xff]   ;;  %v7196_v10 = vld [vmem:[#allocation5 + $0x20] ss:$8 sps:$4 sm:$0xff]  }
  0x5f   :  { %5490 = vmatprep.subr.bf16.mxu0 %v7188_v5  ;;  %v7197_v11 = vld [vmem:[#allocation5 + $0xc20] ss:$8 sps:$4 sm:$0xff]   ;;  %v7198_v12 = vld [vmem:[#allocation5 + $0x34] ss:$8 sps:$4 sm:$0xff]   ;;  %v7202_v14 = vld [vmem:[#allocation5 + $0x30] ss:$8 sps:$4 sm:$0xff]  }
  0x60   :  { %v7200_v13 = vld [vmem:[#allocation5 + $0xc34] ss:$8 sps:$4 sm:$0xff]   ;;  %v7203_v15 = vld [vmem:[#allocation5 + $0xc30] ss:$8 sps:$4 sm:$0xff]   ;;  %v7204_v16 = vld [vmem:[#allocation5 + $0x44] ss:$8 sps:$4 sm:$0xff]  }
  0x61   :  { %4999 = vmatpush1.bf16.msra.mxu1 %v7190_v6  ;;  %v7206_v17 = vld [vmem:[#allocation5 + $0xc44] ss:$8 sps:$4 sm:$0xff]   ;;  %v7208_v18 = vld [vmem:[#allocation5 + $0x40] ss:$8 sps:$4 sm:$0xff]   ;;  %v7210_v20 = vld [vmem:[#allocation5 + $0x54] ss:$8 sps:$4 sm:$0xff]  }
  0x62   :  { %5491 = vmatpush1.bf16.msra.mxu0 %v7191_v7  ;;  %5000 = vmatprep.subr.bf16.mxu1 %v7192_v8  ;;  %v7209_v19 = vld [vmem:[#allocation5 + $0xc40] ss:$8 sps:$4 sm:$0xff]   ;;  %v7212_v21 = vld [vmem:[#allocation5 + $0xc54] ss:$8 sps:$4 sm:$0xff]   ;;  %v7214_v22 = vld [vmem:[#allocation5 + $0x50] ss:$8 sps:$4 sm:$0xff]  }
  0x63   :  { %5492 = vmatprep.subr.bf16.mxu0 %v7194_v9  ;;  %v7215_v23 = vld [vmem:[#allocation5 + $0xc50] ss:$8 sps:$4 sm:$0xff]   ;;  %v7216_v24 = vld [vmem:[#allocation5 + $0x64] ss:$8 sps:$4 sm:$0xff]   ;;  %v7220_v26 = vld [vmem:[#allocation5 + $0x60] ss:$8 sps:$4 sm:$0xff]  }
  0x64   :  { %v7218_v25 = vld [vmem:[#allocation5 + $0xc64] ss:$8 sps:$4 sm:$0xff]   ;;  %v7221_v27 = vld [vmem:[#allocation5 + $0xc60] ss:$8 sps:$4 sm:$0xff]   ;;  %v7222_v28 = vld [vmem:[#allocation5 + $0x74] ss:$8 sps:$4 sm:$0xff]  }
  0x65   :  { %5001 = vmatpush1.bf16.msra.mxu1 %v7196_v10  ;;  %v7224_v29 = vld [vmem:[#allocation5 + $0xc74] ss:$8 sps:$4 sm:$0xff]   ;;  %v7226_v30 = vld [vmem:[#allocation5 + $0x70] ss:$8 sps:$4 sm:$0xff]   ;;  %v7228_v32 = vld [vmem:[#allocation5 + $0x84] ss:$8 sps:$4 sm:$0xff]  }
  0x66   :  { %5493 = vmatpush1.bf16.msra.mxu0 %v7197_v11  ;;  %5002 = vmatprep.subr.bf16.mxu1 %v7198_v12  ;;  %v7227_v31 = vld [vmem:[#allocation5 + $0xc70] ss:$8 sps:$4 sm:$0xff]   ;;  %v7230_v33 = vld [vmem:[#allocation5 + $0xc84] ss:$8 sps:$4 sm:$0xff]   ;;  %v7232_v34 = vld [vmem:[#allocation5 + $0x80] ss:$8 sps:$4 sm:$0xff]  }
  0x67   :  { %5494 = vmatprep.subr.bf16.mxu0 %v7200_v13  ;;  %v7233_v35 = vld [vmem:[#allocation5 + $0xc80] ss:$8 sps:$4 sm:$0xff]   ;;  %v7234_v36 = vld [vmem:[#allocation5 + $0x94] ss:$8 sps:$4 sm:$0xff]   ;;  %v7238_v38 = vld [vmem:[#allocation5 + $0x90] ss:$8 sps:$4 sm:$0xff]  }
  0x68   :  { %v7236_v37 = vld [vmem:[#allocation5 + $0xc94] ss:$8 sps:$4 sm:$0xff]   ;;  %v7239_v39 = vld [vmem:[#allocation5 + $0xc90] ss:$8 sps:$4 sm:$0xff]   ;;  %v7240_v40 = vld [vmem:[#allocation5 + $0xa4] ss:$8 sps:$4 sm:$0xff]  }
  0x69   :  { %5003 = vmatpush1.bf16.msra.mxu1 %v7202_v14  ;;  %v7242_v41 = vld [vmem:[#allocation5 + $0xca4] ss:$8 sps:$4 sm:$0xff]   ;;  %v7244_v42 = vld [vmem:[#allocation5 + $0xa0] ss:$8 sps:$4 sm:$0xff]   ;;  %v7246_v44 = vld [vmem:[#allocation5 + $0xb4] ss:$8 sps:$4 sm:$0xff]  }
  0x6a   :  { %5495 = vmatpush1.bf16.msra.mxu0 %v7203_v15  ;;  %5004 = vmatprep.subr.bf16.mxu1 %v7204_v16  ;;  %v7245_v43 = vld [vmem:[#allocation5 + $0xca0] ss:$8 sps:$4 sm:$0xff]   ;;  %v7248_v45 = vld [vmem:[#allocation5 + $0xcb4] ss:$8 sps:$4 sm:$0xff]   ;;  %v7250_v47 = vld [vmem:[#allocation5 + $0xb0] ss:$8 sps:$4 sm:$0xff]  }
  0x6b   :  { %5496 = vmatprep.subr.bf16.mxu0 %v7206_v17  ;;  %v85_v46 = vld [vmem:[#allocation2 + $0x8] sm:$0xff]  ;;  %v7252_v51 = vld [vmem:[#allocation5 + $0xc4] ss:$8 sps:$4 sm:$0xff]   ;;  %v7256_v54 = vld [vmem:[#allocation5 + $0xc0] ss:$8 sps:$4 sm:$0xff]   ;;  %s8549_s4 = smov [#allocation11]  }
  0x6c   :  { %v135_v48 = vpack.c.bf16 %v85_v46, %v85_v46  ;;  %v7251_v49 = vld [vmem:[#allocation5 + $0xcb0] ss:$8 sps:$4 sm:$0xff]   ;;  %v7254_v52 = vld [vmem:[#allocation5 + $0xcc4] ss:$8 sps:$4 sm:$0xff]   ;;  %v7257_v55 = vld [vmem:[#allocation5 + $0xcc0] ss:$8 sps:$4 sm:$0xff]  }
  0x6d   :  { %5005 = vmatpush1.bf16.msra.mxu1 %v7208_v18  ;;  %v109_v50 = vld [vmem:[#allocation2 + $0xc8] sm:$0xff]  ;;  %v7264_v60 = vld [vmem:[#allocation5 + $0xe4] ss:$8 sps:$4 sm:$0xff]   ;;  %v7268_v62 = vld [vmem:[#allocation5 + $0xe0] ss:$8 sps:$4 sm:$0xff]   ;;  %s6224_s28 = sshll.u32 %s8549_s4, 4  ;;  %s6225_s28 = int_to_ptr.vmem [resolvable:$true] %s6224_s28 }
  0x6e   :  { %5497 = vmatpush1.bf16.msra.mxu0 %v7209_v19  ;;  %5006 = vmatprep.subr.bf16.mxu1 %v7210_v20  ;;  %v159_v53 = vpack.c.bf16 %v109_v50, %v109_v50  ;;  %v7258_v56 = vld [vmem:[#allocation5 + $0xd4] ss:$8 sps:$4 sm:$0xff]   ;;  %v7262_v58 = vld [vmem:[#allocation5 + $0xd0] ss:$8 sps:$4 sm:$0xff]   ;;  %v7266_v61 = vld [vmem:[#allocation5 + $0xce4] ss:$8 sps:$4 sm:$0xff]   ;;  %p8515_p13 = scmp.lt.s32.totalorder %s6225_s28, %s6225_s28 }
  0x6f   :  { %5498 = vmatprep.subr.bf16.mxu0 %v7212_v21  ;;  %5028 = vmatprep.mubr.bf16.mxu1 %v135_v48  ;;  %v7260_v57 = vld [vmem:[#allocation5 + $0xcd4] ss:$8 sps:$4 sm:$0xff]   ;;  %v7263_v59 = vld [vmem:[#allocation5 + $0xcd0] ss:$8 sps:$4 sm:$0xff]   ;;  %v7269_v63 = vld [vmem:[#allocation5 + $0xce0] ss:$8 sps:$4 sm:$0xff]  }
  0x70   :  { %5520 = vmatprep.mubr.bf16.mxu0 %v159_v53  ;;  %v7270_v0 = vld [vmem:[#allocation5 + $0xf4] ss:$8 sps:$4 sm:$0xff]   ;;  %v7274_v2 = vld [vmem:[#allocation5 + $0xf0] ss:$8 sps:$4 sm:$0xff]   ;;  %v7278_v4 = vld [vmem:[#allocation5 + $0x104] ss:$8 sps:$4 sm:$0xff]  }
  0x71   :  { %5007 = vmatpush1.bf16.msra.mxu1 %v7214_v22  ;;  %v7272_v1 = vld [vmem:[#allocation5 + $0xcf4] ss:$8 sps:$4 sm:$0xff]   ;;  %v7275_v3 = vld [vmem:[#allocation5 + $0xcf0] ss:$8 sps:$4 sm:$0xff]   ;;  %v7281_v7 = vld [vmem:[#allocation5 + $0xd04] ss:$8 sps:$4 sm:$0xff]  }
  0x72   :  { %5499 = vmatpush1.bf16.msra.mxu0 %v7215_v23  ;;  %5008 = vmatprep.subr.bf16.mxu1 %v7216_v24  ;;  %v84_v5 = vld [vmem:[#allocation2] sm:$0xff]  ;;  %v7276_v8 = vld [vmem:[#allocation5 + $0x100] ss:$8 sps:$4 sm:$0xff]   ;;  %v7290_v16 = vld [vmem:[#allocation5 + $0x124] ss:$8 sps:$4 sm:$0xff]   ;;  %s8510_s29 = scalar_lea.vmem %s6225_s28, 128 }
  0x73   :  { %5500 = vmatprep.subr.bf16.mxu0 %v7218_v25  ;;  %v108_v6 = vld [vmem:[#allocation2 + $0xc0] sm:$0xff]  ;;  %v7279_v9 = vld [vmem:[#allocation5 + $0xd00] ss:$8 sps:$4 sm:$0xff]   ;;  %v134_v10 = vpack.c.bf16 %v84_v5, %v84_v5  ;;  %v7293_v17 = vld [vmem:[#allocation5 + $0xd24] ss:$8 sps:$4 sm:$0xff]   ;;  %p8511_p12 = scmp.ne.s32.totalorder %s6225_s28, %s8510_s29  ;;  %p8516_p0 = scmp.lt.s32.totalorder %s8510_s29, %s8510_s29 }
  0x74   :  { %v158_v11 = vpack.c.bf16 %v108_v6, %v108_v6  ;;  %v7284_v12 = vld [vmem:[#allocation5 + $0x114] ss:$8 sps:$4 sm:$0xff]   ;;  %v7282_v14 = vld [vmem:[#allocation5 + $0x110] ss:$8 sps:$4 sm:$0xff]   ;;  %v7288_v18 = vld [vmem:[#allocation5 + $0x120] ss:$8 sps:$4 sm:$0xff]  }
  0x75   :  { %5009 = vmatpush1.bf16.msra.mxu1 %v7220_v26  ;;  %v7287_v13 = vld [vmem:[#allocation5 + $0xd14] ss:$8 sps:$4 sm:$0xff]   ;;  %v7285_v15 = vld [vmem:[#allocation5 + $0xd10] ss:$8 sps:$4 sm:$0xff]   ;;  %v7291_v19 = vld [vmem:[#allocation5 + $0xd20] ss:$8 sps:$4 sm:$0xff]   ;;  %p8517_p1 = por %p8516_p0, %p8515_p13 }
  0x76   :  { %5501 = vmatpush1.bf16.msra.mxu0 %v7221_v27  ;;  %5010 = vmatprep.subr.bf16.mxu1 %v7222_v28  ;;  %v7296_v20 = vld [vmem:[#allocation5 + $0x134] ss:$8 sps:$4 sm:$0xff]   ;;  %v7294_v22 = vld [vmem:[#allocation5 + $0x130] ss:$8 sps:$4 sm:$0xff]   ;;  %v7302_v24 = vld [vmem:[#allocation5 + $0x144] ss:$8 sps:$4 sm:$0xff]  }
  0x77   :  { %5502 = vmatprep.subr.bf16.mxu0 %v7224_v29  ;;  %v7299_v21 = vld [vmem:[#allocation5 + $0xd34] ss:$8 sps:$4 sm:$0xff]   ;;  %v7297_v23 = vld [vmem:[#allocation5 + $0xd30] ss:$8 sps:$4 sm:$0xff]   ;;  %v7305_v25 = vld [vmem:[#allocation5 + $0xd44] ss:$8 sps:$4 sm:$0xff]   ;;  %p8518_p2 = pnand %p8517_p1, %p8511_p12 }
  0x78   :  { %v7300_v26 = vld [vmem:[#allocation5 + $0x140] ss:$8 sps:$4 sm:$0xff]   ;;  %v7308_v28 = vld [vmem:[#allocation5 + $0x154] ss:$8 sps:$4 sm:$0xff]   ;;  %v7330_v50 = vld [vmem:[#allocation5 + $0x190] ss:$8 sps:$4 sm:$0xff]  }
  0x79   :  { %5011 = vmatpush1.bf16.msra.mxu1 %v7226_v30  ;;  %v7303_v27 = vld [vmem:[#allocation5 + $0xd40] ss:$8 sps:$4 sm:$0xff]   ;;  %v7311_v29 = vld [vmem:[#allocation5 + $0xd54] ss:$8 sps:$4 sm:$0xff]   ;;  %v7306_v30 = vld [vmem:[#allocation5 + $0x150] ss:$8 sps:$4 sm:$0xff]  }
  0x7a   :  { %5503 = vmatpush1.bf16.msra.mxu0 %v7227_v31  ;;  %5012 = vmatprep.subr.bf16.mxu1 %v7228_v32  ;;  %v7309_v31 = vld [vmem:[#allocation5 + $0xd50] ss:$8 sps:$4 sm:$0xff]   ;;  %v7314_v32 = vld [vmem:[#allocation5 + $0x164] ss:$8 sps:$4 sm:$0xff]   ;;  %v7324_v46 = vld [vmem:[#allocation5 + $0x180] ss:$8 sps:$4 sm:$0xff]  }
  0x7b   :  { %5504 = vmatprep.subr.bf16.mxu0 %v7230_v33  ;;  %v7317_v33 = vld [vmem:[#allocation5 + $0xd64] ss:$8 sps:$4 sm:$0xff]   ;;  %v7332_v48 = vld [vmem:[#allocation5 + $0x194] ss:$8 sps:$4 sm:$0xff]   ;;  %v7360_v6 = vld [vmem:[#allocation5 + $0x1e0] ss:$8 sps:$4 sm:$0xff]  }
  0x7c   :  { %v7341_v53 = vld [vmem:[#allocation5 + $0xda4] ss:$8 sps:$4 sm:$0xff]  }
  0x7d   :  { %5013 = vmatpush1.bf16.msra.mxu1 %v7232_v34  ;;  %v87_v34 = vld [vmem:[#allocation2 + $0x18] sm:$0xff] }
  0x7e   :  { %5505 = vmatpush1.bf16.msra.mxu0 %v7233_v35  ;;  %5014 = vmatprep.subr.bf16.mxu1 %v7234_v36  ;;  %v7312_v35 = vld [vmem:[#allocation5 + $0x160] ss:$8 sps:$4 sm:$0xff]   ;;  %v137_v36 = vpack.c.bf16 %v87_v34, %v87_v34  ;;  %v7365_v5 = vld [vmem:[#allocation5 + $0xde4] ss:$8 sps:$4 sm:$0xff]   ;;  %v7390_v34 = vld [vmem:[#allocation5 + $0x230] ss:$8 sps:$4 sm:$0xff]  }
  0x7f   :  { %5506 = vmatprep.subr.bf16.mxu0 %v7236_v37  ;;  %v7315_v37 = vld [vmem:[#allocation5 + $0xd60] ss:$8 sps:$4 sm:$0xff]  }
  0x81   :  { %5015 = vmatpush1.bf16.msra.mxu1 %v7238_v38  ;;  %v111_v38 = vld [vmem:[#allocation2 + $0xd8] sm:$0xff] }
  0x82   :  { %5507 = vmatpush1.bf16.msra.mxu0 %v7239_v39  ;;  %5016 = vmatprep.subr.bf16.mxu1 %v7240_v40  ;;  %v7320_v39 = vld [vmem:[#allocation5 + $0x174] ss:$8 sps:$4 sm:$0xff]  }
  0x83   :  { %5508 = vmatprep.subr.bf16.mxu0 %v7242_v41  ;;  %v7323_v40 = vld [vmem:[#allocation5 + $0xd74] ss:$8 sps:$4 sm:$0xff]   ;;  %v161_v41 = vpack.c.bf16 %v111_v38, %v111_v38  ;;  %v7396_v38 = vld [vmem:[#allocation5 + $0x240] ss:$8 sps:$4 sm:$0xff]  }
  0x85   :  { %5017 = vmatpush1.bf16.msra.mxu1 %v7244_v42  ;;  %v7318_v42 = vld [vmem:[#allocation5 + $0x170] ss:$8 sps:$4 sm:$0xff]  }
  0x86   :  { %5509 = vmatpush1.bf16.msra.mxu0 %v7245_v43  ;;  %5018 = vmatprep.subr.bf16.mxu1 %v7246_v44  ;;  %v7321_v43 = vld [vmem:[#allocation5 + $0xd70] ss:$8 sps:$4 sm:$0xff]   ;;  %v7326_v44 = vld [vmem:[#allocation5 + $0x184] ss:$8 sps:$4 sm:$0xff]  }
  0x87   :  { %5510 = vmatprep.subr.bf16.mxu0 %v7248_v45  ;;  %v7329_v45 = vld [vmem:[#allocation5 + $0xd84] ss:$8 sps:$4 sm:$0xff]  }
  0x89   :  { %5019 = vmatpush1.bf16.msra.mxu1 %v7250_v47  ;;  %v7327_v47 = vld [vmem:[#allocation5 + $0xd80] ss:$8 sps:$4 sm:$0xff]  }
  0x8a   :  { %5511 = vmatpush1.bf16.msra.mxu0 %v7251_v49  ;;  %5020 = vmatprep.subr.bf16.mxu1 %v7252_v51  ;;  %v7335_v49 = vld [vmem:[#allocation5 + $0xd94] ss:$8 sps:$4 sm:$0xff]   ;;  %v7333_v51 = vld [vmem:[#allocation5 + $0xd90] ss:$8 sps:$4 sm:$0xff]  }
  0x8b   :  { %5512 = vmatprep.subr.bf16.mxu0 %v7254_v52  ;;  %v7338_v52 = vld [vmem:[#allocation5 + $0x1a4] ss:$8 sps:$4 sm:$0xff]  }
  0x8d   :  { %5021 = vmatpush1.bf16.msra.mxu1 %v7256_v54  ;;  %v7336_v54 = vld [vmem:[#allocation5 + $0x1a0] ss:$8 sps:$4 sm:$0xff]  }
  0x8e   :  { %5513 = vmatpush1.bf16.msra.mxu0 %v7257_v55  ;;  %5022 = vmatprep.subr.bf16.mxu1 %v7258_v56  ;;  %v7339_v55 = vld [vmem:[#allocation5 + $0xda0] ss:$8 sps:$4 sm:$0xff]   ;;  %v7344_v56 = vld [vmem:[#allocation5 + $0x1b4] ss:$8 sps:$4 sm:$0xff]  }
  0x8f   :  { %5514 = vmatprep.subr.bf16.mxu0 %v7260_v57  ;;  %v7347_v57 = vld [vmem:[#allocation5 + $0xdb4] ss:$8 sps:$4 sm:$0xff]  }
  0x91   :  { %5023 = vmatpush1.bf16.msra.mxu1 %v7262_v58  ;;  %v7342_v58 = vld [vmem:[#allocation5 + $0x1b0] ss:$8 sps:$4 sm:$0xff]  }
  0x92   :  { %5515 = vmatpush1.bf16.msra.mxu0 %v7263_v59  ;;  %5024 = vmatprep.subr.bf16.mxu1 %v7264_v60  ;;  %v7345_v59 = vld [vmem:[#allocation5 + $0xdb0] ss:$8 sps:$4 sm:$0xff]   ;;  %v7350_v60 = vld [vmem:[#allocation5 + $0x1c4] ss:$8 sps:$4 sm:$0xff]  }
  0x93   :  { %5516 = vmatprep.subr.bf16.mxu0 %v7266_v61  ;;  %v7353_v61 = vld [vmem:[#allocation5 + $0xdc4] ss:$8 sps:$4 sm:$0xff]  }
  0x95   :  { %5025 = vmatpush1.bf16.msra.mxu1 %v7268_v62  ;;  %v7348_v62 = vld [vmem:[#allocation5 + $0x1c0] ss:$8 sps:$4 sm:$0xff]  }
  0x96   :  { %5517 = vmatpush1.bf16.msra.mxu0 %v7269_v63  ;;  %5026 = vmatprep.subr.bf16.mxu1 %v7270_v0  ;;  %v7351_v63 = vld [vmem:[#allocation5 + $0xdc0] ss:$8 sps:$4 sm:$0xff]   ;;  %v7356_v0 = vld [vmem:[#allocation5 + $0x1d4] ss:$8 sps:$4 sm:$0xff]  }
  0x97   :  { %5518 = vmatprep.subr.bf16.mxu0 %v7272_v1  ;;  %v7359_v1 = vld [vmem:[#allocation5 + $0xdd4] ss:$8 sps:$4 sm:$0xff]  }
  0x99   :  { %5027 = vmatpush1.bf16.msra.mxu1 %v7274_v2  ;;  %v7354_v2 = vld [vmem:[#allocation5 + $0x1d0] ss:$8 sps:$4 sm:$0xff]  }
  0x9a   :  { %5519 = vmatpush1.bf16.msra.mxu0 %v7275_v3  ;;  %5037 = vmatprep.subr.bf16.mxu1 %v7278_v4  ;;  %v7357_v3 = vld [vmem:[#allocation5 + $0xdd0] ss:$8 sps:$4 sm:$0xff]   ;;  %v7362_v4 = vld [vmem:[#allocation5 + $0x1e4] ss:$8 sps:$4 sm:$0xff]  }
  0x9b   :  { %5529 = vmatprep.subr.bf16.mxu0 %v7281_v7  ;;  %v7363_v7 = vld [vmem:[#allocation5 + $0xde0] ss:$8 sps:$4 sm:$0xff]  }
  0x9c   :  { %5029 = vmatmul.mubr.bf16.vlgmr.msra.gmra.mrb[0].mxu1 %v134_v10  ;;  %v7366_v10 = vld [vmem:[#allocation5 + $0x1f0] ss:$8 sps:$4 sm:$0xff]  }
  0x9d   :  { %5521 = vmatmul.mubr.bf16.vlgmr.msra.gmra.mrb[0].mxu0 %v158_v11  ;;  %5038 = vmatpush1.bf16.msra.mxu1 %v7276_v8  ;;  %v7368_v8 = vld [vmem:[#allocation5 + $0x1f4] ss:$8 sps:$4 sm:$0xff]   ;;  %v7369_v11 = vld [vmem:[#allocation5 + $0xdf0] ss:$8 sps:$4 sm:$0xff]  }
  0x9e   :  { %5530 = vmatpush1.bf16.msra.mxu0 %v7279_v9  ;;  %5039 = vmatprep.subr.bf16.mxu1 %v7284_v12  ;;  %v7371_v9 = vld [vmem:[#allocation5 + $0xdf4] ss:$8 sps:$4 sm:$0xff]   ;;  %v7374_v12 = vld [vmem:[#allocation5 + $0x204] ss:$8 sps:$4 sm:$0xff]  }
  0x9f   :  { %5531 = vmatprep.subr.bf16.mxu0 %v7287_v13  ;;  %5069 = vmatprep.mubr.bf16.mxu1 %v137_v36  ;;  %v86_v13 = vld [vmem:[#allocation2 + $0x10] sm:$0xff] }
  0xa0   :  { %5561 = vmatprep.mubr.bf16.mxu0 %v161_v41  ;;  %v7398_v36 = vld [vmem:[#allocation5 + $0x244] ss:$8 sps:$4 sm:$0xff]   ;;  %v7407_v41 = vld [vmem:[#allocation5 + $0xe54] ss:$8 sps:$4 sm:$0xff]  }
  0xa1   :  { %5040 = vmatpush1.bf16.msra.mxu1 %v7282_v14  ;;  %v110_v14 = vld [vmem:[#allocation2 + $0xd0] sm:$0xff] }
  0xa2   :  { %5532 = vmatpush1.bf16.msra.mxu0 %v7285_v15  ;;  %5041 = vmatprep.subr.bf16.mxu1 %v7290_v16  ;;  %v7377_v15 = vld [vmem:[#allocation5 + $0xe04] ss:$8 sps:$4 sm:$0xff]   ;;  %v7372_v16 = vld [vmem:[#allocation5 + $0x200] ss:$8 sps:$4 sm:$0xff]  }
  0xa3   :  { %5533 = vmatprep.subr.bf16.mxu0 %v7293_v17  ;;  %v7375_v17 = vld [vmem:[#allocation5 + $0xe00] ss:$8 sps:$4 sm:$0xff]  }
  0xa5   :  { %5042 = vmatpush1.bf16.msra.mxu1 %v7288_v18  ;;  %v136_v18 = vpack.c.bf16 %v86_v13, %v86_v13  ;;  %v7461_v13 = vld [vmem:[#allocation5 + $0xee4] ss:$8 sps:$4 sm:$0xff]  }
  0xa6   :  { %5534 = vmatpush1.bf16.msra.mxu0 %v7291_v19  ;;  %5043 = vmatprep.subr.bf16.mxu1 %v7296_v20  ;;  %v160_v19 = vpack.c.bf16 %v110_v14, %v110_v14  ;;  %v7380_v20 = vld [vmem:[#allocation5 + $0x214] ss:$8 sps:$4 sm:$0xff]   ;;  %v7456_v14 = vld [vmem:[#allocation5 + $0x2e0] ss:$8 sps:$4 sm:$0xff]  }
  0xa7   :  { %5535 = vmatprep.subr.bf16.mxu0 %v7299_v21  ;;  %v7383_v21 = vld [vmem:[#allocation5 + $0xe14] ss:$8 sps:$4 sm:$0xff]  }
  0xa9   :  { %5044 = vmatpush1.bf16.msra.mxu1 %v7294_v22  ;;  %v89_v22 = vld [vmem:[#allocation2 + $0x28] sm:$0xff] }
  0xaa   :  { %5536 = vmatpush1.bf16.msra.mxu0 %v7297_v23  ;;  %5045 = vmatprep.subr.bf16.mxu1 %v7302_v24  ;;  %v7378_v23 = vld [vmem:[#allocation5 + $0x210] ss:$8 sps:$4 sm:$0xff]   ;;  %v139_v24 = vpack.c.bf16 %v89_v22, %v89_v22 }
  0xab   :  { %5537 = vmatprep.subr.bf16.mxu0 %v7305_v25  ;;  %v7381_v25 = vld [vmem:[#allocation5 + $0xe10] ss:$8 sps:$4 sm:$0xff]  }
  0xac   :  { %v112_v22 = vld [vmem:[#allocation2 + $0xe0] sm:$0xff] }
  0xad   :  { %5046 = vmatpush1.bf16.msra.mxu1 %v7300_v26  ;;  %v113_v26 = vld [vmem:[#allocation2 + $0xe8] sm:$0xff] }
  0xae   :  { %5538 = vmatpush1.bf16.msra.mxu0 %v7303_v27  ;;  %5047 = vmatprep.subr.bf16.mxu1 %v7308_v28  ;;  %v7386_v27 = vld [vmem:[#allocation5 + $0x224] ss:$8 sps:$4 sm:$0xff]  }
  0xaf   :  { %5539 = vmatprep.subr.bf16.mxu0 %v7311_v29  ;;  %v7389_v28 = vld [vmem:[#allocation5 + $0xe24] ss:$8 sps:$4 sm:$0xff]   ;;  %v163_v29 = vpack.c.bf16 %v113_v26, %v113_v26 }
  0xb1   :  { %5048 = vmatpush1.bf16.msra.mxu1 %v7306_v30  ;;  %v7384_v30 = vld [vmem:[#allocation5 + $0x220] ss:$8 sps:$4 sm:$0xff]  }
  0xb2   :  { %5540 = vmatpush1.bf16.msra.mxu0 %v7309_v31  ;;  %5049 = vmatprep.subr.bf16.mxu1 %v7314_v32  ;;  %v7387_v31 = vld [vmem:[#allocation5 + $0xe20] ss:$8 sps:$4 sm:$0xff]   ;;  %v7392_v32 = vld [vmem:[#allocation5 + $0x234] ss:$8 sps:$4 sm:$0xff]  }
  0xb3   :  { %5541 = vmatprep.subr.bf16.mxu0 %v7317_v33  ;;  %v7395_v33 = vld [vmem:[#allocation5 + $0xe34] ss:$8 sps:$4 sm:$0xff]  }
  0xb5   :  { %5050 = vmatpush1.bf16.msra.mxu1 %v7312_v35  ;;  %v7393_v35 = vld [vmem:[#allocation5 + $0xe30] ss:$8 sps:$4 sm:$0xff]  }
  0xb6   :  { %5542 = vmatpush1.bf16.msra.mxu0 %v7315_v37  ;;  %5051 = vmatprep.subr.bf16.mxu1 %v7320_v39  ;;  %v7401_v37 = vld [vmem:[#allocation5 + $0xe44] ss:$8 sps:$4 sm:$0xff]   ;;  %v7399_v39 = vld [vmem:[#allocation5 + $0xe40] ss:$8 sps:$4 sm:$0xff]  }
  0xb7   :  { %5543 = vmatprep.subr.bf16.mxu0 %v7323_v40  ;;  %v7404_v40 = vld [vmem:[#allocation5 + $0x254] ss:$8 sps:$4 sm:$0xff]  }
  0xb9   :  { %5052 = vmatpush1.bf16.msra.mxu1 %v7318_v42  ;;  %v7402_v42 = vld [vmem:[#allocation5 + $0x250] ss:$8 sps:$4 sm:$0xff]  }
  0xba   :  { %5544 = vmatpush1.bf16.msra.mxu0 %v7321_v43  ;;  %5053 = vmatprep.subr.bf16.mxu1 %v7326_v44  ;;  %v7405_v43 = vld [vmem:[#allocation5 + $0xe50] ss:$8 sps:$4 sm:$0xff]   ;;  %v7410_v44 = vld [vmem:[#allocation5 + $0x264] ss:$8 sps:$4 sm:$0xff]  }
  0xbb   :  { %5545 = vmatprep.subr.bf16.mxu0 %v7329_v45  ;;  %v7413_v45 = vld [vmem:[#allocation5 + $0xe64] ss:$8 sps:$4 sm:$0xff]  }
  0xbd   :  { %5054 = vmatpush1.bf16.msra.mxu1 %v7324_v46  ;;  %v7408_v46 = vld [vmem:[#allocation5 + $0x260] ss:$8 sps:$4 sm:$0xff]  }
  0xbe   :  { %5546 = vmatpush1.bf16.msra.mxu0 %v7327_v47  ;;  %5055 = vmatprep.subr.bf16.mxu1 %v7332_v48  ;;  %v7411_v47 = vld [vmem:[#allocation5 + $0xe60] ss:$8 sps:$4 sm:$0xff]   ;;  %v7416_v48 = vld [vmem:[#allocation5 + $0x274] ss:$8 sps:$4 sm:$0xff]  }
  0xbf   :  { %5547 = vmatprep.subr.bf16.mxu0 %v7335_v49  ;;  %v7419_v49 = vld [vmem:[#allocation5 + $0xe74] ss:$8 sps:$4 sm:$0xff]  }
  0xc1   :  { %5056 = vmatpush1.bf16.msra.mxu1 %v7330_v50  ;;  %v7414_v50 = vld [vmem:[#allocation5 + $0x270] ss:$8 sps:$4 sm:$0xff]  }
  0xc2   :  { %5548 = vmatpush1.bf16.msra.mxu0 %v7333_v51  ;;  %5057 = vmatprep.subr.bf16.mxu1 %v7338_v52  ;;  %v7417_v51 = vld [vmem:[#allocation5 + $0xe70] ss:$8 sps:$4 sm:$0xff]   ;;  %v7422_v52 = vld [vmem:[#allocation5 + $0x284] ss:$8 sps:$4 sm:$0xff]  }
  0xc3   :  { %5549 = vmatprep.subr.bf16.mxu0 %v7341_v53  ;;  %v7425_v53 = vld [vmem:[#allocation5 + $0xe84] ss:$8 sps:$4 sm:$0xff]  }
  0xc5   :  { %5058 = vmatpush1.bf16.msra.mxu1 %v7336_v54  ;;  %v7420_v54 = vld [vmem:[#allocation5 + $0x280] ss:$8 sps:$4 sm:$0xff]  }
  0xc6   :  { %5550 = vmatpush1.bf16.msra.mxu0 %v7339_v55  ;;  %5059 = vmatprep.subr.bf16.mxu1 %v7344_v56  ;;  %v7423_v55 = vld [vmem:[#allocation5 + $0xe80] ss:$8 sps:$4 sm:$0xff]   ;;  %v7428_v56 = vld [vmem:[#allocation5 + $0x294] ss:$8 sps:$4 sm:$0xff]  }
  0xc7   :  { %5551 = vmatprep.subr.bf16.mxu0 %v7347_v57  ;;  %v7431_v57 = vld [vmem:[#allocation5 + $0xe94] ss:$8 sps:$4 sm:$0xff]  }
  0xc9   :  { %5060 = vmatpush1.bf16.msra.mxu1 %v7342_v58  ;;  %v7426_v58 = vld [vmem:[#allocation5 + $0x290] ss:$8 sps:$4 sm:$0xff]  }
  0xca   :  { %5552 = vmatpush1.bf16.msra.mxu0 %v7345_v59  ;;  %5061 = vmatprep.subr.bf16.mxu1 %v7350_v60  ;;  %v7429_v59 = vld [vmem:[#allocation5 + $0xe90] ss:$8 sps:$4 sm:$0xff]   ;;  %v7434_v60 = vld [vmem:[#allocation5 + $0x2a4] ss:$8 sps:$4 sm:$0xff]  }
  0xcb   :  { %5553 = vmatprep.subr.bf16.mxu0 %v7353_v61  ;;  %v7437_v61 = vld [vmem:[#allocation5 + $0xea4] ss:$8 sps:$4 sm:$0xff]  }
  0xcd   :  { %5062 = vmatpush1.bf16.msra.mxu1 %v7348_v62  ;;  %v7432_v62 = vld [vmem:[#allocation5 + $0x2a0] ss:$8 sps:$4 sm:$0xff]  }
  0xce   :  { %5554 = vmatpush1.bf16.msra.mxu0 %v7351_v63  ;;  %5063 = vmatprep.subr.bf16.mxu1 %v7356_v0  ;;  %v7435_v63 = vld [vmem:[#allocation5 + $0xea0] ss:$8 sps:$4 sm:$0xff]   ;;  %v7440_v0 = vld [vmem:[#allocation5 + $0x2b4] ss:$8 sps:$4 sm:$0xff]  }
  0xcf   :  { %5555 = vmatprep.subr.bf16.mxu0 %v7359_v1  ;;  %v7443_v1 = vld [vmem:[#allocation5 + $0xeb4] ss:$8 sps:$4 sm:$0xff]  }
  0xd1   :  { %5064 = vmatpush1.bf16.msra.mxu1 %v7354_v2  ;;  %v7438_v2 = vld [vmem:[#allocation5 + $0x2b0] ss:$8 sps:$4 sm:$0xff]  }
  0xd2   :  { %5556 = vmatpush1.bf16.msra.mxu0 %v7357_v3  ;;  %5065 = vmatprep.subr.bf16.mxu1 %v7362_v4  ;;  %v7441_v3 = vld [vmem:[#allocation5 + $0xeb0] ss:$8 sps:$4 sm:$0xff]   ;;  %v7446_v4 = vld [vmem:[#allocation5 + $0x2c4] ss:$8 sps:$4 sm:$0xff]  }
  0xd3   :  { %5557 = vmatprep.subr.bf16.mxu0 %v7365_v5  ;;  %v7449_v5 = vld [vmem:[#allocation5 + $0xec4] ss:$8 sps:$4 sm:$0xff]  }
  0xd5   :  { %5066 = vmatpush1.bf16.msra.mxu1 %v7360_v6  ;;  %v7444_v6 = vld [vmem:[#allocation5 + $0x2c0] ss:$8 sps:$4 sm:$0xff]  }
  0xd6   :  { %5558 = vmatpush1.bf16.msra.mxu0 %v7363_v7  ;;  %5067 = vmatprep.subr.bf16.mxu1 %v7368_v8  ;;  %v7447_v7 = vld [vmem:[#allocation5 + $0xec0] ss:$8 sps:$4 sm:$0xff]   ;;  %v7452_v8 = vld [vmem:[#allocation5 + $0x2d4] ss:$8 sps:$4 sm:$0xff]  }
  0xd7   :  { %5559 = vmatprep.subr.bf16.mxu0 %v7371_v9  ;;  %v7455_v9 = vld [vmem:[#allocation5 + $0xed4] ss:$8 sps:$4 sm:$0xff]  }
  0xd9   :  { %5068 = vmatpush1.bf16.msra.mxu1 %v7366_v10  ;;  %v7450_v10 = vld [vmem:[#allocation5 + $0x2d0] ss:$8 sps:$4 sm:$0xff]  }
  0xda   :  { %5560 = vmatpush1.bf16.msra.mxu0 %v7369_v11  ;;  %5078 = vmatprep.subr.bf16.mxu1 %v7374_v12  ;;  %v7453_v11 = vld [vmem:[#allocation5 + $0xed0] ss:$8 sps:$4 sm:$0xff]   ;;  %v7458_v12 = vld [vmem:[#allocation5 + $0x2e4] ss:$8 sps:$4 sm:$0xff]  }
  0xdb   :  { %5570 = vmatprep.subr.bf16.mxu0 %v7377_v15  ;;  %v7459_v15 = vld [vmem:[#allocation5 + $0xee0] ss:$8 sps:$4 sm:$0xff]  }
  0xdc   :  { %5070 = vmatmul.mubr.bf16.vlgmr.msra.gmra.mrb[0].mxu1 %v136_v18  ;;  %v7462_v18 = vld [vmem:[#allocation5 + $0x2f0] ss:$8 sps:$4 sm:$0xff]  }
  0xdd   :  { %5562 = vmatmul.mubr.bf16.vlgmr.msra.gmra.mrb[0].mxu0 %v160_v19  ;;  %5079 = vmatpush1.bf16.msra.mxu1 %v7372_v16  ;;  %v7464_v16 = vld [vmem:[#allocation5 + $0x2f4] ss:$8 sps:$4 sm:$0xff]   ;;  %v7465_v19 = vld [vmem:[#allocation5 + $0xef0] ss:$8 sps:$4 sm:$0xff]  }
  0xde   :  { %5571 = vmatpush1.bf16.msra.mxu0 %v7375_v17  ;;  %5080 = vmatprep.subr.bf16.mxu1 %v7380_v20  ;;  %v7467_v17 = vld [vmem:[#allocation5 + $0xef4] ss:$8 sps:$4 sm:$0xff]   ;;  %v7470_v20 = vld [vmem:[#allocation5 + $0x304] ss:$8 sps:$4 sm:$0xff]  }
  0xdf   :  { %5572 = vmatprep.subr.bf16.mxu0 %v7383_v21  ;;  %5110 = vmatprep.mubr.bf16.mxu1 %v139_v24  ;;  %v88_v21 = vld [vmem:[#allocation2 + $0x20] sm:$0xff]  ;;  %v7468_v24 = vld [vmem:[#allocation5 + $0x300] ss:$8 sps:$4 sm:$0xff]  }
  0xe0   :  { %5602 = vmatprep.mubr.bf16.mxu0 %v163_v29  ;;  %v138_v26 = vpack.c.bf16 %v88_v21, %v88_v21  ;;  %v115_v29 = vld [vmem:[#allocation2 + $0xf8] sm:$0xff] }
  0xe1   :  { %5081 = vmatpush1.bf16.msra.mxu1 %v7378_v23  ;;  %v7473_v23 = vld [vmem:[#allocation5 + $0xf04] ss:$8 sps:$4 sm:$0xff]  }
  0xe2   :  { %5573 = vmatpush1.bf16.msra.mxu0 %v7381_v25  ;;  %5082 = vmatprep.subr.bf16.mxu1 %v7386_v27  ;;  %v7471_v25 = vld [vmem:[#allocation5 + $0xf00] ss:$8 sps:$4 sm:$0xff]   ;;  %v162_v27 = vpack.c.bf16 %v112_v22, %v112_v22  ;;  %v7557_v21 = vld [vmem:[#allocation5 + $0xfe4] ss:$8 sps:$4 sm:$0xff]  }
  0xe3   :  { %5574 = vmatprep.subr.bf16.mxu0 %v7389_v28  ;;  %v91_v28 = vld [vmem:[#allocation2 + $0x38] sm:$0xff] }
  0xe4   :  { %v7552_v22 = vld [vmem:[#allocation5 + $0x3e0] ss:$8 sps:$4 sm:$0xff]  }
  0xe5   :  { %5083 = vmatpush1.bf16.msra.mxu1 %v7384_v30  ;;  %v7476_v30 = vld [vmem:[#allocation5 + $0x314] ss:$8 sps:$4 sm:$0xff]  }
  0xe6   :  { %5575 = vmatpush1.bf16.msra.mxu0 %v7387_v31  ;;  %5084 = vmatprep.subr.bf16.mxu1 %v7392_v32  ;;  %v7479_v31 = vld [vmem:[#allocation5 + $0xf14] ss:$8 sps:$4 sm:$0xff]   ;;  %v141_v32 = vpack.c.bf16 %v91_v28, %v91_v28  ;;  %v7566_v28 = vld [vmem:[#allocation5 + $0x404] ss:$8 sps:$4 sm:$0xff]  }
  0xe7   :  { %5576 = vmatprep.subr.bf16.mxu0 %v7395_v33  ;;  %v165_v33 = vpack.c.bf16 %v115_v29, %v115_v29  ;;  %v90_v29 = vld [vmem:[#allocation2 + $0x30] sm:$0xff] }
  0xe9   :  { %5085 = vmatpush1.bf16.msra.mxu1 %v7390_v34  ;;  %v7474_v34 = vld [vmem:[#allocation5 + $0x310] ss:$8 sps:$4 sm:$0xff]  }
  0xea   :  { %5577 = vmatpush1.bf16.msra.mxu0 %v7393_v35  ;;  %5086 = vmatprep.subr.bf16.mxu1 %v7398_v36  ;;  %v7477_v35 = vld [vmem:[#allocation5 + $0xf10] ss:$8 sps:$4 sm:$0xff]   ;;  %v7482_v36 = vld [vmem:[#allocation5 + $0x324] ss:$8 sps:$4 sm:$0xff]  }
  0xeb   :  { %5578 = vmatprep.subr.bf16.mxu0 %v7401_v37  ;;  %v7485_v37 = vld [vmem:[#allocation5 + $0xf24] ss:$8 sps:$4 sm:$0xff]  }
  0xed   :  { %5087 = vmatpush1.bf16.msra.mxu1 %v7396_v38  ;;  %v7480_v38 = vld [vmem:[#allocation5 + $0x320] ss:$8 sps:$4 sm:$0xff]  }
  0xee   :  { %5579 = vmatpush1.bf16.msra.mxu0 %v7399_v39  ;;  %5088 = vmatprep.subr.bf16.mxu1 %v7404_v40  ;;  %v7483_v39 = vld [vmem:[#allocation5 + $0xf20] ss:$8 sps:$4 sm:$0xff]   ;;  %v7488_v40 = vld [vmem:[#allocation5 + $0x334] ss:$8 sps:$4 sm:$0xff]  }
  0xef   :  { %5580 = vmatprep.subr.bf16.mxu0 %v7407_v41  ;;  %v7491_v41 = vld [vmem:[#allocation5 + $0xf34] ss:$8 sps:$4 sm:$0xff]  }
  0xf1   :  { %5089 = vmatpush1.bf16.msra.mxu1 %v7402_v42  ;;  %v7486_v42 = vld [vmem:[#allocation5 + $0x330] ss:$8 sps:$4 sm:$0xff]  }
  0xf2   :  { %5581 = vmatpush1.bf16.msra.mxu0 %v7405_v43  ;;  %5090 = vmatprep.subr.bf16.mxu1 %v7410_v44  ;;  %v7489_v43 = vld [vmem:[#allocation5 + $0xf30] ss:$8 sps:$4 sm:$0xff]   ;;  %v7494_v44 = vld [vmem:[#allocation5 + $0x344] ss:$8 sps:$4 sm:$0xff]  }
  0xf3   :  { %5582 = vmatprep.subr.bf16.mxu0 %v7413_v45  ;;  %v7497_v45 = vld [vmem:[#allocation5 + $0xf44] ss:$8 sps:$4 sm:$0xff]  }
  0xf5   :  { %5091 = vmatpush1.bf16.msra.mxu1 %v7408_v46  ;;  %v7492_v46 = vld [vmem:[#allocation5 + $0x340] ss:$8 sps:$4 sm:$0xff]  }
  0xf6   :  { %5583 = vmatpush1.bf16.msra.mxu0 %v7411_v47  ;;  %5092 = vmatprep.subr.bf16.mxu1 %v7416_v48  ;;  %v7495_v47 = vld [vmem:[#allocation5 + $0xf40] ss:$8 sps:$4 sm:$0xff]   ;;  %v7500_v48 = vld [vmem:[#allocation5 + $0x354] ss:$8 sps:$4 sm:$0xff]  }
  0xf7   :  { %5584 = vmatprep.subr.bf16.mxu0 %v7419_v49  ;;  %v7503_v49 = vld [vmem:[#allocation5 + $0xf54] ss:$8 sps:$4 sm:$0xff]  }
  0xf9   :  { %5093 = vmatpush1.bf16.msra.mxu1 %v7414_v50  ;;  %v7498_v50 = vld [vmem:[#allocation5 + $0x350] ss:$8 sps:$4 sm:$0xff]  }
  0xfa   :  { %5585 = vmatpush1.bf16.msra.mxu0 %v7417_v51  ;;  %5094 = vmatprep.subr.bf16.mxu1 %v7422_v52  ;;  %v7501_v51 = vld [vmem:[#allocation5 + $0xf50] ss:$8 sps:$4 sm:$0xff]   ;;  %v7506_v52 = vld [vmem:[#allocation5 + $0x364] ss:$8 sps:$4 sm:$0xff]  }
  0xfb   :  { %5586 = vmatprep.subr.bf16.mxu0 %v7425_v53  ;;  %v7509_v53 = vld [vmem:[#allocation5 + $0xf64] ss:$8 sps:$4 sm:$0xff]  }
  0xfd   :  { %5095 = vmatpush1.bf16.msra.mxu1 %v7420_v54  ;;  %v7504_v54 = vld [vmem:[#allocation5 + $0x360] ss:$8 sps:$4 sm:$0xff]  }
  0xfe   :  { %5587 = vmatpush1.bf16.msra.mxu0 %v7423_v55  ;;  %5096 = vmatprep.subr.bf16.mxu1 %v7428_v56  ;;  %v7507_v55 = vld [vmem:[#allocation5 + $0xf60] ss:$8 sps:$4 sm:$0xff]   ;;  %v7512_v56 = vld [vmem:[#allocation5 + $0x374] ss:$8 sps:$4 sm:$0xff]  }
  0xff   :  { %5588 = vmatprep.subr.bf16.mxu0 %v7431_v57  ;;  %v7515_v57 = vld [vmem:[#allocation5 + $0xf74] ss:$8 sps:$4 sm:$0xff]  }
 0x101   :  { %5097 = vmatpush1.bf16.msra.mxu1 %v7426_v58  ;;  %v7510_v58 = vld [vmem:[#allocation5 + $0x370] ss:$8 sps:$4 sm:$0xff]  }
 0x102   :  { %5589 = vmatpush1.bf16.msra.mxu0 %v7429_v59  ;;  %5098 = vmatprep.subr.bf16.mxu1 %v7434_v60  ;;  %v7513_v59 = vld [vmem:[#allocation5 + $0xf70] ss:$8 sps:$4 sm:$0xff]   ;;  %v7518_v60 = vld [vmem:[#allocation5 + $0x384] ss:$8 sps:$4 sm:$0xff]  }
 0x103   :  { %5590 = vmatprep.subr.bf16.mxu0 %v7437_v61  ;;  %v7521_v61 = vld [vmem:[#allocation5 + $0xf84] ss:$8 sps:$4 sm:$0xff]  }
 0x105   :  { %5099 = vmatpush1.bf16.msra.mxu1 %v7432_v62  ;;  %v7516_v62 = vld [vmem:[#allocation5 + $0x380] ss:$8 sps:$4 sm:$0xff]  }
 0x106   :  { %5591 = vmatpush1.bf16.msra.mxu0 %v7435_v63  ;;  %5100 = vmatprep.subr.bf16.mxu1 %v7440_v0  ;;  %v7519_v63 = vld [vmem:[#allocation5 + $0xf80] ss:$8 sps:$4 sm:$0xff]   ;;  %v7524_v0 = vld [vmem:[#allocation5 + $0x394] ss:$8 sps:$4 sm:$0xff]  }
 0x107   :  { %5592 = vmatprep.subr.bf16.mxu0 %v7443_v1  ;;  %v7527_v1 = vld [vmem:[#allocation5 + $0xf94] ss:$8 sps:$4 sm:$0xff]  }
 0x109   :  { %5101 = vmatpush1.bf16.msra.mxu1 %v7438_v2  ;;  %v7522_v2 = vld [vmem:[#allocation5 + $0x390] ss:$8 sps:$4 sm:$0xff]  }
 0x10a   :  { %5593 = vmatpush1.bf16.msra.mxu0 %v7441_v3  ;;  %5102 = vmatprep.subr.bf16.mxu1 %v7446_v4  ;;  %v7525_v3 = vld [vmem:[#allocation5 + $0xf90] ss:$8 sps:$4 sm:$0xff]   ;;  %v7530_v4 = vld [vmem:[#allocation5 + $0x3a4] ss:$8 sps:$4 sm:$0xff]  }
 0x10b   :  { %5594 = vmatprep.subr.bf16.mxu0 %v7449_v5  ;;  %v7533_v5 = vld [vmem:[#allocation5 + $0xfa4] ss:$8 sps:$4 sm:$0xff]  }
 0x10d   :  { %5103 = vmatpush1.bf16.msra.mxu1 %v7444_v6  ;;  %v7528_v6 = vld [vmem:[#allocation5 + $0x3a0] ss:$8 sps:$4 sm:$0xff]  }
 0x10e   :  { %5595 = vmatpush1.bf16.msra.mxu0 %v7447_v7  ;;  %5104 = vmatprep.subr.bf16.mxu1 %v7452_v8  ;;  %v7531_v7 = vld [vmem:[#allocation5 + $0xfa0] ss:$8 sps:$4 sm:$0xff]   ;;  %v7536_v8 = vld [vmem:[#allocation5 + $0x3b4] ss:$8 sps:$4 sm:$0xff]  }
 0x10f   :  { %5596 = vmatprep.subr.bf16.mxu0 %v7455_v9  ;;  %v7539_v9 = vld [vmem:[#allocation5 + $0xfb4] ss:$8 sps:$4 sm:$0xff]  }
 0x111   :  { %5105 = vmatpush1.bf16.msra.mxu1 %v7450_v10  ;;  %v7534_v10 = vld [vmem:[#allocation5 + $0x3b0] ss:$8 sps:$4 sm:$0xff]  }
 0x112   :  { %5597 = vmatpush1.bf16.msra.mxu0 %v7453_v11  ;;  %5106 = vmatprep.subr.bf16.mxu1 %v7458_v12  ;;  %v7537_v11 = vld [vmem:[#allocation5 + $0xfb0] ss:$8 sps:$4 sm:$0xff]   ;;  %v7542_v12 = vld [vmem:[#allocation5 + $0x3c4] ss:$8 sps:$4 sm:$0xff]  }
 0x113   :  { %5598 = vmatprep.subr.bf16.mxu0 %v7461_v13  ;;  %v7545_v13 = vld [vmem:[#allocation5 + $0xfc4] ss:$8 sps:$4 sm:$0xff]  }
 0x115   :  { %5107 = vmatpush1.bf16.msra.mxu1 %v7456_v14  ;;  %v7540_v14 = vld [vmem:[#allocation5 + $0x3c0] ss:$8 sps:$4 sm:$0xff]  }
 0x116   :  { %5599 = vmatpush1.bf16.msra.mxu0 %v7459_v15  ;;  %5108 = vmatprep.subr.bf16.mxu1 %v7464_v16  ;;  %v7543_v15 = vld [vmem:[#allocation5 + $0xfc0] ss:$8 sps:$4 sm:$0xff]   ;;  %v7548_v16 = vld [vmem:[#allocation5 + $0x3d4] ss:$8 sps:$4 sm:$0xff]  }
 0x117   :  { %5600 = vmatprep.subr.bf16.mxu0 %v7467_v17  ;;  %v7551_v17 = vld [vmem:[#allocation5 + $0xfd4] ss:$8 sps:$4 sm:$0xff]  }
 0x119   :  { %5109 = vmatpush1.bf16.msra.mxu1 %v7462_v18  ;;  %v7546_v18 = vld [vmem:[#allocation5 + $0x3d0] ss:$8 sps:$4 sm:$0xff]  }
 0x11a   :  { %5601 = vmatpush1.bf16.msra.mxu0 %v7465_v19  ;;  %5119 = vmatprep.subr.bf16.mxu1 %v7470_v20  ;;  %v7549_v19 = vld [vmem:[#allocation5 + $0xfd0] ss:$8 sps:$4 sm:$0xff]   ;;  %v7554_v20 = vld [vmem:[#allocation5 + $0x3e4] ss:$8 sps:$4 sm:$0xff]  }
 0x11b   :  { %5611 = vmatprep.subr.bf16.mxu0 %v7473_v23  ;;  %v7555_v23 = vld [vmem:[#allocation5 + $0xfe0] ss:$8 sps:$4 sm:$0xff]  }
 0x11c   :  { %5111 = vmatmul.mubr.bf16.vlgmr.msra.gmra.mrb[0].mxu1 %v138_v26  ;;  %v7558_v26 = vld [vmem:[#allocation5 + $0x3f0] ss:$8 sps:$4 sm:$0xff]  }
 0x11d   :  { %5603 = vmatmul.mubr.bf16.vlgmr.msra.gmra.mrb[0].mxu0 %v162_v27  ;;  %5120 = vmatpush1.bf16.msra.mxu1 %v7468_v24  ;;  %v7560_v24 = vld [vmem:[#allocation5 + $0x3f4] ss:$8 sps:$4 sm:$0xff]   ;;  %v7561_v27 = vld [vmem:[#allocation5 + $0xff0] ss:$8 sps:$4 sm:$0xff]  }
 0x11e   :  { %5612 = vmatpush1.bf16.msra.mxu0 %v7471_v25  ;;  %5121 = vmatprep.subr.bf16.mxu1 %v7476_v30  ;;  %v7563_v25 = vld [vmem:[#allocation5 + $0xff4] ss:$8 sps:$4 sm:$0xff]   ;;  %v114_v30 = vld [vmem:[#allocation2 + $0xf0] sm:$0xff] }
 0x11f   :  { %5613 = vmatprep.subr.bf16.mxu0 %v7479_v31  ;;  %5151 = vmatprep.mubr.bf16.mxu1 %v141_v32  ;;  %v7569_v31 = vld [vmem:[#allocation5 + $0x1004] ss:$8 sps:$4 sm:$0xff]   ;;  %v7564_v32 = vld [vmem:[#allocation5 + $0x400] ss:$8 sps:$4 sm:$0xff]  }
 0x120   :  { %5643 = vmatprep.mubr.bf16.mxu0 %v165_v33  ;;  %v7567_v33 = vld [vmem:[#allocation5 + $0x1000] ss:$8 sps:$4 sm:$0xff]  }
 0x121   :  { %5122 = vmatpush1.bf16.msra.mxu1 %v7474_v34  ;;  %v140_v34 = vpack.c.bf16 %v90_v29, %v90_v29  ;;  %v7653_v29 = vld [vmem:[#allocation5 + $0x10e4] ss:$8 sps:$4 sm:$0xff]  }
 0x122   :  { %5614 = vmatpush1.bf16.msra.mxu0 %v7477_v35  ;;  %5123 = vmatprep.subr.bf16.mxu1 %v7482_v36  ;;  %v164_v35 = vpack.c.bf16 %v114_v30, %v114_v30  ;;  %v93_v36 = vld [vmem:[#allocation2 + $0x48] sm:$0xff]  ;;  %v7648_v30 = vld [vmem:[#allocation5 + $0x4e0] ss:$8 sps:$4 sm:$0xff]  }
 0x123   :  { %5615 = vmatprep.subr.bf16.mxu0 %v7485_v37  ;;  %v117_v37 = vld [vmem:[#allocation2 + $0x108] sm:$0xff] }
 0x125   :  { %5124 = vmatpush1.bf16.msra.mxu1 %v7480_v38  ;;  %v7572_v38 = vld [vmem:[#allocation5 + $0x414] ss:$8 sps:$4 sm:$0xff]  }
 0x126   :  { %5616 = vmatpush1.bf16.msra.mxu0 %v7483_v39  ;;  %5125 = vmatprep.subr.bf16.mxu1 %v7488_v40  ;;  %v7575_v39 = vld [vmem:[#allocation5 + $0x1014] ss:$8 sps:$4 sm:$0xff]   ;;  %v143_v40 = vpack.c.bf16 %v93_v36, %v93_v36  ;;  %v7662_v36 = vld [vmem:[#allocation5 + $0x504] ss:$8 sps:$4 sm:$0xff]  }
 0x127   :  { %5617 = vmatprep.subr.bf16.mxu0 %v7491_v41  ;;  %v167_v41 = vpack.c.bf16 %v117_v37, %v117_v37  ;;  %v7665_v37 = vld [vmem:[#allocation5 + $0x1104] ss:$8 sps:$4 sm:$0xff]  }
 0x129   :  { %5126 = vmatpush1.bf16.msra.mxu1 %v7486_v42  ;;  %v7570_v42 = vld [vmem:[#allocation5 + $0x410] ss:$8 sps:$4 sm:$0xff]  }
 0x12a   :  { %5618 = vmatpush1.bf16.msra.mxu0 %v7489_v43  ;;  %5127 = vmatprep.subr.bf16.mxu1 %v7494_v44  ;;  %v7573_v43 = vld [vmem:[#allocation5 + $0x1010] ss:$8 sps:$4 sm:$0xff]   ;;  %v7578_v44 = vld [vmem:[#allocation5 + $0x424] ss:$8 sps:$4 sm:$0xff]  }
 0x12b   :  { %5619 = vmatprep.subr.bf16.mxu0 %v7497_v45  ;;  %v7581_v45 = vld [vmem:[#allocation5 + $0x1024] ss:$8 sps:$4 sm:$0xff]  }
 0x12d   :  { %5128 = vmatpush1.bf16.msra.mxu1 %v7492_v46  ;;  %v7576_v46 = vld [vmem:[#allocation5 + $0x420] ss:$8 sps:$4 sm:$0xff]  }
 0x12e   :  { %5620 = vmatpush1.bf16.msra.mxu0 %v7495_v47  ;;  %5129 = vmatprep.subr.bf16.mxu1 %v7500_v48  ;;  %v7579_v47 = vld [vmem:[#allocation5 + $0x1020] ss:$8 sps:$4 sm:$0xff]   ;;  %v7584_v48 = vld [vmem:[#allocation5 + $0x434] ss:$8 sps:$4 sm:$0xff]  }
 0x12f   :  { %5621 = vmatprep.subr.bf16.mxu0 %v7503_v49  ;;  %v7587_v49 = vld [vmem:[#allocation5 + $0x1034] ss:$8 sps:$4 sm:$0xff]  }
 0x131   :  { %5130 = vmatpush1.bf16.msra.mxu1 %v7498_v50  ;;  %v7582_v50 = vld [vmem:[#allocation5 + $0x430] ss:$8 sps:$4 sm:$0xff]  }
 0x132   :  { %5622 = vmatpush1.bf16.msra.mxu0 %v7501_v51  ;;  %5131 = vmatprep.subr.bf16.mxu1 %v7506_v52  ;;  %v7585_v51 = vld [vmem:[#allocation5 + $0x1030] ss:$8 sps:$4 sm:$0xff]   ;;  %v7590_v52 = vld [vmem:[#allocation5 + $0x444] ss:$8 sps:$4 sm:$0xff]  }
 0x133   :  { %5623 = vmatprep.subr.bf16.mxu0 %v7509_v53  ;;  %v7593_v53 = vld [vmem:[#allocation5 + $0x1044] ss:$8 sps:$4 sm:$0xff]  }
 0x135   :  { %5132 = vmatpush1.bf16.msra.mxu1 %v7504_v54  ;;  %v7588_v54 = vld [vmem:[#allocation5 + $0x440] ss:$8 sps:$4 sm:$0xff]  }
 0x136   :  { %5624 = vmatpush1.bf16.msra.mxu0 %v7507_v55  ;;  %5133 = vmatprep.subr.bf16.mxu1 %v7512_v56  ;;  %v7591_v55 = vld [vmem:[#allocation5 + $0x1040] ss:$8 sps:$4 sm:$0xff]   ;;  %v7596_v56 = vld [vmem:[#allocation5 + $0x454] ss:$8 sps:$4 sm:$0xff]  }
 0x137   :  { %5625 = vmatprep.subr.bf16.mxu0 %v7515_v57  ;;  %v7599_v57 = vld [vmem:[#allocation5 + $0x1054] ss:$8 sps:$4 sm:$0xff]  }
 0x139   :  { %5134 = vmatpush1.bf16.msra.mxu1 %v7510_v58  ;;  %v7594_v58 = vld [vmem:[#allocation5 + $0x450] ss:$8 sps:$4 sm:$0xff]  }
 0x13a   :  { %5626 = vmatpush1.bf16.msra.mxu0 %v7513_v59  ;;  %5135 = vmatprep.subr.bf16.mxu1 %v7518_v60  ;;  %v7597_v59 = vld [vmem:[#allocation5 + $0x1050] ss:$8 sps:$4 sm:$0xff]   ;;  %v7602_v60 = vld [vmem:[#allocation5 + $0x464] ss:$8 sps:$4 sm:$0xff]  }
 0x13b   :  { %5627 = vmatprep.subr.bf16.mxu0 %v7521_v61  ;;  %v7605_v61 = vld [vmem:[#allocation5 + $0x1064] ss:$8 sps:$4 sm:$0xff]  }
 0x13d   :  { %5136 = vmatpush1.bf16.msra.mxu1 %v7516_v62  ;;  %v7600_v62 = vld [vmem:[#allocation5 + $0x460] ss:$8 sps:$4 sm:$0xff]  }
 0x13e   :  { %5628 = vmatpush1.bf16.msra.mxu0 %v7519_v63  ;;  %5137 = vmatprep.subr.bf16.mxu1 %v7524_v0  ;;  %v7603_v63 = vld [vmem:[#allocation5 + $0x1060] ss:$8 sps:$4 sm:$0xff]   ;;  %v7608_v0 = vld [vmem:[#allocation5 + $0x474] ss:$8 sps:$4 sm:$0xff]  }
 0x13f   :  { %5629 = vmatprep.subr.bf16.mxu0 %v7527_v1  ;;  %v7611_v1 = vld [vmem:[#allocation5 + $0x1074] ss:$8 sps:$4 sm:$0xff]  }
 0x141   :  { %5138 = vmatpush1.bf16.msra.mxu1 %v7522_v2  ;;  %v7606_v2 = vld [vmem:[#allocation5 + $0x470] ss:$8 sps:$4 sm:$0xff]  }
 0x142   :  { %5630 = vmatpush1.bf16.msra.mxu0 %v7525_v3  ;;  %5139 = vmatprep.subr.bf16.mxu1 %v7530_v4  ;;  %v7609_v3 = vld [vmem:[#allocation5 + $0x1070] ss:$8 sps:$4 sm:$0xff]   ;;  %v7614_v4 = vld [vmem:[#allocation5 + $0x484] ss:$8 sps:$4 sm:$0xff]  }
 0x143   :  { %5631 = vmatprep.subr.bf16.mxu0 %v7533_v5  ;;  %v7617_v5 = vld [vmem:[#allocation5 + $0x1084] ss:$8 sps:$4 sm:$0xff]  }
 0x145   :  { %5140 = vmatpush1.bf16.msra.mxu1 %v7528_v6  ;;  %v7612_v6 = vld [vmem:[#allocation5 + $0x480] ss:$8 sps:$4 sm:$0xff]  }
 0x146   :  { %5632 = vmatpush1.bf16.msra.mxu0 %v7531_v7  ;;  %5141 = vmatprep.subr.bf16.mxu1 %v7536_v8  ;;  %v7615_v7 = vld [vmem:[#allocation5 + $0x1080] ss:$8 sps:$4 sm:$0xff]   ;;  %v7620_v8 = vld [vmem:[#allocation5 + $0x494] ss:$8 sps:$4 sm:$0xff]  }
 0x147   :  { %5633 = vmatprep.subr.bf16.mxu0 %v7539_v9  ;;  %v7623_v9 = vld [vmem:[#allocation5 + $0x1094] ss:$8 sps:$4 sm:$0xff]  }
 0x149   :  { %5142 = vmatpush1.bf16.msra.mxu1 %v7534_v10  ;;  %v7618_v10 = vld [vmem:[#allocation5 + $0x490] ss:$8 sps:$4 sm:$0xff]  }
 0x14a   :  { %5634 = vmatpush1.bf16.msra.mxu0 %v7537_v11  ;;  %5143 = vmatprep.subr.bf16.mxu1 %v7542_v12  ;;  %v7621_v11 = vld [vmem:[#allocation5 + $0x1090] ss:$8 sps:$4 sm:$0xff]   ;;  %v7626_v12 = vld [vmem:[#allocation5 + $0x4a4] ss:$8 sps:$4 sm:$0xff]  }
 0x14b   :  { %5635 = vmatprep.subr.bf16.mxu0 %v7545_v13  ;;  %v7629_v13 = vld [vmem:[#allocation5 + $0x10a4] ss:$8 sps:$4 sm:$0xff]  }
 0x14d   :  { %5144 = vmatpush1.bf16.msra.mxu1 %v7540_v14  ;;  %v7624_v14 = vld [vmem:[#allocation5 + $0x4a0] ss:$8 sps:$4 sm:$0xff]  }
 0x14e   :  { %5636 = vmatpush1.bf16.msra.mxu0 %v7543_v15  ;;  %5145 = vmatprep.subr.bf16.mxu1 %v7548_v16  ;;  %v7627_v15 = vld [vmem:[#allocation5 + $0x10a0] ss:$8 sps:$4 sm:$0xff]   ;;  %v7632_v16 = vld [vmem:[#allocation5 + $0x4b4] ss:$8 sps:$4 sm:$0xff]  }
 0x14f   :  { %5637 = vmatprep.subr.bf16.mxu0 %v7551_v17  ;;  %v7635_v17 = vld [vmem:[#allocation5 + $0x10b4] ss:$8 sps:$4 sm:$0xff]  }
 0x151   :  { %5146 = vmatpush1.bf16.msra.mxu1 %v7546_v18  ;;  %v7630_v18 = vld [vmem:[#allocation5 + $0x4b0] ss:$8 sps:$4 sm:$0xff]  }
 0x152   :  { %5638 = vmatpush1.bf16.msra.mxu0 %v7549_v19  ;;  %5147 = vmatprep.subr.bf16.mxu1 %v7554_v20  ;;  %v7633_v19 = vld [vmem:[#allocation5 + $0x10b0] ss:$8 sps:$4 sm:$0xff]   ;;  %v7638_v20 = vld [vmem:[#allocation5 + $0x4c4] ss:$8 sps:$4 sm:$0xff]  }
 0x153   :  { %5639 = vmatprep.subr.bf16.mxu0 %v7557_v21  ;;  %v7641_v21 = vld [vmem:[#allocation5 + $0x10c4] ss:$8 sps:$4 sm:$0xff]  }
 0x155   :  { %5148 = vmatpush1.bf16.msra.mxu1 %v7552_v22  ;;  %v7636_v22 = vld [vmem:[#allocation5 + $0x4c0] ss:$8 sps:$4 sm:$0xff]  }
 0x156   :  { %5640 = vmatpush1.bf16.msra.mxu0 %v7555_v23  ;;  %5149 = vmatprep.subr.bf16.mxu1 %v7560_v24  ;;  %v7639_v23 = vld [vmem:[#allocation5 + $0x10c0] ss:$8 sps:$4 sm:$0xff]   ;;  %v7644_v24 = vld [vmem:[#allocation5 + $0x4d4] ss:$8 sps:$4 sm:$0xff]  }
 0x157   :  { %5641 = vmatprep.subr.bf16.mxu0 %v7563_v25  ;;  %v7647_v25 = vld [vmem:[#allocation5 + $0x10d4] ss:$8 sps:$4 sm:$0xff]  }
 0x159   :  { %5150 = vmatpush1.bf16.msra.mxu1 %v7558_v26  ;;  %v7642_v26 = vld [vmem:[#allocation5 + $0x4d0] ss:$8 sps:$4 sm:$0xff]  }
 0x15a   :  { %5642 = vmatpush1.bf16.msra.mxu0 %v7561_v27  ;;  %5160 = vmatprep.subr.bf16.mxu1 %v7566_v28  ;;  %v7645_v27 = vld [vmem:[#allocation5 + $0x10d0] ss:$8 sps:$4 sm:$0xff]   ;;  %v7650_v28 = vld [vmem:[#allocation5 + $0x4e4] ss:$8 sps:$4 sm:$0xff]  }
 0x15b   :  { %5652 = vmatprep.subr.bf16.mxu0 %v7569_v31  ;;  %v7651_v31 = vld [vmem:[#allocation5 + $0x10e0] ss:$8 sps:$4 sm:$0xff]  }
 0x15c   :  { %5152 = vmatmul.mubr.bf16.vlgmr.msra.gmra.mrb[0].mxu1 %v140_v34  ;;  %v7654_v34 = vld [vmem:[#allocation5 + $0x4f0] ss:$8 sps:$4 sm:$0xff]  }
 0x15d   :  { %5644 = vmatmul.mubr.bf16.vlgmr.msra.gmra.mrb[0].mxu0 %v164_v35  ;;  %5161 = vmatpush1.bf16.msra.mxu1 %v7564_v32  ;;  %v7656_v32 = vld [vmem:[#allocation5 + $0x4f4] ss:$8 sps:$4 sm:$0xff]   ;;  %v7657_v35 = vld [vmem:[#allocation5 + $0x10f0] ss:$8 sps:$4 sm:$0xff]  }
 0x15e   :  { %5653 = vmatpush1.bf16.msra.mxu0 %v7567_v33  ;;  %5162 = vmatprep.subr.bf16.mxu1 %v7572_v38  ;;  %v7659_v33 = vld [vmem:[#allocation5 + $0x10f4] ss:$8 sps:$4 sm:$0xff]  }
 0x15f   :  { %5654 = vmatprep.subr.bf16.mxu0 %v7575_v39  ;;  %5192 = vmatprep.mubr.bf16.mxu1 %v143_v40  ;;  %v92_v38 = vld [vmem:[#allocation2 + $0x40] sm:$0xff]  ;;  %v95_v40 = vld [vmem:[#allocation2 + $0x58] sm:$0xff] }
 0x160   :  { %5684 = vmatprep.mubr.bf16.mxu0 %v167_v41  ;;  %v116_v39 = vld [vmem:[#allocation2 + $0x100] sm:$0xff]  ;;  %v119_v41 = vld [vmem:[#allocation2 + $0x118] sm:$0xff] }
 0x161   :  { %5163 = vmatpush1.bf16.msra.mxu1 %v7570_v42  ;;  %v142_v42 = vpack.c.bf16 %v92_v38, %v92_v38  ;;  %v7744_v38 = vld [vmem:[#allocation5 + $0x5e0] ss:$8 sps:$4 sm:$0xff]  }
 0x162   :  { %5655 = vmatpush1.bf16.msra.mxu0 %v7573_v43  ;;  %5164 = vmatprep.subr.bf16.mxu1 %v7578_v44  ;;  %v166_v43 = vpack.c.bf16 %v116_v39, %v116_v39  ;;  %v7660_v44 = vld [vmem:[#allocation5 + $0x500] ss:$8 sps:$4 sm:$0xff]  }
 0x163   :  { %5656 = vmatprep.subr.bf16.mxu0 %v7581_v45  ;;  %v7663_v45 = vld [vmem:[#allocation5 + $0x1100] ss:$8 sps:$4 sm:$0xff]  }
 0x164   :  { %v7747_v39 = vld [vmem:[#allocation5 + $0x11e0] ss:$8 sps:$4 sm:$0xff]  }
 0x165   :  { %5165 = vmatpush1.bf16.msra.mxu1 %v7576_v46  ;;  %v7668_v46 = vld [vmem:[#allocation5 + $0x514] ss:$8 sps:$4 sm:$0xff]  }
 0x166   :  { %5657 = vmatpush1.bf16.msra.mxu0 %v7579_v47  ;;  %5166 = vmatprep.subr.bf16.mxu1 %v7584_v48  ;;  %v7671_v47 = vld [vmem:[#allocation5 + $0x1114] ss:$8 sps:$4 sm:$0xff]   ;;  %v145_v48 = vpack.c.bf16 %v95_v40, %v95_v40 }
 0x167   :  { %5658 = vmatprep.subr.bf16.mxu0 %v7587_v49  ;;  %v169_v49 = vpack.c.bf16 %v119_v41, %v119_v41  ;;  %v7752_v40 = vld [vmem:[#allocation5 + $0x5f4] ss:$8 sps:$4 sm:$0xff]  }
 0x168   :  { %v7755_v41 = vld [vmem:[#allocation5 + $0x11f4] ss:$8 sps:$4 sm:$0xff]  }
 0x169   :  { %5167 = vmatpush1.bf16.msra.mxu1 %v7582_v50  ;;  %v7666_v50 = vld [vmem:[#allocation5 + $0x510] ss:$8 sps:$4 sm:$0xff]  }
 0x16a   :  { %5659 = vmatpush1.bf16.msra.mxu0 %v7585_v51  ;;  %5168 = vmatprep.subr.bf16.mxu1 %v7590_v52  ;;  %v7669_v51 = vld [vmem:[#allocation5 + $0x1110] ss:$8 sps:$4 sm:$0xff]   ;;  %v7674_v52 = vld [vmem:[#allocation5 + $0x524] ss:$8 sps:$4 sm:$0xff]  }
 0x16b   :  { %5660 = vmatprep.subr.bf16.mxu0 %v7593_v53  ;;  %v7677_v53 = vld [vmem:[#allocation5 + $0x1124] ss:$8 sps:$4 sm:$0xff]  }
 0x16d   :  { %5169 = vmatpush1.bf16.msra.mxu1 %v7588_v54  ;;  %v7672_v54 = vld [vmem:[#allocation5 + $0x520] ss:$8 sps:$4 sm:$0xff]  }
 0x16e   :  { %5661 = vmatpush1.bf16.msra.mxu0 %v7591_v55  ;;  %5170 = vmatprep.subr.bf16.mxu1 %v7596_v56  ;;  %v7675_v55 = vld [vmem:[#allocation5 + $0x1120] ss:$8 sps:$4 sm:$0xff]   ;;  %v7680_v56 = vld [vmem:[#allocation5 + $0x534] ss:$8 sps:$4 sm:$0xff]  }
 0x16f   :  { %5662 = vmatprep.subr.bf16.mxu0 %v7599_v57  ;;  %v7683_v57 = vld [vmem:[#allocation5 + $0x1134] ss:$8 sps:$4 sm:$0xff]  }
 0x171   :  { %5171 = vmatpush1.bf16.msra.mxu1 %v7594_v58  ;;  %v7678_v58 = vld [vmem:[#allocation5 + $0x530] ss:$8 sps:$4 sm:$0xff]  }
 0x172   :  { %5663 = vmatpush1.bf16.msra.mxu0 %v7597_v59  ;;  %5172 = vmatprep.subr.bf16.mxu1 %v7602_v60  ;;  %v7681_v59 = vld [vmem:[#allocation5 + $0x1130] ss:$8 sps:$4 sm:$0xff]   ;;  %v7686_v60 = vld [vmem:[#allocation5 + $0x544] ss:$8 sps:$4 sm:$0xff]  }
 0x173   :  { %5664 = vmatprep.subr.bf16.mxu0 %v7605_v61  ;;  %v7689_v61 = vld [vmem:[#allocation5 + $0x1144] ss:$8 sps:$4 sm:$0xff]  }
 0x175   :  { %5173 = vmatpush1.bf16.msra.mxu1 %v7600_v62  ;;  %v7684_v62 = vld [vmem:[#allocation5 + $0x540] ss:$8 sps:$4 sm:$0xff]  }
 0x176   :  { %5665 = vmatpush1.bf16.msra.mxu0 %v7603_v63  ;;  %5174 = vmatprep.subr.bf16.mxu1 %v7608_v0  ;;  %v7687_v63 = vld [vmem:[#allocation5 + $0x1140] ss:$8 sps:$4 sm:$0xff]   ;;  %v7692_v0 = vld [vmem:[#allocation5 + $0x554] ss:$8 sps:$4 sm:$0xff]  }
 0x177   :  { %5666 = vmatprep.subr.bf16.mxu0 %v7611_v1  ;;  %v7695_v1 = vld [vmem:[#allocation5 + $0x1154] ss:$8 sps:$4 sm:$0xff]  }
 0x179   :  { %5175 = vmatpush1.bf16.msra.mxu1 %v7606_v2  ;;  %v7690_v2 = vld [vmem:[#allocation5 + $0x550] ss:$8 sps:$4 sm:$0xff]  }
 0x17a   :  { %5667 = vmatpush1.bf16.msra.mxu0 %v7609_v3  ;;  %5176 = vmatprep.subr.bf16.mxu1 %v7614_v4  ;;  %v7693_v3 = vld [vmem:[#allocation5 + $0x1150] ss:$8 sps:$4 sm:$0xff]   ;;  %v7698_v4 = vld [vmem:[#allocation5 + $0x564] ss:$8 sps:$4 sm:$0xff]  }
 0x17b   :  { %5668 = vmatprep.subr.bf16.mxu0 %v7617_v5  ;;  %v7701_v5 = vld [vmem:[#allocation5 + $0x1164] ss:$8 sps:$4 sm:$0xff]  }
 0x17d   :  { %5177 = vmatpush1.bf16.msra.mxu1 %v7612_v6  ;;  %v7696_v6 = vld [vmem:[#allocation5 + $0x560] ss:$8 sps:$4 sm:$0xff]  }
 0x17e   :  { %5669 = vmatpush1.bf16.msra.mxu0 %v7615_v7  ;;  %5178 = vmatprep.subr.bf16.mxu1 %v7620_v8  ;;  %v7699_v7 = vld [vmem:[#allocation5 + $0x1160] ss:$8 sps:$4 sm:$0xff]   ;;  %v7704_v8 = vld [vmem:[#allocation5 + $0x574] ss:$8 sps:$4 sm:$0xff]  }
 0x17f   :  { %5670 = vmatprep.subr.bf16.mxu0 %v7623_v9  ;;  %v7707_v9 = vld [vmem:[#allocation5 + $0x1174] ss:$8 sps:$4 sm:$0xff]  }
 0x181   :  { %5179 = vmatpush1.bf16.msra.mxu1 %v7618_v10  ;;  %v7702_v10 = vld [vmem:[#allocation5 + $0x570] ss:$8 sps:$4 sm:$0xff]  }
 0x182   :  { %5671 = vmatpush1.bf16.msra.mxu0 %v7621_v11  ;;  %5180 = vmatprep.subr.bf16.mxu1 %v7626_v12  ;;  %v7705_v11 = vld [vmem:[#allocation5 + $0x1170] ss:$8 sps:$4 sm:$0xff]   ;;  %v7710_v12 = vld [vmem:[#allocation5 + $0x584] ss:$8 sps:$4 sm:$0xff]  }
 0x183   :  { %5672 = vmatprep.subr.bf16.mxu0 %v7629_v13  ;;  %v7713_v13 = vld [vmem:[#allocation5 + $0x1184] ss:$8 sps:$4 sm:$0xff]  }
 0x185   :  { %5181 = vmatpush1.bf16.msra.mxu1 %v7624_v14  ;;  %v7708_v14 = vld [vmem:[#allocation5 + $0x580] ss:$8 sps:$4 sm:$0xff]  }
 0x186   :  { %5673 = vmatpush1.bf16.msra.mxu0 %v7627_v15  ;;  %5182 = vmatprep.subr.bf16.mxu1 %v7632_v16  ;;  %v7711_v15 = vld [vmem:[#allocation5 + $0x1180] ss:$8 sps:$4 sm:$0xff]   ;;  %v7716_v16 = vld [vmem:[#allocation5 + $0x594] ss:$8 sps:$4 sm:$0xff]  }
 0x187   :  { %5674 = vmatprep.subr.bf16.mxu0 %v7635_v17  ;;  %v7719_v17 = vld [vmem:[#allocation5 + $0x1194] ss:$8 sps:$4 sm:$0xff]  }
 0x189   :  { %5183 = vmatpush1.bf16.msra.mxu1 %v7630_v18  ;;  %v7714_v18 = vld [vmem:[#allocation5 + $0x590] ss:$8 sps:$4 sm:$0xff]  }
 0x18a   :  { %5675 = vmatpush1.bf16.msra.mxu0 %v7633_v19  ;;  %5184 = vmatprep.subr.bf16.mxu1 %v7638_v20  ;;  %v7717_v19 = vld [vmem:[#allocation5 + $0x1190] ss:$8 sps:$4 sm:$0xff]   ;;  %v7722_v20 = vld [vmem:[#allocation5 + $0x5a4] ss:$8 sps:$4 sm:$0xff]  }
 0x18b   :  { %5676 = vmatprep.subr.bf16.mxu0 %v7641_v21  ;;  %v7725_v21 = vld [vmem:[#allocation5 + $0x11a4] ss:$8 sps:$4 sm:$0xff]  }
 0x18d   :  { %5185 = vmatpush1.bf16.msra.mxu1 %v7636_v22  ;;  %v7720_v22 = vld [vmem:[#allocation5 + $0x5a0] ss:$8 sps:$4 sm:$0xff]  }
 0x18e   :  { %5677 = vmatpush1.bf16.msra.mxu0 %v7639_v23  ;;  %5186 = vmatprep.subr.bf16.mxu1 %v7644_v24  ;;  %v7723_v23 = vld [vmem:[#allocation5 + $0x11a0] ss:$8 sps:$4 sm:$0xff]   ;;  %v7728_v24 = vld [vmem:[#allocation5 + $0x5b4] ss:$8 sps:$4 sm:$0xff]  }
 0x18f   :  { %5678 = vmatprep.subr.bf16.mxu0 %v7647_v25  ;;  %v7731_v25 = vld [vmem:[#allocation5 + $0x11b4] ss:$8 sps:$4 sm:$0xff]  }
 0x191   :  { %5187 = vmatpush1.bf16.msra.mxu1 %v7642_v26  ;;  %v7726_v26 = vld [vmem:[#allocation5 + $0x5b0] ss:$8 sps:$4 sm:$0xff]  }
 0x192   :  { %5679 = vmatpush1.bf16.msra.mxu0 %v7645_v27  ;;  %5188 = vmatprep.subr.bf16.mxu1 %v7650_v28  ;;  %v7729_v27 = vld [vmem:[#allocation5 + $0x11b0] ss:$8 sps:$4 sm:$0xff]   ;;  %v7734_v28 = vld [vmem:[#allocation5 + $0x5c4] ss:$8 sps:$4 sm:$0xff]  }
 0x193   :  { %5680 = vmatprep.subr.bf16.mxu0 %v7653_v29  ;;  %v7737_v29 = vld [vmem:[#allocation5 + $0x11c4] ss:$8 sps:$4 sm:$0xff]  }
 0x195   :  { %5189 = vmatpush1.bf16.msra.mxu1 %v7648_v30  ;;  %v7732_v30 = vld [vmem:[#allocation5 + $0x5c0] ss:$8 sps:$4 sm:$0xff]  }
 0x196   :  { %5681 = vmatpush1.bf16.msra.mxu0 %v7651_v31  ;;  %5190 = vmatprep.subr.bf16.mxu1 %v7656_v32  ;;  %v7735_v31 = vld [vmem:[#allocation5 + $0x11c0] ss:$8 sps:$4 sm:$0xff]   ;;  %v7740_v32 = vld [vmem:[#allocation5 + $0x5d4] ss:$8 sps:$4 sm:$0xff]  }
 0x197   :  { %5682 = vmatprep.subr.bf16.mxu0 %v7659_v33  ;;  %v7743_v33 = vld [vmem:[#allocation5 + $0x11d4] ss:$8 sps:$4 sm:$0xff]  }
 0x199   :  { %5191 = vmatpush1.bf16.msra.mxu1 %v7654_v34  ;;  %v7738_v34 = vld [vmem:[#allocation5 + $0x5d0] ss:$8 sps:$4 sm:$0xff]  }
 0x19a   :  { %5683 = vmatpush1.bf16.msra.mxu0 %v7657_v35  ;;  %5201 = vmatprep.subr.bf16.mxu1 %v7662_v36  ;;  %v7741_v35 = vld [vmem:[#allocation5 + $0x11d0] ss:$8 sps:$4 sm:$0xff]   ;;  %v7746_v36 = vld [vmem:[#allocation5 + $0x5e4] ss:$8 sps:$4 sm:$0xff]  }
 0x19b   :  { %5693 = vmatprep.subr.bf16.mxu0 %v7665_v37  ;;  %v7749_v37 = vld [vmem:[#allocation5 + $0x11e4] ss:$8 sps:$4 sm:$0xff]  }
 0x19c   :  { %5193 = vmatmul.mubr.bf16.vlgmr.msra.gmra.mrb[0].mxu1 %v142_v42  ;;  %v7750_v42 = vld [vmem:[#allocation5 + $0x5f0] ss:$8 sps:$4 sm:$0xff]  }
 0x19d   :  { %5685 = vmatmul.mubr.bf16.vlgmr.msra.gmra.mrb[0].mxu0 %v166_v43  ;;  %5202 = vmatpush1.bf16.msra.mxu1 %v7660_v44  ;;  %v7753_v43 = vld [vmem:[#allocation5 + $0x11f0] ss:$8 sps:$4 sm:$0xff]   ;;  %v7758_v44 = vld [vmem:[#allocation5 + $0x604] ss:$8 sps:$4 sm:$0xff]  }
 0x19e   :  { %5694 = vmatpush1.bf16.msra.mxu0 %v7663_v45  ;;  %5203 = vmatprep.subr.bf16.mxu1 %v7668_v46  ;;  %v7761_v45 = vld [vmem:[#allocation5 + $0x1204] ss:$8 sps:$4 sm:$0xff]  }
 0x19f   :  { %5695 = vmatprep.subr.bf16.mxu0 %v7671_v47  ;;  %5233 = vmatprep.mubr.bf16.mxu1 %v145_v48  ;;  %v94_v46 = vld [vmem:[#allocation2 + $0x50] sm:$0xff]  ;;  %v97_v48 = vld [vmem:[#allocation2 + $0x68] sm:$0xff] }
 0x1a0   :  { %5725 = vmatprep.mubr.bf16.mxu0 %v169_v49  ;;  %v118_v47 = vld [vmem:[#allocation2 + $0x110] sm:$0xff]  ;;  %v121_v49 = vld [vmem:[#allocation2 + $0x128] sm:$0xff] }
 0x1a1   :  { %5204 = vmatpush1.bf16.msra.mxu1 %v7666_v50  ;;  %v144_v50 = vpack.c.bf16 %v94_v46, %v94_v46  ;;  %v7840_v46 = vld [vmem:[#allocation5 + $0x6e0] ss:$8 sps:$4 sm:$0xff]  }
 0x1a2   :  { %5696 = vmatpush1.bf16.msra.mxu0 %v7669_v51  ;;  %5205 = vmatprep.subr.bf16.mxu1 %v7674_v52  ;;  %v168_v51 = vpack.c.bf16 %v118_v47, %v118_v47  ;;  %v7756_v52 = vld [vmem:[#allocation5 + $0x600] ss:$8 sps:$4 sm:$0xff]  }
 0x1a3   :  { %5697 = vmatprep.subr.bf16.mxu0 %v7677_v53  ;;  %v7759_v53 = vld [vmem:[#allocation5 + $0x1200] ss:$8 sps:$4 sm:$0xff]  }
 0x1a4   :  { %v7843_v47 = vld [vmem:[#allocation5 + $0x12e0] ss:$8 sps:$4 sm:$0xff]  }
 0x1a5   :  { %5206 = vmatpush1.bf16.msra.mxu1 %v7672_v54  ;;  %v7764_v54 = vld [vmem:[#allocation5 + $0x614] ss:$8 sps:$4 sm:$0xff]  }
 0x1a6   :  { %5698 = vmatpush1.bf16.msra.mxu0 %v7675_v55  ;;  %5207 = vmatprep.subr.bf16.mxu1 %v7680_v56  ;;  %v7767_v55 = vld [vmem:[#allocation5 + $0x1214] ss:$8 sps:$4 sm:$0xff]   ;;  %v147_v56 = vpack.c.bf16 %v97_v48, %v97_v48 }
 0x1a7   :  { %5699 = vmatprep.subr.bf16.mxu0 %v7683_v57  ;;  %v171_v57 = vpack.c.bf16 %v121_v49, %v121_v49  ;;  %v7848_v48 = vld [vmem:[#allocation5 + $0x6f4] ss:$8 sps:$4 sm:$0xff]  }
 0x1a8   :  { %v7851_v49 = vld [vmem:[#allocation5 + $0x12f4] ss:$8 sps:$4 sm:$0xff]  }
 0x1a9   :  { %5208 = vmatpush1.bf16.msra.mxu1 %v7678_v58  ;;  %v7762_v58 = vld [vmem:[#allocation5 + $0x610] ss:$8 sps:$4 sm:$0xff]  }
 0x1aa   :  { %5700 = vmatpush1.bf16.msra.mxu0 %v7681_v59  ;;  %5209 = vmatprep.subr.bf16.mxu1 %v7686_v60  ;;  %v7765_v59 = vld [vmem:[#allocation5 + $0x1210] ss:$8 sps:$4 sm:$0xff]   ;;  %v7770_v60 = vld [vmem:[#allocation5 + $0x624] ss:$8 sps:$4 sm:$0xff]  }
 0x1ab   :  { %5701 = vmatprep.subr.bf16.mxu0 %v7689_v61  ;;  %v7773_v61 = vld [vmem:[#allocation5 + $0x1224] ss:$8 sps:$4 sm:$0xff]  }
 0x1ad   :  { %5210 = vmatpush1.bf16.msra.mxu1 %v7684_v62  ;;  %v7768_v62 = vld [vmem:[#allocation5 + $0x620] ss:$8 sps:$4 sm:$0xff]  }
 0x1ae   :  { %5702 = vmatpush1.bf16.msra.mxu0 %v7687_v63  ;;  %5211 = vmatprep.subr.bf16.mxu1 %v7692_v0  ;;  %v7771_v63 = vld [vmem:[#allocation5 + $0x1220] ss:$8 sps:$4 sm:$0xff]   ;;  %v7776_v0 = vld [vmem:[#allocation5 + $0x634] ss:$8 sps:$4 sm:$0xff]  }
 0x1af   :  { %5703 = vmatprep.subr.bf16.mxu0 %v7695_v1  ;;  %v7779_v1 = vld [vmem:[#allocation5 + $0x1234] ss:$8 sps:$4 sm:$0xff]  }
 0x1b1   :  { %5212 = vmatpush1.bf16.msra.mxu1 %v7690_v2  ;;  %v7774_v2 = vld [vmem:[#allocation5 + $0x630] ss:$8 sps:$4 sm:$0xff]  }
 0x1b2   :  { %5704 = vmatpush1.bf16.msra.mxu0 %v7693_v3  ;;  %5213 = vmatprep.subr.bf16.mxu1 %v7698_v4  ;;  %v7777_v3 = vld [vmem:[#allocation5 + $0x1230] ss:$8 sps:$4 sm:$0xff]   ;;  %v7782_v4 = vld [vmem:[#allocation5 + $0x644] ss:$8 sps:$4 sm:$0xff]  }
 0x1b3   :  { %5705 = vmatprep.subr.bf16.mxu0 %v7701_v5  ;;  %v7785_v5 = vld [vmem:[#allocation5 + $0x1244] ss:$8 sps:$4 sm:$0xff]  }
 0x1b5   :  { %5214 = vmatpush1.bf16.msra.mxu1 %v7696_v6  ;;  %v7780_v6 = vld [vmem:[#allocation5 + $0x640] ss:$8 sps:$4 sm:$0xff]  }
 0x1b6   :  { %5706 = vmatpush1.bf16.msra.mxu0 %v7699_v7  ;;  %5215 = vmatprep.subr.bf16.mxu1 %v7704_v8  ;;  %v7783_v7 = vld [vmem:[#allocation5 + $0x1240] ss:$8 sps:$4 sm:$0xff]   ;;  %v7788_v8 = vld [vmem:[#allocation5 + $0x654] ss:$8 sps:$4 sm:$0xff]  }
 0x1b7   :  { %5707 = vmatprep.subr.bf16.mxu0 %v7707_v9  ;;  %v7791_v9 = vld [vmem:[#allocation5 + $0x1254] ss:$8 sps:$4 sm:$0xff]  }
 0x1b9   :  { %5216 = vmatpush1.bf16.msra.mxu1 %v7702_v10  ;;  %v7786_v10 = vld [vmem:[#allocation5 + $0x650] ss:$8 sps:$4 sm:$0xff]  }
 0x1ba   :  { %5708 = vmatpush1.bf16.msra.mxu0 %v7705_v11  ;;  %5217 = vmatprep.subr.bf16.mxu1 %v7710_v12  ;;  %v7789_v11 = vld [vmem:[#allocation5 + $0x1250] ss:$8 sps:$4 sm:$0xff]   ;;  %v7794_v12 = vld [vmem:[#allocation5 + $0x664] ss:$8 sps:$4 sm:$0xff]  }
 0x1bb   :  { %5709 = vmatprep.subr.bf16.mxu0 %v7713_v13  ;;  %v7797_v13 = vld [vmem:[#allocation5 + $0x1264] ss:$8 sps:$4 sm:$0xff]  }
 0x1bd   :  { %5218 = vmatpush1.bf16.msra.mxu1 %v7708_v14  ;;  %v7792_v14 = vld [vmem:[#allocation5 + $0x660] ss:$8 sps:$4 sm:$0xff]  }
 0x1be   :  { %5710 = vmatpush1.bf16.msra.mxu0 %v7711_v15  ;;  %5219 = vmatprep.subr.bf16.mxu1 %v7716_v16  ;;  %v7795_v15 = vld [vmem:[#allocation5 + $0x1260] ss:$8 sps:$4 sm:$0xff]   ;;  %v7800_v16 = vld [vmem:[#allocation5 + $0x674] ss:$8 sps:$4 sm:$0xff]  }
 0x1bf   :  { %5711 = vmatprep.subr.bf16.mxu0 %v7719_v17  ;;  %v7803_v17 = vld [vmem:[#allocation5 + $0x1274] ss:$8 sps:$4 sm:$0xff]  }
 0x1c1   :  { %5220 = vmatpush1.bf16.msra.mxu1 %v7714_v18  ;;  %v7798_v18 = vld [vmem:[#allocation5 + $0x670] ss:$8 sps:$4 sm:$0xff]  }
 0x1c2   :  { %5712 = vmatpush1.bf16.msra.mxu0 %v7717_v19  ;;  %5221 = vmatprep.subr.bf16.mxu1 %v7722_v20  ;;  %v7801_v19 = vld [vmem:[#allocation5 + $0x1270] ss:$8 sps:$4 sm:$0xff]   ;;  %v7806_v20 = vld [vmem:[#allocation5 + $0x684] ss:$8 sps:$4 sm:$0xff]  }
 0x1c3   :  { %5713 = vmatprep.subr.bf16.mxu0 %v7725_v21  ;;  %v7809_v21 = vld [vmem:[#allocation5 + $0x1284] ss:$8 sps:$4 sm:$0xff]  }
 0x1c5   :  { %5222 = vmatpush1.bf16.msra.mxu1 %v7720_v22  ;;  %v7804_v22 = vld [vmem:[#allocation5 + $0x680] ss:$8 sps:$4 sm:$0xff]  }
 0x1c6   :  { %5714 = vmatpush1.bf16.msra.mxu0 %v7723_v23  ;;  %5223 = vmatprep.subr.bf16.mxu1 %v7728_v24  ;;  %v7807_v23 = vld [vmem:[#allocation5 + $0x1280] ss:$8 sps:$4 sm:$0xff]   ;;  %v7812_v24 = vld [vmem:[#allocation5 + $0x694] ss:$8 sps:$4 sm:$0xff]  }
 0x1c7   :  { %5715 = vmatprep.subr.bf16.mxu0 %v7731_v25  ;;  %v7815_v25 = vld [vmem:[#allocation5 + $0x1294] ss:$8 sps:$4 sm:$0xff]  }
 0x1c9   :  { %5224 = vmatpush1.bf16.msra.mxu1 %v7726_v26  ;;  %v7810_v26 = vld [vmem:[#allocation5 + $0x690] ss:$8 sps:$4 sm:$0xff]  }
 0x1ca   :  { %5716 = vmatpush1.bf16.msra.mxu0 %v7729_v27  ;;  %5225 = vmatprep.subr.bf16.mxu1 %v7734_v28  ;;  %v7813_v27 = vld [vmem:[#allocation5 + $0x1290] ss:$8 sps:$4 sm:$0xff]   ;;  %v7818_v28 = vld [vmem:[#allocation5 + $0x6a4] ss:$8 sps:$4 sm:$0xff]  }
 0x1cb   :  { %5717 = vmatprep.subr.bf16.mxu0 %v7737_v29  ;;  %v7821_v29 = vld [vmem:[#allocation5 + $0x12a4] ss:$8 sps:$4 sm:$0xff]  }
 0x1cd   :  { %5226 = vmatpush1.bf16.msra.mxu1 %v7732_v30  ;;  %v7816_v30 = vld [vmem:[#allocation5 + $0x6a0] ss:$8 sps:$4 sm:$0xff]  }
 0x1ce   :  { %5718 = vmatpush1.bf16.msra.mxu0 %v7735_v31  ;;  %5227 = vmatprep.subr.bf16.mxu1 %v7740_v32  ;;  %v7819_v31 = vld [vmem:[#allocation5 + $0x12a0] ss:$8 sps:$4 sm:$0xff]   ;;  %v7824_v32 = vld [vmem:[#allocation5 + $0x6b4] ss:$8 sps:$4 sm:$0xff]  }
 0x1cf   :  { %5719 = vmatprep.subr.bf16.mxu0 %v7743_v33  ;;  %v7827_v33 = vld [vmem:[#allocation5 + $0x12b4] ss:$8 sps:$4 sm:$0xff]  }
 0x1d1   :  { %5228 = vmatpush1.bf16.msra.mxu1 %v7738_v34  ;;  %v7822_v34 = vld [vmem:[#allocation5 + $0x6b0] ss:$8 sps:$4 sm:$0xff]  }
 0x1d2   :  { %5720 = vmatpush1.bf16.msra.mxu0 %v7741_v35  ;;  %5229 = vmatprep.subr.bf16.mxu1 %v7746_v36  ;;  %v7825_v35 = vld [vmem:[#allocation5 + $0x12b0] ss:$8 sps:$4 sm:$0xff]   ;;  %v7830_v36 = vld [vmem:[#allocation5 + $0x6c4] ss:$8 sps:$4 sm:$0xff]  }
 0x1d3   :  { %5721 = vmatprep.subr.bf16.mxu0 %v7749_v37  ;;  %v7833_v37 = vld [vmem:[#allocation5 + $0x12c4] ss:$8 sps:$4 sm:$0xff]  }
 0x1d5   :  { %5230 = vmatpush1.bf16.msra.mxu1 %v7744_v38  ;;  %v7828_v38 = vld [vmem:[#allocation5 + $0x6c0] ss:$8 sps:$4 sm:$0xff]  }
 0x1d6   :  { %5722 = vmatpush1.bf16.msra.mxu0 %v7747_v39  ;;  %5231 = vmatprep.subr.bf16.mxu1 %v7752_v40  ;;  %v7831_v39 = vld [vmem:[#allocation5 + $0x12c0] ss:$8 sps:$4 sm:$0xff]   ;;  %v7836_v40 = vld [vmem:[#allocation5 + $0x6d4] ss:$8 sps:$4 sm:$0xff]  }
 0x1d7   :  { %5723 = vmatprep.subr.bf16.mxu0 %v7755_v41  ;;  %v7839_v41 = vld [vmem:[#allocation5 + $0x12d4] ss:$8 sps:$4 sm:$0xff]  }
 0x1d9   :  { %5232 = vmatpush1.bf16.msra.mxu1 %v7750_v42  ;;  %v7834_v42 = vld [vmem:[#allocation5 + $0x6d0] ss:$8 sps:$4 sm:$0xff]  }
 0x1da   :  { %5724 = vmatpush1.bf16.msra.mxu0 %v7753_v43  ;;  %5242 = vmatprep.subr.bf16.mxu1 %v7758_v44  ;;  %v7837_v43 = vld [vmem:[#allocation5 + $0x12d0] ss:$8 sps:$4 sm:$0xff]   ;;  %v7842_v44 = vld [vmem:[#allocation5 + $0x6e4] ss:$8 sps:$4 sm:$0xff]  }
 0x1db   :  { %5734 = vmatprep.subr.bf16.mxu0 %v7761_v45  ;;  %v7845_v45 = vld [vmem:[#allocation5 + $0x12e4] ss:$8 sps:$4 sm:$0xff]  }
 0x1dc   :  { %5234 = vmatmul.mubr.bf16.vlgmr.msra.gmra.mrb[0].mxu1 %v144_v50  ;;  %v7846_v50 = vld [vmem:[#allocation5 + $0x6f0] ss:$8 sps:$4 sm:$0xff]  }
 0x1dd   :  { %5726 = vmatmul.mubr.bf16.vlgmr.msra.gmra.mrb[0].mxu0 %v168_v51  ;;  %5243 = vmatpush1.bf16.msra.mxu1 %v7756_v52  ;;  %v7849_v51 = vld [vmem:[#allocation5 + $0x12f0] ss:$8 sps:$4 sm:$0xff]   ;;  %v7854_v52 = vld [vmem:[#allocation5 + $0x704] ss:$8 sps:$4 sm:$0xff]  }
 0x1de   :  { %5735 = vmatpush1.bf16.msra.mxu0 %v7759_v53  ;;  %5244 = vmatprep.subr.bf16.mxu1 %v7764_v54  ;;  %v7857_v53 = vld [vmem:[#allocation5 + $0x1304] ss:$8 sps:$4 sm:$0xff]   ;;  %v96_v54 = vld [vmem:[#allocation2 + $0x60] sm:$0xff] }
 0x1df   :  { %5736 = vmatprep.subr.bf16.mxu0 %v7767_v55  ;;  %5274 = vmatprep.mubr.bf16.mxu1 %v147_v56  ;;  %v120_v55 = vld [vmem:[#allocation2 + $0x120] sm:$0xff]  ;;  %v99_v56 = vld [vmem:[#allocation2 + $0x78] sm:$0xff] }
 0x1e0   :  { %5766 = vmatprep.mubr.bf16.mxu0 %v171_v57  ;;  %v123_v57 = vld [vmem:[#allocation2 + $0x138] sm:$0xff] }
 0x1e1   :  { %5245 = vmatpush1.bf16.msra.mxu1 %v7762_v58  ;;  %v146_v58 = vpack.c.bf16 %v96_v54, %v96_v54  ;;  %v7936_v54 = vld [vmem:[#allocation5 + $0x7e0] ss:$8 sps:$4 sm:$0xff]  }
 0x1e2   :  { %5737 = vmatpush1.bf16.msra.mxu0 %v7765_v59  ;;  %5246 = vmatprep.subr.bf16.mxu1 %v7770_v60  ;;  %v170_v59 = vpack.c.bf16 %v120_v55, %v120_v55  ;;  %v7852_v60 = vld [vmem:[#allocation5 + $0x700] ss:$8 sps:$4 sm:$0xff]  }
 0x1e3   :  { %5738 = vmatprep.subr.bf16.mxu0 %v7773_v61  ;;  %v7855_v61 = vld [vmem:[#allocation5 + $0x1300] ss:$8 sps:$4 sm:$0xff]  }
 0x1e4   :  { %v7939_v55 = vld [vmem:[#allocation5 + $0x13e0] ss:$8 sps:$4 sm:$0xff]  }
 0x1e5   :  { %5247 = vmatpush1.bf16.msra.mxu1 %v7768_v62  ;;  %v7860_v62 = vld [vmem:[#allocation5 + $0x714] ss:$8 sps:$4 sm:$0xff]  }
 0x1e6   :  { %5739 = vmatpush1.bf16.msra.mxu0 %v7771_v63  ;;  %5248 = vmatprep.subr.bf16.mxu1 %v7776_v0  ;;  %v7863_v63 = vld [vmem:[#allocation5 + $0x1314] ss:$8 sps:$4 sm:$0xff]   ;;  %v149_v0 = vpack.c.bf16 %v99_v56, %v99_v56 }
 0x1e7   :  { %5740 = vmatprep.subr.bf16.mxu0 %v7779_v1  ;;  %v173_v1 = vpack.c.bf16 %v123_v57, %v123_v57  ;;  %v7944_v56 = vld [vmem:[#allocation5 + $0x7f4] ss:$8 sps:$4 sm:$0xff]  }
 0x1e8   :  { %v7947_v57 = vld [vmem:[#allocation5 + $0x13f4] ss:$8 sps:$4 sm:$0xff]  }
 0x1e9   :  { %5249 = vmatpush1.bf16.msra.mxu1 %v7774_v2  ;;  %v7858_v2 = vld [vmem:[#allocation5 + $0x710] ss:$8 sps:$4 sm:$0xff]  }
 0x1ea   :  { %5741 = vmatpush1.bf16.msra.mxu0 %v7777_v3  ;;  %5250 = vmatprep.subr.bf16.mxu1 %v7782_v4  ;;  %v7861_v3 = vld [vmem:[#allocation5 + $0x1310] ss:$8 sps:$4 sm:$0xff]   ;;  %v7866_v4 = vld [vmem:[#allocation5 + $0x724] ss:$8 sps:$4 sm:$0xff]  }
 0x1eb   :  { %5742 = vmatprep.subr.bf16.mxu0 %v7785_v5  ;;  %v7869_v5 = vld [vmem:[#allocation5 + $0x1324] ss:$8 sps:$4 sm:$0xff]  }
 0x1ed   :  { %5251 = vmatpush1.bf16.msra.mxu1 %v7780_v6  ;;  %v7864_v6 = vld [vmem:[#allocation5 + $0x720] ss:$8 sps:$4 sm:$0xff]  }
 0x1ee   :  { %5743 = vmatpush1.bf16.msra.mxu0 %v7783_v7  ;;  %5252 = vmatprep.subr.bf16.mxu1 %v7788_v8  ;;  %v7867_v7 = vld [vmem:[#allocation5 + $0x1320] ss:$8 sps:$4 sm:$0xff]   ;;  %v7872_v8 = vld [vmem:[#allocation5 + $0x734] ss:$8 sps:$4 sm:$0xff]  }
 0x1ef   :  { %5744 = vmatprep.subr.bf16.mxu0 %v7791_v9  ;;  %v7875_v9 = vld [vmem:[#allocation5 + $0x1334] ss:$8 sps:$4 sm:$0xff]  }
 0x1f1   :  { %5253 = vmatpush1.bf16.msra.mxu1 %v7786_v10  ;;  %v7870_v10 = vld [vmem:[#allocation5 + $0x730] ss:$8 sps:$4 sm:$0xff]  }
 0x1f2   :  { %5745 = vmatpush1.bf16.msra.mxu0 %v7789_v11  ;;  %5254 = vmatprep.subr.bf16.mxu1 %v7794_v12  ;;  %v7873_v11 = vld [vmem:[#allocation5 + $0x1330] ss:$8 sps:$4 sm:$0xff]   ;;  %v7878_v12 = vld [vmem:[#allocation5 + $0x744] ss:$8 sps:$4 sm:$0xff]  }
 0x1f3   :  { %5746 = vmatprep.subr.bf16.mxu0 %v7797_v13  ;;  %v7881_v13 = vld [vmem:[#allocation5 + $0x1344] ss:$8 sps:$4 sm:$0xff]  }
 0x1f5   :  { %5255 = vmatpush1.bf16.msra.mxu1 %v7792_v14  ;;  %v7876_v14 = vld [vmem:[#allocation5 + $0x740] ss:$8 sps:$4 sm:$0xff]  }
 0x1f6   :  { %5747 = vmatpush1.bf16.msra.mxu0 %v7795_v15  ;;  %5256 = vmatprep.subr.bf16.mxu1 %v7800_v16  ;;  %v7879_v15 = vld [vmem:[#allocation5 + $0x1340] ss:$8 sps:$4 sm:$0xff]   ;;  %v7884_v16 = vld [vmem:[#allocation5 + $0x754] ss:$8 sps:$4 sm:$0xff]  }
 0x1f7   :  { %5748 = vmatprep.subr.bf16.mxu0 %v7803_v17  ;;  %v7887_v17 = vld [vmem:[#allocation5 + $0x1354] ss:$8 sps:$4 sm:$0xff]  }
 0x1f9   :  { %5257 = vmatpush1.bf16.msra.mxu1 %v7798_v18  ;;  %v7882_v18 = vld [vmem:[#allocation5 + $0x750] ss:$8 sps:$4 sm:$0xff]  }
 0x1fa   :  { %5749 = vmatpush1.bf16.msra.mxu0 %v7801_v19  ;;  %5258 = vmatprep.subr.bf16.mxu1 %v7806_v20  ;;  %v7885_v19 = vld [vmem:[#allocation5 + $0x1350] ss:$8 sps:$4 sm:$0xff]   ;;  %v7890_v20 = vld [vmem:[#allocation5 + $0x764] ss:$8 sps:$4 sm:$0xff]  }
 0x1fb   :  { %5750 = vmatprep.subr.bf16.mxu0 %v7809_v21  ;;  %v7893_v21 = vld [vmem:[#allocation5 + $0x1364] ss:$8 sps:$4 sm:$0xff]  }
 0x1fd   :  { %5259 = vmatpush1.bf16.msra.mxu1 %v7804_v22  ;;  %v7888_v22 = vld [vmem:[#allocation5 + $0x760] ss:$8 sps:$4 sm:$0xff]  }
 0x1fe   :  { %5751 = vmatpush1.bf16.msra.mxu0 %v7807_v23  ;;  %5260 = vmatprep.subr.bf16.mxu1 %v7812_v24  ;;  %v7891_v23 = vld [vmem:[#allocation5 + $0x1360] ss:$8 sps:$4 sm:$0xff]   ;;  %v7896_v24 = vld [vmem:[#allocation5 + $0x774] ss:$8 sps:$4 sm:$0xff]  }
 0x1ff   :  { %5752 = vmatprep.subr.bf16.mxu0 %v7815_v25  ;;  %v7899_v25 = vld [vmem:[#allocation5 + $0x1374] ss:$8 sps:$4 sm:$0xff]  }
 0x201   :  { %5261 = vmatpush1.bf16.msra.mxu1 %v7810_v26  ;;  %v7894_v26 = vld [vmem:[#allocation5 + $0x770] ss:$8 sps:$4 sm:$0xff]  }
 0x202   :  { %5753 = vmatpush1.bf16.msra.mxu0 %v7813_v27  ;;  %5262 = vmatprep.subr.bf16.mxu1 %v7818_v28  ;;  %v7897_v27 = vld [vmem:[#allocation5 + $0x1370] ss:$8 sps:$4 sm:$0xff]   ;;  %v7902_v28 = vld [vmem:[#allocation5 + $0x784] ss:$8 sps:$4 sm:$0xff]  }
 0x203   :  { %5754 = vmatprep.subr.bf16.mxu0 %v7821_v29  ;;  %v7905_v29 = vld [vmem:[#allocation5 + $0x1384] ss:$8 sps:$4 sm:$0xff]  }
 0x205   :  { %5263 = vmatpush1.bf16.msra.mxu1 %v7816_v30  ;;  %v7900_v30 = vld [vmem:[#allocation5 + $0x780] ss:$8 sps:$4 sm:$0xff]  }
 0x206   :  { %5755 = vmatpush1.bf16.msra.mxu0 %v7819_v31  ;;  %5264 = vmatprep.subr.bf16.mxu1 %v7824_v32  ;;  %v7903_v31 = vld [vmem:[#allocation5 + $0x1380] ss:$8 sps:$4 sm:$0xff]   ;;  %v7908_v32 = vld [vmem:[#allocation5 + $0x794] ss:$8 sps:$4 sm:$0xff]  }
 0x207   :  { %5756 = vmatprep.subr.bf16.mxu0 %v7827_v33  ;;  %v7911_v33 = vld [vmem:[#allocation5 + $0x1394] ss:$8 sps:$4 sm:$0xff]  }
 0x209   :  { %5265 = vmatpush1.bf16.msra.mxu1 %v7822_v34  ;;  %v7906_v34 = vld [vmem:[#allocation5 + $0x790] ss:$8 sps:$4 sm:$0xff]  }
 0x20a   :  { %5757 = vmatpush1.bf16.msra.mxu0 %v7825_v35  ;;  %5266 = vmatprep.subr.bf16.mxu1 %v7830_v36  ;;  %v7909_v35 = vld [vmem:[#allocation5 + $0x1390] ss:$8 sps:$4 sm:$0xff]   ;;  %v7914_v36 = vld [vmem:[#allocation5 + $0x7a4] ss:$8 sps:$4 sm:$0xff]  }
 0x20b   :  { %5758 = vmatprep.subr.bf16.mxu0 %v7833_v37  ;;  %v7917_v37 = vld [vmem:[#allocation5 + $0x13a4] ss:$8 sps:$4 sm:$0xff]  }
 0x20d   :  { %5267 = vmatpush1.bf16.msra.mxu1 %v7828_v38  ;;  %v7912_v38 = vld [vmem:[#allocation5 + $0x7a0] ss:$8 sps:$4 sm:$0xff]  }
 0x20e   :  { %5759 = vmatpush1.bf16.msra.mxu0 %v7831_v39  ;;  %5268 = vmatprep.subr.bf16.mxu1 %v7836_v40  ;;  %v7915_v39 = vld [vmem:[#allocation5 + $0x13a0] ss:$8 sps:$4 sm:$0xff]   ;;  %v7920_v40 = vld [vmem:[#allocation5 + $0x7b4] ss:$8 sps:$4 sm:$0xff]  }
 0x20f   :  { %5760 = vmatprep.subr.bf16.mxu0 %v7839_v41  ;;  %v7923_v41 = vld [vmem:[#allocation5 + $0x13b4] ss:$8 sps:$4 sm:$0xff]  }
 0x211   :  { %5269 = vmatpush1.bf16.msra.mxu1 %v7834_v42  ;;  %v7918_v42 = vld [vmem:[#allocation5 + $0x7b0] ss:$8 sps:$4 sm:$0xff]  }
 0x212   :  { %5761 = vmatpush1.bf16.msra.mxu0 %v7837_v43  ;;  %5270 = vmatprep.subr.bf16.mxu1 %v7842_v44  ;;  %v7921_v43 = vld [vmem:[#allocation5 + $0x13b0] ss:$8 sps:$4 sm:$0xff]   ;;  %v7926_v44 = vld [vmem:[#allocation5 + $0x7c4] ss:$8 sps:$4 sm:$0xff]  }
 0x213   :  { %5762 = vmatprep.subr.bf16.mxu0 %v7845_v45  ;;  %v7929_v45 = vld [vmem:[#allocation5 + $0x13c4] ss:$8 sps:$4 sm:$0xff]  }
 0x215   :  { %5271 = vmatpush1.bf16.msra.mxu1 %v7840_v46  ;;  %v7924_v46 = vld [vmem:[#allocation5 + $0x7c0] ss:$8 sps:$4 sm:$0xff]  }
 0x216   :  { %5763 = vmatpush1.bf16.msra.mxu0 %v7843_v47  ;;  %5272 = vmatprep.subr.bf16.mxu1 %v7848_v48  ;;  %v7927_v47 = vld [vmem:[#allocation5 + $0x13c0] ss:$8 sps:$4 sm:$0xff]   ;;  %v7932_v48 = vld [vmem:[#allocation5 + $0x7d4] ss:$8 sps:$4 sm:$0xff]  }
 0x217   :  { %5764 = vmatprep.subr.bf16.mxu0 %v7851_v49  ;;  %v7935_v49 = vld [vmem:[#allocation5 + $0x13d4] ss:$8 sps:$4 sm:$0xff]  }
 0x219   :  { %5273 = vmatpush1.bf16.msra.mxu1 %v7846_v50  ;;  %v7930_v50 = vld [vmem:[#allocation5 + $0x7d0] ss:$8 sps:$4 sm:$0xff]  }
 0x21a   :  { %5765 = vmatpush1.bf16.msra.mxu0 %v7849_v51  ;;  %5283 = vmatprep.subr.bf16.mxu1 %v7854_v52  ;;  %v7933_v51 = vld [vmem:[#allocation5 + $0x13d0] ss:$8 sps:$4 sm:$0xff]   ;;  %v7938_v52 = vld [vmem:[#allocation5 + $0x7e4] ss:$8 sps:$4 sm:$0xff]  }
 0x21b   :  { %5775 = vmatprep.subr.bf16.mxu0 %v7857_v53  ;;  %v7941_v53 = vld [vmem:[#allocation5 + $0x13e4] ss:$8 sps:$4 sm:$0xff]  }
 0x21c   :  { %5275 = vmatmul.mubr.bf16.vlgmr.msra.gmra.mrb[0].mxu1 %v146_v58  ;;  %v7942_v58 = vld [vmem:[#allocation5 + $0x7f0] ss:$8 sps:$4 sm:$0xff]  }
 0x21d   :  { %5767 = vmatmul.mubr.bf16.vlgmr.msra.gmra.mrb[0].mxu0 %v170_v59  ;;  %5284 = vmatpush1.bf16.msra.mxu1 %v7852_v60  ;;  %v7945_v59 = vld [vmem:[#allocation5 + $0x13f0] ss:$8 sps:$4 sm:$0xff]   ;;  %v98_v60 = vld [vmem:[#allocation2 + $0x70] sm:$0xff] }
 0x21e   :  { %5776 = vmatpush1.bf16.msra.mxu0 %v7855_v61  ;;  %5285 = vmatprep.subr.bf16.mxu1 %v7860_v62  ;;  %v122_v61 = vld [vmem:[#allocation2 + $0x130] sm:$0xff] }
 0x21f   :  { %5777 = vmatprep.subr.bf16.mxu0 %v7863_v63  ;;  %5315 = vmatprep.mubr.bf16.mxu1 %v149_v0  ;;  %v7950_v62 = vld [vmem:[#allocation5 + $0x804] ss:$8 sps:$4 sm:$0xff]   ;;  %v148_v0 = vpack.c.bf16 %v98_v60, %v98_v60 }
 0x220   :  { %5807 = vmatprep.mubr.bf16.mxu0 %v173_v1  ;;  %v7953_v63 = vld [vmem:[#allocation5 + $0x1404] ss:$8 sps:$4 sm:$0xff]   ;;  %v172_v1 = vpack.c.bf16 %v122_v61, %v122_v61 }
 0x221   :  { %5286 = vmatpush1.bf16.msra.mxu1 %v7858_v2  ;;  %v101_v2 = vld [vmem:[#allocation2 + $0x88] sm:$0xff]  ;;  %v8034_v60 = vld [vmem:[#allocation5 + $0x8e4] ss:$8 sps:$4 sm:$0xff]  }
 0x222   :  { %5778 = vmatpush1.bf16.msra.mxu0 %v7861_v3  ;;  %5287 = vmatprep.subr.bf16.mxu1 %v7866_v4  ;;  %v125_v3 = vld [vmem:[#allocation2 + $0x148] sm:$0xff]  ;;  %v7948_v4 = vld [vmem:[#allocation5 + $0x800] ss:$8 sps:$4 sm:$0xff]   ;;  %v8037_v61 = vld [vmem:[#allocation5 + $0x14e4] ss:$8 sps:$4 sm:$0xff]  }
 0x223   :  { %5779 = vmatprep.subr.bf16.mxu0 %v7869_v5  ;;  %v7951_v5 = vld [vmem:[#allocation5 + $0x1400] ss:$8 sps:$4 sm:$0xff]  }
 0x225   :  { %5288 = vmatpush1.bf16.msra.mxu1 %v7864_v6  ;;  %v7956_v6 = vld [vmem:[#allocation5 + $0x814] ss:$8 sps:$4 sm:$0xff]  }
 0x226   :  { %5780 = vmatpush1.bf16.msra.mxu0 %v7867_v7  ;;  %5289 = vmatprep.subr.bf16.mxu1 %v7872_v8  ;;  %v7959_v7 = vld [vmem:[#allocation5 + $0x1414] ss:$8 sps:$4 sm:$0xff]   ;;  %v151_v8 = vpack.c.bf16 %v101_v2, %v101_v2  ;;  %v8038_v2 = vld [vmem:[#allocation5 + $0x8f0] ss:$8 sps:$4 sm:$0xff]  }
 0x227   :  { %5781 = vmatprep.subr.bf16.mxu0 %v7875_v9  ;;  %v175_v9 = vpack.c.bf16 %v125_v3, %v125_v3  ;;  %v8041_v3 = vld [vmem:[#allocation5 + $0x14f0] ss:$8 sps:$4 sm:$0xff]  }
 0x229   :  { %5290 = vmatpush1.bf16.msra.mxu1 %v7870_v10  ;;  %v7954_v10 = vld [vmem:[#allocation5 + $0x810] ss:$8 sps:$4 sm:$0xff]  }
 0x22a   :  { %5782 = vmatpush1.bf16.msra.mxu0 %v7873_v11  ;;  %5291 = vmatprep.subr.bf16.mxu1 %v7878_v12  ;;  %v7957_v11 = vld [vmem:[#allocation5 + $0x1410] ss:$8 sps:$4 sm:$0xff]   ;;  %v7962_v12 = vld [vmem:[#allocation5 + $0x824] ss:$8 sps:$4 sm:$0xff]  }
 0x22b   :  { %5783 = vmatprep.subr.bf16.mxu0 %v7881_v13  ;;  %v7965_v13 = vld [vmem:[#allocation5 + $0x1424] ss:$8 sps:$4 sm:$0xff]  }
 0x22d   :  { %5292 = vmatpush1.bf16.msra.mxu1 %v7876_v14  ;;  %v7960_v14 = vld [vmem:[#allocation5 + $0x820] ss:$8 sps:$4 sm:$0xff]  }
 0x22e   :  { %5784 = vmatpush1.bf16.msra.mxu0 %v7879_v15  ;;  %5293 = vmatprep.subr.bf16.mxu1 %v7884_v16  ;;  %v7963_v15 = vld [vmem:[#allocation5 + $0x1420] ss:$8 sps:$4 sm:$0xff]   ;;  %v7968_v16 = vld [vmem:[#allocation5 + $0x834] ss:$8 sps:$4 sm:$0xff]  }
 0x22f   :  { %5785 = vmatprep.subr.bf16.mxu0 %v7887_v17  ;;  %v7971_v17 = vld [vmem:[#allocation5 + $0x1434] ss:$8 sps:$4 sm:$0xff]  }
 0x231   :  { %5294 = vmatpush1.bf16.msra.mxu1 %v7882_v18  ;;  %v7966_v18 = vld [vmem:[#allocation5 + $0x830] ss:$8 sps:$4 sm:$0xff]  }
 0x232   :  { %5786 = vmatpush1.bf16.msra.mxu0 %v7885_v19  ;;  %5295 = vmatprep.subr.bf16.mxu1 %v7890_v20  ;;  %v7969_v19 = vld [vmem:[#allocation5 + $0x1430] ss:$8 sps:$4 sm:$0xff]   ;;  %v7974_v20 = vld [vmem:[#allocation5 + $0x844] ss:$8 sps:$4 sm:$0xff]  }
 0x233   :  { %5787 = vmatprep.subr.bf16.mxu0 %v7893_v21  ;;  %v7977_v21 = vld [vmem:[#allocation5 + $0x1444] ss:$8 sps:$4 sm:$0xff]  }
 0x235   :  { %5296 = vmatpush1.bf16.msra.mxu1 %v7888_v22  ;;  %v7972_v22 = vld [vmem:[#allocation5 + $0x840] ss:$8 sps:$4 sm:$0xff]  }
 0x236   :  { %5788 = vmatpush1.bf16.msra.mxu0 %v7891_v23  ;;  %5297 = vmatprep.subr.bf16.mxu1 %v7896_v24  ;;  %v7975_v23 = vld [vmem:[#allocation5 + $0x1440] ss:$8 sps:$4 sm:$0xff]   ;;  %v7980_v24 = vld [vmem:[#allocation5 + $0x854] ss:$8 sps:$4 sm:$0xff]  }
 0x237   :  { %5789 = vmatprep.subr.bf16.mxu0 %v7899_v25  ;;  %v7983_v25 = vld [vmem:[#allocation5 + $0x1454] ss:$8 sps:$4 sm:$0xff]  }
 0x239   :  { %5298 = vmatpush1.bf16.msra.mxu1 %v7894_v26  ;;  %v7978_v26 = vld [vmem:[#allocation5 + $0x850] ss:$8 sps:$4 sm:$0xff]  }
 0x23a   :  { %5790 = vmatpush1.bf16.msra.mxu0 %v7897_v27  ;;  %5299 = vmatprep.subr.bf16.mxu1 %v7902_v28  ;;  %v7981_v27 = vld [vmem:[#allocation5 + $0x1450] ss:$8 sps:$4 sm:$0xff]   ;;  %v7986_v28 = vld [vmem:[#allocation5 + $0x864] ss:$8 sps:$4 sm:$0xff]  }
 0x23b   :  { %5791 = vmatprep.subr.bf16.mxu0 %v7905_v29  ;;  %v7989_v29 = vld [vmem:[#allocation5 + $0x1464] ss:$8 sps:$4 sm:$0xff]  }
 0x23d   :  { %5300 = vmatpush1.bf16.msra.mxu1 %v7900_v30  ;;  %v7984_v30 = vld [vmem:[#allocation5 + $0x860] ss:$8 sps:$4 sm:$0xff]  }
 0x23e   :  { %5792 = vmatpush1.bf16.msra.mxu0 %v7903_v31  ;;  %5301 = vmatprep.subr.bf16.mxu1 %v7908_v32  ;;  %v7987_v31 = vld [vmem:[#allocation5 + $0x1460] ss:$8 sps:$4 sm:$0xff]   ;;  %v7992_v32 = vld [vmem:[#allocation5 + $0x874] ss:$8 sps:$4 sm:$0xff]  }
 0x23f   :  { %5793 = vmatprep.subr.bf16.mxu0 %v7911_v33  ;;  %v7995_v33 = vld [vmem:[#allocation5 + $0x1474] ss:$8 sps:$4 sm:$0xff]  }
 0x241   :  { %5302 = vmatpush1.bf16.msra.mxu1 %v7906_v34  ;;  %v7990_v34 = vld [vmem:[#allocation5 + $0x870] ss:$8 sps:$4 sm:$0xff]  }
 0x242   :  { %5794 = vmatpush1.bf16.msra.mxu0 %v7909_v35  ;;  %5303 = vmatprep.subr.bf16.mxu1 %v7914_v36  ;;  %v7993_v35 = vld [vmem:[#allocation5 + $0x1470] ss:$8 sps:$4 sm:$0xff]   ;;  %v7998_v36 = vld [vmem:[#allocation5 + $0x884] ss:$8 sps:$4 sm:$0xff]  }
 0x243   :  { %5795 = vmatprep.subr.bf16.mxu0 %v7917_v37  ;;  %v8001_v37 = vld [vmem:[#allocation5 + $0x1484] ss:$8 sps:$4 sm:$0xff]  }
 0x245   :  { %5304 = vmatpush1.bf16.msra.mxu1 %v7912_v38  ;;  %v7996_v38 = vld [vmem:[#allocation5 + $0x880] ss:$8 sps:$4 sm:$0xff]  }
 0x246   :  { %5796 = vmatpush1.bf16.msra.mxu0 %v7915_v39  ;;  %5305 = vmatprep.subr.bf16.mxu1 %v7920_v40  ;;  %v7999_v39 = vld [vmem:[#allocation5 + $0x1480] ss:$8 sps:$4 sm:$0xff]   ;;  %v8004_v40 = vld [vmem:[#allocation5 + $0x894] ss:$8 sps:$4 sm:$0xff]  }
 0x247   :  { %5797 = vmatprep.subr.bf16.mxu0 %v7923_v41  ;;  %v8007_v41 = vld [vmem:[#allocation5 + $0x1494] ss:$8 sps:$4 sm:$0xff]  }
 0x249   :  { %5306 = vmatpush1.bf16.msra.mxu1 %v7918_v42  ;;  %v8002_v42 = vld [vmem:[#allocation5 + $0x890] ss:$8 sps:$4 sm:$0xff]  }
 0x24a   :  { %5798 = vmatpush1.bf16.msra.mxu0 %v7921_v43  ;;  %5307 = vmatprep.subr.bf16.mxu1 %v7926_v44  ;;  %v8005_v43 = vld [vmem:[#allocation5 + $0x1490] ss:$8 sps:$4 sm:$0xff]   ;;  %v8010_v44 = vld [vmem:[#allocation5 + $0x8a4] ss:$8 sps:$4 sm:$0xff]  }
 0x24b   :  { %5799 = vmatprep.subr.bf16.mxu0 %v7929_v45  ;;  %v8013_v45 = vld [vmem:[#allocation5 + $0x14a4] ss:$8 sps:$4 sm:$0xff]  }
 0x24d   :  { %5308 = vmatpush1.bf16.msra.mxu1 %v7924_v46  ;;  %v8008_v46 = vld [vmem:[#allocation5 + $0x8a0] ss:$8 sps:$4 sm:$0xff]  }
 0x24e   :  { %5800 = vmatpush1.bf16.msra.mxu0 %v7927_v47  ;;  %5309 = vmatprep.subr.bf16.mxu1 %v7932_v48  ;;  %v8011_v47 = vld [vmem:[#allocation5 + $0x14a0] ss:$8 sps:$4 sm:$0xff]   ;;  %v8016_v48 = vld [vmem:[#allocation5 + $0x8b4] ss:$8 sps:$4 sm:$0xff]  }
 0x24f   :  { %5801 = vmatprep.subr.bf16.mxu0 %v7935_v49  ;;  %v8019_v49 = vld [vmem:[#allocation5 + $0x14b4] ss:$8 sps:$4 sm:$0xff]  }
 0x251   :  { %5310 = vmatpush1.bf16.msra.mxu1 %v7930_v50  ;;  %v8014_v50 = vld [vmem:[#allocation5 + $0x8b0] ss:$8 sps:$4 sm:$0xff]  }
 0x252   :  { %5802 = vmatpush1.bf16.msra.mxu0 %v7933_v51  ;;  %5311 = vmatprep.subr.bf16.mxu1 %v7938_v52  ;;  %v8017_v51 = vld [vmem:[#allocation5 + $0x14b0] ss:$8 sps:$4 sm:$0xff]   ;;  %v8022_v52 = vld [vmem:[#allocation5 + $0x8c4] ss:$8 sps:$4 sm:$0xff]  }
 0x253   :  { %5803 = vmatprep.subr.bf16.mxu0 %v7941_v53  ;;  %v8025_v53 = vld [vmem:[#allocation5 + $0x14c4] ss:$8 sps:$4 sm:$0xff]  }
 0x255   :  { %5312 = vmatpush1.bf16.msra.mxu1 %v7936_v54  ;;  %v8020_v54 = vld [vmem:[#allocation5 + $0x8c0] ss:$8 sps:$4 sm:$0xff]  }
 0x256   :  { %5804 = vmatpush1.bf16.msra.mxu0 %v7939_v55  ;;  %5313 = vmatprep.subr.bf16.mxu1 %v7944_v56  ;;  %v8023_v55 = vld [vmem:[#allocation5 + $0x14c0] ss:$8 sps:$4 sm:$0xff]   ;;  %v8028_v56 = vld [vmem:[#allocation5 + $0x8d4] ss:$8 sps:$4 sm:$0xff]  }
 0x257   :  { %5805 = vmatprep.subr.bf16.mxu0 %v7947_v57  ;;  %v8031_v57 = vld [vmem:[#allocation5 + $0x14d4] ss:$8 sps:$4 sm:$0xff]  }
 0x259   :  { %5314 = vmatpush1.bf16.msra.mxu1 %v7942_v58  ;;  %v8026_v58 = vld [vmem:[#allocation5 + $0x8d0] ss:$8 sps:$4 sm:$0xff]  }
 0x25a   :  { %5806 = vmatpush1.bf16.msra.mxu0 %v7945_v59  ;;  %5324 = vmatprep.subr.bf16.mxu1 %v7950_v62  ;;  %v8029_v59 = vld [vmem:[#allocation5 + $0x14d0] ss:$8 sps:$4 sm:$0xff]   ;;  %v8032_v62 = vld [vmem:[#allocation5 + $0x8e0] ss:$8 sps:$4 sm:$0xff]  }
 0x25b   :  { %5816 = vmatprep.subr.bf16.mxu0 %v7953_v63  ;;  %v8035_v63 = vld [vmem:[#allocation5 + $0x14e0] ss:$8 sps:$4 sm:$0xff]  }
 0x25c   :  { %5316 = vmatmul.mubr.bf16.vlgmr.msra.gmra.mrb[0].mxu1 %v148_v0  ;;  %v8040_v0 = vld [vmem:[#allocation5 + $0x8f4] ss:$8 sps:$4 sm:$0xff]  }
 0x25d   :  { %5808 = vmatmul.mubr.bf16.vlgmr.msra.gmra.mrb[0].mxu0 %v172_v1  ;;  %5325 = vmatpush1.bf16.msra.mxu1 %v7948_v4  ;;  %v8043_v1 = vld [vmem:[#allocation5 + $0x14f4] ss:$8 sps:$4 sm:$0xff]  }
 0x25e   :  { %5817 = vmatpush1.bf16.msra.mxu0 %v7951_v5  ;;  %5326 = vmatprep.subr.bf16.mxu1 %v7956_v6  ;;  %v100_v4 = vld [vmem:[#allocation2 + $0x80] sm:$0xff]  ;;  %v8046_v6 = vld [vmem:[#allocation5 + $0x904] ss:$8 sps:$4 sm:$0xff]  }
 0x25f   :  { %5818 = vmatprep.subr.bf16.mxu0 %v7959_v7  ;;  %5356 = vmatprep.mubr.bf16.mxu1 %v151_v8  ;;  %v124_v5 = vld [vmem:[#allocation2 + $0x140] sm:$0xff]  ;;  %v8049_v7 = vld [vmem:[#allocation5 + $0x1504] ss:$8 sps:$4 sm:$0xff]   ;;  %v150_v8 = vpack.c.bf16 %v100_v4, %v100_v4 }
 0x260   :  { %5848 = vmatprep.mubr.bf16.mxu0 %v175_v9  ;;  %v174_v9 = vpack.c.bf16 %v124_v5, %v124_v5  ;;  %v8130_v4 = vld [vmem:[#allocation5 + $0x9e4] ss:$8 sps:$4 sm:$0xff]  }
 0x261   :  { %5327 = vmatpush1.bf16.msra.mxu1 %v7954_v10  ;;  %v103_v10 = vld [vmem:[#allocation2 + $0x98] sm:$0xff] }
 0x262   :  { %5819 = vmatpush1.bf16.msra.mxu0 %v7957_v11  ;;  %5328 = vmatprep.subr.bf16.mxu1 %v7962_v12  ;;  %v127_v11 = vld [vmem:[#allocation2 + $0x158] sm:$0xff] }
 0x263   :  { %5820 = vmatprep.subr.bf16.mxu0 %v7965_v13  ;;  %v8044_v12 = vld [vmem:[#allocation5 + $0x900] ss:$8 sps:$4 sm:$0xff]   ;;  %v8133_v5 = vld [vmem:[#allocation5 + $0x15e4] ss:$8 sps:$4 sm:$0xff]  }
 0x264   :  { %v8047_v13 = vld [vmem:[#allocation5 + $0x1500] ss:$8 sps:$4 sm:$0xff]  }
 0x265   :  { %5329 = vmatpush1.bf16.msra.mxu1 %v7960_v14  ;;  %v8052_v14 = vld [vmem:[#allocation5 + $0x914] ss:$8 sps:$4 sm:$0xff]  }
 0x266   :  { %5821 = vmatpush1.bf16.msra.mxu0 %v7963_v15  ;;  %5330 = vmatprep.subr.bf16.mxu1 %v7968_v16  ;;  %v8055_v15 = vld [vmem:[#allocation5 + $0x1514] ss:$8 sps:$4 sm:$0xff]   ;;  %v153_v16 = vpack.c.bf16 %v103_v10, %v103_v10  ;;  %v8134_v10 = vld [vmem:[#allocation5 + $0x9f0] ss:$8 sps:$4 sm:$0xff]  }
 0x267   :  { %5822 = vmatprep.subr.bf16.mxu0 %v7971_v17  ;;  %v177_v17 = vpack.c.bf16 %v127_v11, %v127_v11  ;;  %v8137_v11 = vld [vmem:[#allocation5 + $0x15f0] ss:$8 sps:$4 sm:$0xff]  }
 0x269   :  { %5331 = vmatpush1.bf16.msra.mxu1 %v7966_v18  ;;  %v8050_v18 = vld [vmem:[#allocation5 + $0x910] ss:$8 sps:$4 sm:$0xff]  }
 0x26a   :  { %5823 = vmatpush1.bf16.msra.mxu0 %v7969_v19  ;;  %5332 = vmatprep.subr.bf16.mxu1 %v7974_v20  ;;  %v8053_v19 = vld [vmem:[#allocation5 + $0x1510] ss:$8 sps:$4 sm:$0xff]   ;;  %v8058_v20 = vld [vmem:[#allocation5 + $0x924] ss:$8 sps:$4 sm:$0xff]  }
 0x26b   :  { %5824 = vmatprep.subr.bf16.mxu0 %v7977_v21  ;;  %v8061_v21 = vld [vmem:[#allocation5 + $0x1524] ss:$8 sps:$4 sm:$0xff]  }
 0x26d   :  { %5333 = vmatpush1.bf16.msra.mxu1 %v7972_v22  ;;  %v8056_v22 = vld [vmem:[#allocation5 + $0x920] ss:$8 sps:$4 sm:$0xff]  }
 0x26e   :  { %5825 = vmatpush1.bf16.msra.mxu0 %v7975_v23  ;;  %5334 = vmatprep.subr.bf16.mxu1 %v7980_v24  ;;  %v8059_v23 = vld [vmem:[#allocation5 + $0x1520] ss:$8 sps:$4 sm:$0xff]   ;;  %v8064_v24 = vld [vmem:[#allocation5 + $0x934] ss:$8 sps:$4 sm:$0xff]  }
 0x26f   :  { %5826 = vmatprep.subr.bf16.mxu0 %v7983_v25  ;;  %v8067_v25 = vld [vmem:[#allocation5 + $0x1534] ss:$8 sps:$4 sm:$0xff]  }
 0x271   :  { %5335 = vmatpush1.bf16.msra.mxu1 %v7978_v26  ;;  %v8062_v26 = vld [vmem:[#allocation5 + $0x930] ss:$8 sps:$4 sm:$0xff]  }
 0x272   :  { %5827 = vmatpush1.bf16.msra.mxu0 %v7981_v27  ;;  %5336 = vmatprep.subr.bf16.mxu1 %v7986_v28  ;;  %v8065_v27 = vld [vmem:[#allocation5 + $0x1530] ss:$8 sps:$4 sm:$0xff]   ;;  %v8070_v28 = vld [vmem:[#allocation5 + $0x944] ss:$8 sps:$4 sm:$0xff]  }
 0x273   :  { %5828 = vmatprep.subr.bf16.mxu0 %v7989_v29  ;;  %v8073_v29 = vld [vmem:[#allocation5 + $0x1544] ss:$8 sps:$4 sm:$0xff]  }
 0x275   :  { %5337 = vmatpush1.bf16.msra.mxu1 %v7984_v30  ;;  %v8068_v30 = vld [vmem:[#allocation5 + $0x940] ss:$8 sps:$4 sm:$0xff]  }
 0x276   :  { %5829 = vmatpush1.bf16.msra.mxu0 %v7987_v31  ;;  %5338 = vmatprep.subr.bf16.mxu1 %v7992_v32  ;;  %v8071_v31 = vld [vmem:[#allocation5 + $0x1540] ss:$8 sps:$4 sm:$0xff]   ;;  %v8076_v32 = vld [vmem:[#allocation5 + $0x954] ss:$8 sps:$4 sm:$0xff]  }
 0x277   :  { %5830 = vmatprep.subr.bf16.mxu0 %v7995_v33  ;;  %v8079_v33 = vld [vmem:[#allocation5 + $0x1554] ss:$8 sps:$4 sm:$0xff]  }
 0x279   :  { %5339 = vmatpush1.bf16.msra.mxu1 %v7990_v34  ;;  %v8074_v34 = vld [vmem:[#allocation5 + $0x950] ss:$8 sps:$4 sm:$0xff]  }
 0x27a   :  { %5831 = vmatpush1.bf16.msra.mxu0 %v7993_v35  ;;  %5340 = vmatprep.subr.bf16.mxu1 %v7998_v36  ;;  %v8077_v35 = vld [vmem:[#allocation5 + $0x1550] ss:$8 sps:$4 sm:$0xff]   ;;  %v8082_v36 = vld [vmem:[#allocation5 + $0x964] ss:$8 sps:$4 sm:$0xff]  }
 0x27b   :  { %5832 = vmatprep.subr.bf16.mxu0 %v8001_v37  ;;  %v8085_v37 = vld [vmem:[#allocation5 + $0x1564] ss:$8 sps:$4 sm:$0xff]  }
 0x27d   :  { %5341 = vmatpush1.bf16.msra.mxu1 %v7996_v38  ;;  %v8080_v38 = vld [vmem:[#allocation5 + $0x960] ss:$8 sps:$4 sm:$0xff]  }
 0x27e   :  { %5833 = vmatpush1.bf16.msra.mxu0 %v7999_v39  ;;  %5342 = vmatprep.subr.bf16.mxu1 %v8004_v40  ;;  %v8083_v39 = vld [vmem:[#allocation5 + $0x1560] ss:$8 sps:$4 sm:$0xff]   ;;  %v8088_v40 = vld [vmem:[#allocation5 + $0x974] ss:$8 sps:$4 sm:$0xff]  }
 0x27f   :  { %5834 = vmatprep.subr.bf16.mxu0 %v8007_v41  ;;  %v8091_v41 = vld [vmem:[#allocation5 + $0x1574] ss:$8 sps:$4 sm:$0xff]  }
 0x281   :  { %5343 = vmatpush1.bf16.msra.mxu1 %v8002_v42  ;;  %v8086_v42 = vld [vmem:[#allocation5 + $0x970] ss:$8 sps:$4 sm:$0xff]  }
 0x282   :  { %5835 = vmatpush1.bf16.msra.mxu0 %v8005_v43  ;;  %5344 = vmatprep.subr.bf16.mxu1 %v8010_v44  ;;  %v8089_v43 = vld [vmem:[#allocation5 + $0x1570] ss:$8 sps:$4 sm:$0xff]   ;;  %v8094_v44 = vld [vmem:[#allocation5 + $0x984] ss:$8 sps:$4 sm:$0xff]  }
 0x283   :  { %5836 = vmatprep.subr.bf16.mxu0 %v8013_v45  ;;  %v8097_v45 = vld [vmem:[#allocation5 + $0x1584] ss:$8 sps:$4 sm:$0xff]  }
 0x285   :  { %5345 = vmatpush1.bf16.msra.mxu1 %v8008_v46  ;;  %v8092_v46 = vld [vmem:[#allocation5 + $0x980] ss:$8 sps:$4 sm:$0xff]  }
 0x286   :  { %5837 = vmatpush1.bf16.msra.mxu0 %v8011_v47  ;;  %5346 = vmatprep.subr.bf16.mxu1 %v8016_v48  ;;  %v8095_v47 = vld [vmem:[#allocation5 + $0x1580] ss:$8 sps:$4 sm:$0xff]   ;;  %v8100_v48 = vld [vmem:[#allocation5 + $0x994] ss:$8 sps:$4 sm:$0xff]  }
 0x287   :  { %5838 = vmatprep.subr.bf16.mxu0 %v8019_v49  ;;  %v8103_v49 = vld [vmem:[#allocation5 + $0x1594] ss:$8 sps:$4 sm:$0xff]  }
 0x289   :  { %5347 = vmatpush1.bf16.msra.mxu1 %v8014_v50  ;;  %v8098_v50 = vld [vmem:[#allocation5 + $0x990] ss:$8 sps:$4 sm:$0xff]  }
 0x28a   :  { %5839 = vmatpush1.bf16.msra.mxu0 %v8017_v51  ;;  %5348 = vmatprep.subr.bf16.mxu1 %v8022_v52  ;;  %v8101_v51 = vld [vmem:[#allocation5 + $0x1590] ss:$8 sps:$4 sm:$0xff]   ;;  %v8106_v52 = vld [vmem:[#allocation5 + $0x9a4] ss:$8 sps:$4 sm:$0xff]  }
 0x28b   :  { %5840 = vmatprep.subr.bf16.mxu0 %v8025_v53  ;;  %v8109_v53 = vld [vmem:[#allocation5 + $0x15a4] ss:$8 sps:$4 sm:$0xff]  }
 0x28d   :  { %5349 = vmatpush1.bf16.msra.mxu1 %v8020_v54  ;;  %v8104_v54 = vld [vmem:[#allocation5 + $0x9a0] ss:$8 sps:$4 sm:$0xff]  }
 0x28e   :  { %5841 = vmatpush1.bf16.msra.mxu0 %v8023_v55  ;;  %5350 = vmatprep.subr.bf16.mxu1 %v8028_v56  ;;  %v8107_v55 = vld [vmem:[#allocation5 + $0x15a0] ss:$8 sps:$4 sm:$0xff]   ;;  %v8112_v56 = vld [vmem:[#allocation5 + $0x9b4] ss:$8 sps:$4 sm:$0xff]  }
 0x28f   :  { %5842 = vmatprep.subr.bf16.mxu0 %v8031_v57  ;;  %v8115_v57 = vld [vmem:[#allocation5 + $0x15b4] ss:$8 sps:$4 sm:$0xff]  }
 0x291   :  { %5351 = vmatpush1.bf16.msra.mxu1 %v8026_v58  ;;  %v8110_v58 = vld [vmem:[#allocation5 + $0x9b0] ss:$8 sps:$4 sm:$0xff]  }
 0x292   :  { %5843 = vmatpush1.bf16.msra.mxu0 %v8029_v59  ;;  %5352 = vmatprep.subr.bf16.mxu1 %v8034_v60  ;;  %v8113_v59 = vld [vmem:[#allocation5 + $0x15b0] ss:$8 sps:$4 sm:$0xff]   ;;  %v8118_v60 = vld [vmem:[#allocation5 + $0x9c4] ss:$8 sps:$4 sm:$0xff]  }
 0x293   :  { %5844 = vmatprep.subr.bf16.mxu0 %v8037_v61  ;;  %v8121_v61 = vld [vmem:[#allocation5 + $0x15c4] ss:$8 sps:$4 sm:$0xff]  }
 0x295   :  { %5353 = vmatpush1.bf16.msra.mxu1 %v8032_v62  ;;  %v8116_v62 = vld [vmem:[#allocation5 + $0x9c0] ss:$8 sps:$4 sm:$0xff]  }
 0x296   :  { %5845 = vmatpush1.bf16.msra.mxu0 %v8035_v63  ;;  %5354 = vmatprep.subr.bf16.mxu1 %v8040_v0  ;;  %v8119_v63 = vld [vmem:[#allocation5 + $0x15c0] ss:$8 sps:$4 sm:$0xff]   ;;  %v8124_v0 = vld [vmem:[#allocation5 + $0x9d4] ss:$8 sps:$4 sm:$0xff]  }
 0x297   :  { %5846 = vmatprep.subr.bf16.mxu0 %v8043_v1  ;;  %v8127_v1 = vld [vmem:[#allocation5 + $0x15d4] ss:$8 sps:$4 sm:$0xff]  }
 0x299   :  { %5355 = vmatpush1.bf16.msra.mxu1 %v8038_v2  ;;  %v8122_v2 = vld [vmem:[#allocation5 + $0x9d0] ss:$8 sps:$4 sm:$0xff]  }
 0x29a   :  { %5847 = vmatpush1.bf16.msra.mxu0 %v8041_v3  ;;  %5365 = vmatprep.subr.bf16.mxu1 %v8046_v6  ;;  %v8125_v3 = vld [vmem:[#allocation5 + $0x15d0] ss:$8 sps:$4 sm:$0xff]   ;;  %v8128_v6 = vld [vmem:[#allocation5 + $0x9e0] ss:$8 sps:$4 sm:$0xff]  }
 0x29b   :  { %5857 = vmatprep.subr.bf16.mxu0 %v8049_v7  ;;  %v8131_v7 = vld [vmem:[#allocation5 + $0x15e0] ss:$8 sps:$4 sm:$0xff]  }
 0x29c   :  { %5357 = vmatmul.mubr.bf16.vlgmr.msra.gmra.mrb[0].mxu1 %v150_v8  ;;  %v8136_v8 = vld [vmem:[#allocation5 + $0x9f4] ss:$8 sps:$4 sm:$0xff]  }
 0x29d   :  { %5849 = vmatmul.mubr.bf16.vlgmr.msra.gmra.mrb[0].mxu0 %v174_v9  ;;  %5366 = vmatpush1.bf16.msra.mxu1 %v8044_v12  ;;  %v8139_v9 = vld [vmem:[#allocation5 + $0x15f4] ss:$8 sps:$4 sm:$0xff]   ;;  %v102_v12 = vld [vmem:[#allocation2 + $0x90] sm:$0xff] }
 0x29e   :  { %5858 = vmatpush1.bf16.msra.mxu0 %v8047_v13  ;;  %5367 = vmatprep.subr.bf16.mxu1 %v8052_v14  ;;  %v126_v13 = vld [vmem:[#allocation2 + $0x150] sm:$0xff] }
 0x29f   :  { %5859 = vmatprep.subr.bf16.mxu0 %v8055_v15  ;;  %5397 = vmatprep.mubr.bf16.mxu1 %v153_v16  ;;  %v8142_v14 = vld [vmem:[#allocation5 + $0xa04] ss:$8 sps:$4 sm:$0xff]   ;;  %v152_v16 = vpack.c.bf16 %v102_v12, %v102_v12 }
 0x2a0   :  { %5889 = vmatprep.mubr.bf16.mxu0 %v177_v17  ;;  %v8145_v15 = vld [vmem:[#allocation5 + $0x1604] ss:$8 sps:$4 sm:$0xff]   ;;  %v176_v17 = vpack.c.bf16 %v126_v13, %v126_v13 }
 0x2a1   :  { %5368 = vmatpush1.bf16.msra.mxu1 %v8050_v18  ;;  %v105_v18 = vld [vmem:[#allocation2 + $0xa8] sm:$0xff]  ;;  %v8226_v12 = vld [vmem:[#allocation5 + $0xae4] ss:$8 sps:$4 sm:$0xff]  }
 0x2a2   :  { %5860 = vmatpush1.bf16.msra.mxu0 %v8053_v19  ;;  %5369 = vmatprep.subr.bf16.mxu1 %v8058_v20  ;;  %v129_v19 = vld [vmem:[#allocation2 + $0x168] sm:$0xff]  ;;  %v8140_v20 = vld [vmem:[#allocation5 + $0xa00] ss:$8 sps:$4 sm:$0xff]   ;;  %v8229_v13 = vld [vmem:[#allocation5 + $0x16e4] ss:$8 sps:$4 sm:$0xff]  }
 0x2a3   :  { %5861 = vmatprep.subr.bf16.mxu0 %v8061_v21  ;;  %v8143_v21 = vld [vmem:[#allocation5 + $0x1600] ss:$8 sps:$4 sm:$0xff]  }
 0x2a5   :  { %5370 = vmatpush1.bf16.msra.mxu1 %v8056_v22  ;;  %v8148_v22 = vld [vmem:[#allocation5 + $0xa14] ss:$8 sps:$4 sm:$0xff]  }
 0x2a6   :  { %5862 = vmatpush1.bf16.msra.mxu0 %v8059_v23  ;;  %5371 = vmatprep.subr.bf16.mxu1 %v8064_v24  ;;  %v8151_v23 = vld [vmem:[#allocation5 + $0x1614] ss:$8 sps:$4 sm:$0xff]   ;;  %v155_v24 = vpack.c.bf16 %v105_v18, %v105_v18  ;;  %v8230_v18 = vld [vmem:[#allocation5 + $0xaf0] ss:$8 sps:$4 sm:$0xff]  }
 0x2a7   :  { %5863 = vmatprep.subr.bf16.mxu0 %v8067_v25  ;;  %v179_v25 = vpack.c.bf16 %v129_v19, %v129_v19  ;;  %v8233_v19 = vld [vmem:[#allocation5 + $0x16f0] ss:$8 sps:$4 sm:$0xff]  }
 0x2a9   :  { %5372 = vmatpush1.bf16.msra.mxu1 %v8062_v26  ;;  %v8146_v26 = vld [vmem:[#allocation5 + $0xa10] ss:$8 sps:$4 sm:$0xff]  }
 0x2aa   :  { %5864 = vmatpush1.bf16.msra.mxu0 %v8065_v27  ;;  %5373 = vmatprep.subr.bf16.mxu1 %v8070_v28  ;;  %v8149_v27 = vld [vmem:[#allocation5 + $0x1610] ss:$8 sps:$4 sm:$0xff]   ;;  %v8154_v28 = vld [vmem:[#allocation5 + $0xa24] ss:$8 sps:$4 sm:$0xff]  }
 0x2ab   :  { %5865 = vmatprep.subr.bf16.mxu0 %v8073_v29  ;;  %v8157_v29 = vld [vmem:[#allocation5 + $0x1624] ss:$8 sps:$4 sm:$0xff]  }
 0x2ad   :  { %5374 = vmatpush1.bf16.msra.mxu1 %v8068_v30  ;;  %v8152_v30 = vld [vmem:[#allocation5 + $0xa20] ss:$8 sps:$4 sm:$0xff]  }
 0x2ae   :  { %5866 = vmatpush1.bf16.msra.mxu0 %v8071_v31  ;;  %5375 = vmatprep.subr.bf16.mxu1 %v8076_v32  ;;  %v8155_v31 = vld [vmem:[#allocation5 + $0x1620] ss:$8 sps:$4 sm:$0xff]   ;;  %v8160_v32 = vld [vmem:[#allocation5 + $0xa34] ss:$8 sps:$4 sm:$0xff]  }
 0x2af   :  { %5867 = vmatprep.subr.bf16.mxu0 %v8079_v33  ;;  %v8163_v33 = vld [vmem:[#allocation5 + $0x1634] ss:$8 sps:$4 sm:$0xff]  }
 0x2b1   :  { %5376 = vmatpush1.bf16.msra.mxu1 %v8074_v34  ;;  %v8158_v34 = vld [vmem:[#allocation5 + $0xa30] ss:$8 sps:$4 sm:$0xff]  }
 0x2b2   :  { %5868 = vmatpush1.bf16.msra.mxu0 %v8077_v35  ;;  %5377 = vmatprep.subr.bf16.mxu1 %v8082_v36  ;;  %v8161_v35 = vld [vmem:[#allocation5 + $0x1630] ss:$8 sps:$4 sm:$0xff]   ;;  %v8166_v36 = vld [vmem:[#allocation5 + $0xa44] ss:$8 sps:$4 sm:$0xff]  }
 0x2b3   :  { %5869 = vmatprep.subr.bf16.mxu0 %v8085_v37  ;;  %v8169_v37 = vld [vmem:[#allocation5 + $0x1644] ss:$8 sps:$4 sm:$0xff]  }
 0x2b5   :  { %5378 = vmatpush1.bf16.msra.mxu1 %v8080_v38  ;;  %v8164_v38 = vld [vmem:[#allocation5 + $0xa40] ss:$8 sps:$4 sm:$0xff]  }
 0x2b6   :  { %5870 = vmatpush1.bf16.msra.mxu0 %v8083_v39  ;;  %5379 = vmatprep.subr.bf16.mxu1 %v8088_v40  ;;  %v8167_v39 = vld [vmem:[#allocation5 + $0x1640] ss:$8 sps:$4 sm:$0xff]   ;;  %v8172_v40 = vld [vmem:[#allocation5 + $0xa54] ss:$8 sps:$4 sm:$0xff]  }
 0x2b7   :  { %5871 = vmatprep.subr.bf16.mxu0 %v8091_v41  ;;  %v8175_v41 = vld [vmem:[#allocation5 + $0x1654] ss:$8 sps:$4 sm:$0xff]  }
 0x2b9   :  { %5380 = vmatpush1.bf16.msra.mxu1 %v8086_v42  ;;  %v8170_v42 = vld [vmem:[#allocation5 + $0xa50] ss:$8 sps:$4 sm:$0xff]  }
 0x2ba   :  { %5872 = vmatpush1.bf16.msra.mxu0 %v8089_v43  ;;  %5381 = vmatprep.subr.bf16.mxu1 %v8094_v44  ;;  %v8173_v43 = vld [vmem:[#allocation5 + $0x1650] ss:$8 sps:$4 sm:$0xff]   ;;  %v8178_v44 = vld [vmem:[#allocation5 + $0xa64] ss:$8 sps:$4 sm:$0xff]  }
 0x2bb   :  { %5873 = vmatprep.subr.bf16.mxu0 %v8097_v45  ;;  %v8181_v45 = vld [vmem:[#allocation5 + $0x1664] ss:$8 sps:$4 sm:$0xff]  }
 0x2bd   :  { %5382 = vmatpush1.bf16.msra.mxu1 %v8092_v46  ;;  %v8176_v46 = vld [vmem:[#allocation5 + $0xa60] ss:$8 sps:$4 sm:$0xff]  }
 0x2be   :  { %5874 = vmatpush1.bf16.msra.mxu0 %v8095_v47  ;;  %5383 = vmatprep.subr.bf16.mxu1 %v8100_v48  ;;  %v8179_v47 = vld [vmem:[#allocation5 + $0x1660] ss:$8 sps:$4 sm:$0xff]   ;;  %v8184_v48 = vld [vmem:[#allocation5 + $0xa74] ss:$8 sps:$4 sm:$0xff]  }
 0x2bf   :  { %5875 = vmatprep.subr.bf16.mxu0 %v8103_v49  ;;  %v8187_v49 = vld [vmem:[#allocation5 + $0x1674] ss:$8 sps:$4 sm:$0xff]  }
 0x2c1   :  { %5384 = vmatpush1.bf16.msra.mxu1 %v8098_v50  ;;  %v8182_v50 = vld [vmem:[#allocation5 + $0xa70] ss:$8 sps:$4 sm:$0xff]  }
 0x2c2   :  { %5876 = vmatpush1.bf16.msra.mxu0 %v8101_v51  ;;  %5385 = vmatprep.subr.bf16.mxu1 %v8106_v52  ;;  %v8185_v51 = vld [vmem:[#allocation5 + $0x1670] ss:$8 sps:$4 sm:$0xff]   ;;  %v8190_v52 = vld [vmem:[#allocation5 + $0xa84] ss:$8 sps:$4 sm:$0xff]  }
 0x2c3   :  { %5877 = vmatprep.subr.bf16.mxu0 %v8109_v53  ;;  %v8193_v53 = vld [vmem:[#allocation5 + $0x1684] ss:$8 sps:$4 sm:$0xff]  }
 0x2c5   :  { %5386 = vmatpush1.bf16.msra.mxu1 %v8104_v54  ;;  %v8188_v54 = vld [vmem:[#allocation5 + $0xa80] ss:$8 sps:$4 sm:$0xff]  }
 0x2c6   :  { %5878 = vmatpush1.bf16.msra.mxu0 %v8107_v55  ;;  %5387 = vmatprep.subr.bf16.mxu1 %v8112_v56  ;;  %v8191_v55 = vld [vmem:[#allocation5 + $0x1680] ss:$8 sps:$4 sm:$0xff]   ;;  %v8196_v56 = vld [vmem:[#allocation5 + $0xa94] ss:$8 sps:$4 sm:$0xff]  }
 0x2c7   :  { %5879 = vmatprep.subr.bf16.mxu0 %v8115_v57  ;;  %v8199_v57 = vld [vmem:[#allocation5 + $0x1694] ss:$8 sps:$4 sm:$0xff]  }
 0x2c9   :  { %5388 = vmatpush1.bf16.msra.mxu1 %v8110_v58  ;;  %v8194_v58 = vld [vmem:[#allocation5 + $0xa90] ss:$8 sps:$4 sm:$0xff]  }
 0x2ca   :  { %5880 = vmatpush1.bf16.msra.mxu0 %v8113_v59  ;;  %5389 = vmatprep.subr.bf16.mxu1 %v8118_v60  ;;  %v8197_v59 = vld [vmem:[#allocation5 + $0x1690] ss:$8 sps:$4 sm:$0xff]   ;;  %v8202_v60 = vld [vmem:[#allocation5 + $0xaa4] ss:$8 sps:$4 sm:$0xff]  }
 0x2cb   :  { %5881 = vmatprep.subr.bf16.mxu0 %v8121_v61  ;;  %v8205_v61 = vld [vmem:[#allocation5 + $0x16a4] ss:$8 sps:$4 sm:$0xff]  }
 0x2cd   :  { %5390 = vmatpush1.bf16.msra.mxu1 %v8116_v62  ;;  %v8200_v62 = vld [vmem:[#allocation5 + $0xaa0] ss:$8 sps:$4 sm:$0xff]  }
 0x2ce   :  { %5882 = vmatpush1.bf16.msra.mxu0 %v8119_v63  ;;  %5391 = vmatprep.subr.bf16.mxu1 %v8124_v0  ;;  %v8203_v63 = vld [vmem:[#allocation5 + $0x16a0] ss:$8 sps:$4 sm:$0xff]   ;;  %v8208_v0 = vld [vmem:[#allocation5 + $0xab4] ss:$8 sps:$4 sm:$0xff]  }
 0x2cf   :  { %5883 = vmatprep.subr.bf16.mxu0 %v8127_v1  ;;  %v8211_v1 = vld [vmem:[#allocation5 + $0x16b4] ss:$8 sps:$4 sm:$0xff]  }
 0x2d1   :  { %5392 = vmatpush1.bf16.msra.mxu1 %v8122_v2  ;;  %v8206_v2 = vld [vmem:[#allocation5 + $0xab0] ss:$8 sps:$4 sm:$0xff]  }
 0x2d2   :  { %5884 = vmatpush1.bf16.msra.mxu0 %v8125_v3  ;;  %5393 = vmatprep.subr.bf16.mxu1 %v8130_v4  ;;  %v8209_v3 = vld [vmem:[#allocation5 + $0x16b0] ss:$8 sps:$4 sm:$0xff]   ;;  %v8214_v4 = vld [vmem:[#allocation5 + $0xac4] ss:$8 sps:$4 sm:$0xff]  }
 0x2d3   :  { %5885 = vmatprep.subr.bf16.mxu0 %v8133_v5  ;;  %v8217_v5 = vld [vmem:[#allocation5 + $0x16c4] ss:$8 sps:$4 sm:$0xff]  }
 0x2d5   :  { %5394 = vmatpush1.bf16.msra.mxu1 %v8128_v6  ;;  %v8212_v6 = vld [vmem:[#allocation5 + $0xac0] ss:$8 sps:$4 sm:$0xff]  }
 0x2d6   :  { %5886 = vmatpush1.bf16.msra.mxu0 %v8131_v7  ;;  %5395 = vmatprep.subr.bf16.mxu1 %v8136_v8  ;;  %v8215_v7 = vld [vmem:[#allocation5 + $0x16c0] ss:$8 sps:$4 sm:$0xff]   ;;  %v8220_v8 = vld [vmem:[#allocation5 + $0xad4] ss:$8 sps:$4 sm:$0xff]  }
 0x2d7   :  { %5887 = vmatprep.subr.bf16.mxu0 %v8139_v9  ;;  %v8223_v9 = vld [vmem:[#allocation5 + $0x16d4] ss:$8 sps:$4 sm:$0xff]  }
 0x2d9   :  { %5396 = vmatpush1.bf16.msra.mxu1 %v8134_v10  ;;  %v8218_v10 = vld [vmem:[#allocation5 + $0xad0] ss:$8 sps:$4 sm:$0xff]  }
 0x2da   :  { %5888 = vmatpush1.bf16.msra.mxu0 %v8137_v11  ;;  %5406 = vmatprep.subr.bf16.mxu1 %v8142_v14  ;;  %v8221_v11 = vld [vmem:[#allocation5 + $0x16d0] ss:$8 sps:$4 sm:$0xff]   ;;  %v8224_v14 = vld [vmem:[#allocation5 + $0xae0] ss:$8 sps:$4 sm:$0xff]  }
 0x2db   :  { %5898 = vmatprep.subr.bf16.mxu0 %v8145_v15  ;;  %v8227_v15 = vld [vmem:[#allocation5 + $0x16e0] ss:$8 sps:$4 sm:$0xff]  }
 0x2dc   :  { %5398 = vmatmul.mubr.bf16.vlgmr.msra.gmra.mrb[0].mxu1 %v152_v16  ;;  %v8232_v16 = vld [vmem:[#allocation5 + $0xaf4] ss:$8 sps:$4 sm:$0xff]  }
 0x2dd   :  { %5890 = vmatmul.mubr.bf16.vlgmr.msra.gmra.mrb[0].mxu0 %v176_v17  ;;  %5407 = vmatpush1.bf16.msra.mxu1 %v8140_v20  ;;  %v8235_v17 = vld [vmem:[#allocation5 + $0x16f4] ss:$8 sps:$4 sm:$0xff]  }
 0x2de   :  { %5899 = vmatpush1.bf16.msra.mxu0 %v8143_v21  ;;  %5408 = vmatprep.subr.bf16.mxu1 %v8148_v22  ;;  %v104_v20 = vld [vmem:[#allocation2 + $0xa0] sm:$0xff]  ;;  %v8238_v22 = vld [vmem:[#allocation5 + $0xb04] ss:$8 sps:$4 sm:$0xff]  }
 0x2df   :  { %5900 = vmatprep.subr.bf16.mxu0 %v8151_v23  ;;  %5438 = vmatprep.mubr.bf16.mxu1 %v155_v24  ;;  %v128_v21 = vld [vmem:[#allocation2 + $0x160] sm:$0xff]  ;;  %v8241_v23 = vld [vmem:[#allocation5 + $0x1704] ss:$8 sps:$4 sm:$0xff]   ;;  %v154_v24 = vpack.c.bf16 %v104_v20, %v104_v20 }
 0x2e0   :  { %5930 = vmatprep.mubr.bf16.mxu0 %v179_v25  ;;  %v178_v25 = vpack.c.bf16 %v128_v21, %v128_v21  ;;  %v8322_v20 = vld [vmem:[#allocation5 + $0xbe4] ss:$8 sps:$4 sm:$0xff]  }
 0x2e1   :  { %5409 = vmatpush1.bf16.msra.mxu1 %v8146_v26  ;;  %v107_v26 = vld [vmem:[#allocation2 + $0xb8] sm:$0xff] }
 0x2e2   :  { %5901 = vmatpush1.bf16.msra.mxu0 %v8149_v27  ;;  %5410 = vmatprep.subr.bf16.mxu1 %v8154_v28  ;;  %v131_v27 = vld [vmem:[#allocation2 + $0x178] sm:$0xff] }
 0x2e3   :  { %5902 = vmatprep.subr.bf16.mxu0 %v8157_v29  ;;  %v8236_v28 = vld [vmem:[#allocation5 + $0xb00] ss:$8 sps:$4 sm:$0xff]   ;;  %v8325_v21 = vld [vmem:[#allocation5 + $0x17e4] ss:$8 sps:$4 sm:$0xff]  }
 0x2e4   :  { %v8239_v29 = vld [vmem:[#allocation5 + $0x1700] ss:$8 sps:$4 sm:$0xff]  }
 0x2e5   :  { %5411 = vmatpush1.bf16.msra.mxu1 %v8152_v30  ;;  %v8244_v30 = vld [vmem:[#allocation5 + $0xb14] ss:$8 sps:$4 sm:$0xff]  }
 0x2e6   :  { %5903 = vmatpush1.bf16.msra.mxu0 %v8155_v31  ;;  %5412 = vmatprep.subr.bf16.mxu1 %v8160_v32  ;;  %v8247_v31 = vld [vmem:[#allocation5 + $0x1714] ss:$8 sps:$4 sm:$0xff]   ;;  %v157_v32 = vpack.c.bf16 %v107_v26, %v107_v26  ;;  %v8326_v26 = vld [vmem:[#allocation5 + $0xbf0] ss:$8 sps:$4 sm:$0xff]  }
 0x2e7   :  { %5904 = vmatprep.subr.bf16.mxu0 %v8163_v33  ;;  %v181_v33 = vpack.c.bf16 %v131_v27, %v131_v27  ;;  %v8329_v27 = vld [vmem:[#allocation5 + $0x17f0] ss:$8 sps:$4 sm:$0xff]  }
 0x2e9   :  { %5413 = vmatpush1.bf16.msra.mxu1 %v8158_v34  ;;  %v8242_v34 = vld [vmem:[#allocation5 + $0xb10] ss:$8 sps:$4 sm:$0xff]  }
 0x2ea   :  { %5905 = vmatpush1.bf16.msra.mxu0 %v8161_v35  ;;  %5414 = vmatprep.subr.bf16.mxu1 %v8166_v36  ;;  %v8245_v35 = vld [vmem:[#allocation5 + $0x1710] ss:$8 sps:$4 sm:$0xff]   ;;  %v8250_v36 = vld [vmem:[#allocation5 + $0xb24] ss:$8 sps:$4 sm:$0xff]  }
 0x2eb   :  { %5906 = vmatprep.subr.bf16.mxu0 %v8169_v37  ;;  %v8253_v37 = vld [vmem:[#allocation5 + $0x1724] ss:$8 sps:$4 sm:$0xff]  }
 0x2ed   :  { %5415 = vmatpush1.bf16.msra.mxu1 %v8164_v38  ;;  %v8248_v38 = vld [vmem:[#allocation5 + $0xb20] ss:$8 sps:$4 sm:$0xff]  }
 0x2ee   :  { %5907 = vmatpush1.bf16.msra.mxu0 %v8167_v39  ;;  %5416 = vmatprep.subr.bf16.mxu1 %v8172_v40  ;;  %v8251_v39 = vld [vmem:[#allocation5 + $0x1720] ss:$8 sps:$4 sm:$0xff]   ;;  %v8256_v40 = vld [vmem:[#allocation5 + $0xb34] ss:$8 sps:$4 sm:$0xff]  }
 0x2ef   :  { %5908 = vmatprep.subr.bf16.mxu0 %v8175_v41  ;;  %v8259_v41 = vld [vmem:[#allocation5 + $0x1734] ss:$8 sps:$4 sm:$0xff]  }
 0x2f1   :  { %5417 = vmatpush1.bf16.msra.mxu1 %v8170_v42  ;;  %v8254_v42 = vld [vmem:[#allocation5 + $0xb30] ss:$8 sps:$4 sm:$0xff]  }
 0x2f2   :  { %5909 = vmatpush1.bf16.msra.mxu0 %v8173_v43  ;;  %5418 = vmatprep.subr.bf16.mxu1 %v8178_v44  ;;  %v8257_v43 = vld [vmem:[#allocation5 + $0x1730] ss:$8 sps:$4 sm:$0xff]   ;;  %v8262_v44 = vld [vmem:[#allocation5 + $0xb44] ss:$8 sps:$4 sm:$0xff]  }
 0x2f3   :  { %5910 = vmatprep.subr.bf16.mxu0 %v8181_v45  ;;  %v8265_v45 = vld [vmem:[#allocation5 + $0x1744] ss:$8 sps:$4 sm:$0xff]  }
 0x2f5   :  { %5419 = vmatpush1.bf16.msra.mxu1 %v8176_v46  ;;  %v8260_v46 = vld [vmem:[#allocation5 + $0xb40] ss:$8 sps:$4 sm:$0xff]  }
 0x2f6   :  { %5911 = vmatpush1.bf16.msra.mxu0 %v8179_v47  ;;  %5420 = vmatprep.subr.bf16.mxu1 %v8184_v48  ;;  %v8263_v47 = vld [vmem:[#allocation5 + $0x1740] ss:$8 sps:$4 sm:$0xff]   ;;  %v8268_v48 = vld [vmem:[#allocation5 + $0xb54] ss:$8 sps:$4 sm:$0xff]  }
 0x2f7   :  { %5912 = vmatprep.subr.bf16.mxu0 %v8187_v49  ;;  %v8271_v49 = vld [vmem:[#allocation5 + $0x1754] ss:$8 sps:$4 sm:$0xff]  }
 0x2f9   :  { %5421 = vmatpush1.bf16.msra.mxu1 %v8182_v50  ;;  %v8266_v50 = vld [vmem:[#allocation5 + $0xb50] ss:$8 sps:$4 sm:$0xff]  }
 0x2fa   :  { %5913 = vmatpush1.bf16.msra.mxu0 %v8185_v51  ;;  %5422 = vmatprep.subr.bf16.mxu1 %v8190_v52  ;;  %v8269_v51 = vld [vmem:[#allocation5 + $0x1750] ss:$8 sps:$4 sm:$0xff]   ;;  %v8274_v52 = vld [vmem:[#allocation5 + $0xb64] ss:$8 sps:$4 sm:$0xff]  }
 0x2fb   :  { %5914 = vmatprep.subr.bf16.mxu0 %v8193_v53  ;;  %v8277_v53 = vld [vmem:[#allocation5 + $0x1764] ss:$8 sps:$4 sm:$0xff]  }
 0x2fd   :  { %5423 = vmatpush1.bf16.msra.mxu1 %v8188_v54  ;;  %v8272_v54 = vld [vmem:[#allocation5 + $0xb60] ss:$8 sps:$4 sm:$0xff]  }
 0x2fe   :  { %5915 = vmatpush1.bf16.msra.mxu0 %v8191_v55  ;;  %5424 = vmatprep.subr.bf16.mxu1 %v8196_v56  ;;  %v8275_v55 = vld [vmem:[#allocation5 + $0x1760] ss:$8 sps:$4 sm:$0xff]   ;;  %v8280_v56 = vld [vmem:[#allocation5 + $0xb74] ss:$8 sps:$4 sm:$0xff]  }
 0x2ff   :  { %5916 = vmatprep.subr.bf16.mxu0 %v8199_v57  ;;  %v8283_v57 = vld [vmem:[#allocation5 + $0x1774] ss:$8 sps:$4 sm:$0xff]  }
 0x301   :  { %5425 = vmatpush1.bf16.msra.mxu1 %v8194_v58  ;;  %v8278_v58 = vld [vmem:[#allocation5 + $0xb70] ss:$8 sps:$4 sm:$0xff]  }
 0x302   :  { %5917 = vmatpush1.bf16.msra.mxu0 %v8197_v59  ;;  %5426 = vmatprep.subr.bf16.mxu1 %v8202_v60  ;;  %v8281_v59 = vld [vmem:[#allocation5 + $0x1770] ss:$8 sps:$4 sm:$0xff]   ;;  %v8286_v60 = vld [vmem:[#allocation5 + $0xb84] ss:$8 sps:$4 sm:$0xff]  }
 0x303   :  { %5918 = vmatprep.subr.bf16.mxu0 %v8205_v61  ;;  %v8289_v61 = vld [vmem:[#allocation5 + $0x1784] ss:$8 sps:$4 sm:$0xff]  }
 0x305   :  { %5427 = vmatpush1.bf16.msra.mxu1 %v8200_v62  ;;  %v8284_v62 = vld [vmem:[#allocation5 + $0xb80] ss:$8 sps:$4 sm:$0xff]  }
 0x306   :  { %5919 = vmatpush1.bf16.msra.mxu0 %v8203_v63  ;;  %5428 = vmatprep.subr.bf16.mxu1 %v8208_v0  ;;  %v8287_v63 = vld [vmem:[#allocation5 + $0x1780] ss:$8 sps:$4 sm:$0xff]   ;;  %v8292_v0 = vld [vmem:[#allocation5 + $0xb94] ss:$8 sps:$4 sm:$0xff]  }
 0x307   :  { %5920 = vmatprep.subr.bf16.mxu0 %v8211_v1  ;;  %v8295_v1 = vld [vmem:[#allocation5 + $0x1794] ss:$8 sps:$4 sm:$0xff]  }
 0x309   :  { %5429 = vmatpush1.bf16.msra.mxu1 %v8206_v2  ;;  %v8290_v2 = vld [vmem:[#allocation5 + $0xb90] ss:$8 sps:$4 sm:$0xff]  }
 0x30a   :  { %5921 = vmatpush1.bf16.msra.mxu0 %v8209_v3  ;;  %5430 = vmatprep.subr.bf16.mxu1 %v8214_v4  ;;  %v8293_v3 = vld [vmem:[#allocation5 + $0x1790] ss:$8 sps:$4 sm:$0xff]   ;;  %v8298_v4 = vld [vmem:[#allocation5 + $0xba4] ss:$8 sps:$4 sm:$0xff]  }
 0x30b   :  { %5922 = vmatprep.subr.bf16.mxu0 %v8217_v5  ;;  %v8301_v5 = vld [vmem:[#allocation5 + $0x17a4] ss:$8 sps:$4 sm:$0xff]  }
 0x30d   :  { %5431 = vmatpush1.bf16.msra.mxu1 %v8212_v6  ;;  %v8296_v6 = vld [vmem:[#allocation5 + $0xba0] ss:$8 sps:$4 sm:$0xff]  }
 0x30e   :  { %5923 = vmatpush1.bf16.msra.mxu0 %v8215_v7  ;;  %5432 = vmatprep.subr.bf16.mxu1 %v8220_v8  ;;  %v8299_v7 = vld [vmem:[#allocation5 + $0x17a0] ss:$8 sps:$4 sm:$0xff]   ;;  %v8304_v8 = vld [vmem:[#allocation5 + $0xbb4] ss:$8 sps:$4 sm:$0xff]  }
 0x30f   :  { %5924 = vmatprep.subr.bf16.mxu0 %v8223_v9  ;;  %v8307_v9 = vld [vmem:[#allocation5 + $0x17b4] ss:$8 sps:$4 sm:$0xff]  }
 0x311   :  { %5433 = vmatpush1.bf16.msra.mxu1 %v8218_v10  ;;  %v8302_v10 = vld [vmem:[#allocation5 + $0xbb0] ss:$8 sps:$4 sm:$0xff]  }
 0x312   :  { %5925 = vmatpush1.bf16.msra.mxu0 %v8221_v11  ;;  %5434 = vmatprep.subr.bf16.mxu1 %v8226_v12  ;;  %v8305_v11 = vld [vmem:[#allocation5 + $0x17b0] ss:$8 sps:$4 sm:$0xff]   ;;  %v8310_v12 = vld [vmem:[#allocation5 + $0xbc4] ss:$8 sps:$4 sm:$0xff]  }
 0x313   :  { %5926 = vmatprep.subr.bf16.mxu0 %v8229_v13  ;;  %v8313_v13 = vld [vmem:[#allocation5 + $0x17c4] ss:$8 sps:$4 sm:$0xff]  }
 0x315   :  { %5435 = vmatpush1.bf16.msra.mxu1 %v8224_v14  ;;  %v8308_v14 = vld [vmem:[#allocation5 + $0xbc0] ss:$8 sps:$4 sm:$0xff]  }
 0x316   :  { %5927 = vmatpush1.bf16.msra.mxu0 %v8227_v15  ;;  %5436 = vmatprep.subr.bf16.mxu1 %v8232_v16  ;;  %v8311_v15 = vld [vmem:[#allocation5 + $0x17c0] ss:$8 sps:$4 sm:$0xff]   ;;  %v8316_v16 = vld [vmem:[#allocation5 + $0xbd4] ss:$8 sps:$4 sm:$0xff]  }
 0x317   :  { %5928 = vmatprep.subr.bf16.mxu0 %v8235_v17  ;;  %v8319_v17 = vld [vmem:[#allocation5 + $0x17d4] ss:$8 sps:$4 sm:$0xff]  }
 0x319   :  { %5437 = vmatpush1.bf16.msra.mxu1 %v8230_v18  ;;  %v8314_v18 = vld [vmem:[#allocation5 + $0xbd0] ss:$8 sps:$4 sm:$0xff]  }
 0x31a   :  { %5929 = vmatpush1.bf16.msra.mxu0 %v8233_v19  ;;  %5447 = vmatprep.subr.bf16.mxu1 %v8238_v22  ;;  %v8317_v19 = vld [vmem:[#allocation5 + $0x17d0] ss:$8 sps:$4 sm:$0xff]   ;;  %v8320_v22 = vld [vmem:[#allocation5 + $0xbe0] ss:$8 sps:$4 sm:$0xff]  }
 0x31b   :  { %5939 = vmatprep.subr.bf16.mxu0 %v8241_v23  ;;  %v8323_v23 = vld [vmem:[#allocation5 + $0x17e0] ss:$8 sps:$4 sm:$0xff]  }
 0x31c   :  { %5439 = vmatmul.mubr.bf16.vlgmr.msra.gmra.mrb[0].mxu1 %v154_v24  ;;  %v8328_v24 = vld [vmem:[#allocation5 + $0xbf4] ss:$8 sps:$4 sm:$0xff]  }
 0x31d   :  { %5931 = vmatmul.mubr.bf16.vlgmr.msra.gmra.mrb[0].mxu0 %v178_v25  ;;  %5448 = vmatpush1.bf16.msra.mxu1 %v8236_v28  ;;  %v8331_v25 = vld [vmem:[#allocation5 + $0x17f4] ss:$8 sps:$4 sm:$0xff]   ;;  %v106_v28 = vld [vmem:[#allocation2 + $0xb0] sm:$0xff] }
 0x31e   :  { %5940 = vmatpush1.bf16.msra.mxu0 %v8239_v29  ;;  %5449 = vmatprep.subr.bf16.mxu1 %v8244_v30  ;;  %v130_v29 = vld [vmem:[#allocation2 + $0x170] sm:$0xff] }
 0x31f   :  { %5941 = vmatprep.subr.bf16.mxu0 %v8247_v31  ;;  %5479 = vmatprep.mubr.bf16.mxu1 %v157_v32  ;;  %v8334_v30 = vld [vmem:[#allocation5 + $0x1804] ss:$8 sps:$4 sm:$0xff]   ;;  %v133_v31 = vld [vmem:[#allocation2 + $0x188] sm:$0xff]  ;;  %v156_v32 = vpack.c.bf16 %v106_v28, %v106_v28 }
 0x320   :  { %5971 = vmatprep.mubr.bf16.mxu0 %v181_v33  ;;  %v180_v33 = vpack.c.bf16 %v130_v29, %v130_v29 }
 0x321   :  { %5450 = vmatpush1.bf16.msra.mxu1 %v8242_v34  ;;  %v8332_v34 = vld [vmem:[#allocation5 + $0x1800] ss:$8 sps:$4 sm:$0xff]  }
 0x322   :  { %5942 = vmatpush1.bf16.msra.mxu0 %v8245_v35  ;;  %5451 = vmatprep.subr.bf16.mxu1 %v8250_v36  ;;  %v183_v35 = vpack.c.bf16 %v133_v31, %v133_v31  ;;  %v8337_v36 = vld [vmem:[#allocation5 + $0x1814] ss:$8 sps:$4 sm:$0xff]  }
 0x323   :  { %5943 = vmatprep.subr.bf16.mxu0 %v8253_v37  ;;  %v8335_v37 = vld [vmem:[#allocation5 + $0x1810] ss:$8 sps:$4 sm:$0xff]  }
 0x325   :  { %5452 = vmatpush1.bf16.msra.mxu1 %v8248_v38  ;;  %v8340_v38 = vld [vmem:[#allocation5 + $0x1824] ss:$8 sps:$4 sm:$0xff]  }
 0x326   :  { %5944 = vmatpush1.bf16.msra.mxu0 %v8251_v39  ;;  %5453 = vmatprep.subr.bf16.mxu1 %v8256_v40  ;;  %v8338_v39 = vld [vmem:[#allocation5 + $0x1820] ss:$8 sps:$4 sm:$0xff]   ;;  %v8343_v40 = vld [vmem:[#allocation5 + $0x1834] ss:$8 sps:$4 sm:$0xff]  }
 0x327   :  { %5945 = vmatprep.subr.bf16.mxu0 %v8259_v41  ;;  %v8341_v41 = vld [vmem:[#allocation5 + $0x1830] ss:$8 sps:$4 sm:$0xff]  }
 0x329   :  { %5454 = vmatpush1.bf16.msra.mxu1 %v8254_v42  ;;  %v8346_v42 = vld [vmem:[#allocation5 + $0x1844] ss:$8 sps:$4 sm:$0xff]  }
 0x32a   :  { %5946 = vmatpush1.bf16.msra.mxu0 %v8257_v43  ;;  %5455 = vmatprep.subr.bf16.mxu1 %v8262_v44  ;;  %v8344_v43 = vld [vmem:[#allocation5 + $0x1840] ss:$8 sps:$4 sm:$0xff]   ;;  %v8349_v44 = vld [vmem:[#allocation5 + $0x1854] ss:$8 sps:$4 sm:$0xff]  }
 0x32b   :  { %5947 = vmatprep.subr.bf16.mxu0 %v8265_v45  ;;  %v8347_v45 = vld [vmem:[#allocation5 + $0x1850] ss:$8 sps:$4 sm:$0xff]  }
 0x32d   :  { %5456 = vmatpush1.bf16.msra.mxu1 %v8260_v46  ;;  %v8352_v46 = vld [vmem:[#allocation5 + $0x1864] ss:$8 sps:$4 sm:$0xff]  }
 0x32e   :  { %5948 = vmatpush1.bf16.msra.mxu0 %v8263_v47  ;;  %5457 = vmatprep.subr.bf16.mxu1 %v8268_v48  ;;  %v8350_v47 = vld [vmem:[#allocation5 + $0x1860] ss:$8 sps:$4 sm:$0xff]   ;;  %v8355_v48 = vld [vmem:[#allocation5 + $0x1874] ss:$8 sps:$4 sm:$0xff]  }
 0x32f   :  { %5949 = vmatprep.subr.bf16.mxu0 %v8271_v49  ;;  %v8353_v49 = vld [vmem:[#allocation5 + $0x1870] ss:$8 sps:$4 sm:$0xff]  }
 0x331   :  { %5458 = vmatpush1.bf16.msra.mxu1 %v8266_v50  ;;  %v8358_v50 = vld [vmem:[#allocation5 + $0x1884] ss:$8 sps:$4 sm:$0xff]  }
 0x332   :  { %5950 = vmatpush1.bf16.msra.mxu0 %v8269_v51  ;;  %5459 = vmatprep.subr.bf16.mxu1 %v8274_v52  ;;  %v8356_v51 = vld [vmem:[#allocation5 + $0x1880] ss:$8 sps:$4 sm:$0xff]   ;;  %v8361_v52 = vld [vmem:[#allocation5 + $0x1894] ss:$8 sps:$4 sm:$0xff]  }
 0x333   :  { %5951 = vmatprep.subr.bf16.mxu0 %v8277_v53  ;;  %v8359_v53 = vld [vmem:[#allocation5 + $0x1890] ss:$8 sps:$4 sm:$0xff]  }
 0x335   :  { %5460 = vmatpush1.bf16.msra.mxu1 %v8272_v54  ;;  %v8364_v54 = vld [vmem:[#allocation5 + $0x18a4] ss:$8 sps:$4 sm:$0xff]  }
 0x336   :  { %5952 = vmatpush1.bf16.msra.mxu0 %v8275_v55  ;;  %5461 = vmatprep.subr.bf16.mxu1 %v8280_v56  ;;  %v8362_v55 = vld [vmem:[#allocation5 + $0x18a0] ss:$8 sps:$4 sm:$0xff]   ;;  %v8367_v56 = vld [vmem:[#allocation5 + $0x18b4] ss:$8 sps:$4 sm:$0xff]  }
 0x337   :  { %5953 = vmatprep.subr.bf16.mxu0 %v8283_v57  ;;  %v8365_v57 = vld [vmem:[#allocation5 + $0x18b0] ss:$8 sps:$4 sm:$0xff]  }
 0x339   :  { %5462 = vmatpush1.bf16.msra.mxu1 %v8278_v58  ;;  %v8370_v58 = vld [vmem:[#allocation5 + $0x18c4] ss:$8 sps:$4 sm:$0xff]  }
 0x33a   :  { %5954 = vmatpush1.bf16.msra.mxu0 %v8281_v59  ;;  %5463 = vmatprep.subr.bf16.mxu1 %v8286_v60  ;;  %v8368_v59 = vld [vmem:[#allocation5 + $0x18c0] ss:$8 sps:$4 sm:$0xff]   ;;  %v8373_v60 = vld [vmem:[#allocation5 + $0x18d4] ss:$8 sps:$4 sm:$0xff]  }
 0x33b   :  { %5955 = vmatprep.subr.bf16.mxu0 %v8289_v61  ;;  %v8371_v61 = vld [vmem:[#allocation5 + $0x18d0] ss:$8 sps:$4 sm:$0xff]  }
 0x33d   :  { %5464 = vmatpush1.bf16.msra.mxu1 %v8284_v62  ;;  %v8376_v62 = vld [vmem:[#allocation5 + $0x18e4] ss:$8 sps:$4 sm:$0xff]  }
 0x33e   :  { %5956 = vmatpush1.bf16.msra.mxu0 %v8287_v63  ;;  %5465 = vmatprep.subr.bf16.mxu1 %v8292_v0  ;;  %v8374_v63 = vld [vmem:[#allocation5 + $0x18e0] ss:$8 sps:$4 sm:$0xff]   ;;  %v8379_v0 = vld [vmem:[#allocation5 + $0x18f4] ss:$8 sps:$4 sm:$0xff]  }
 0x33f   :  { %5957 = vmatprep.subr.bf16.mxu0 %v8295_v1  ;;  %v8377_v1 = vld [vmem:[#allocation5 + $0x18f0] ss:$8 sps:$4 sm:$0xff]  }
 0x341   :  { %5466 = vmatpush1.bf16.msra.mxu1 %v8290_v2  ;;  %v132_v2 = vld [vmem:[#allocation2 + $0x180] sm:$0xff] }
 0x342   :  { %5958 = vmatpush1.bf16.msra.mxu0 %v8293_v3  ;;  %5467 = vmatprep.subr.bf16.mxu1 %v8298_v4  ;;  %v182_v3 = vpack.c.bf16 %v132_v2, %v132_v2  ;;  %v8380_v4 = vld [vmem:[#allocation8 + $0x40] sm:$0xff]  }
 0x343   :  { %5959 = vmatprep.subr.bf16.mxu0 %v8301_v5  ;;  %v8381_v5 = vld [vmem:[#allocation8] sm:$0xff]  }
 0x345   :  { %5468 = vmatpush1.bf16.msra.mxu1 %v8296_v6  ;;  %v8382_v6 = vld [vmem:[#allocation8 + $0x48] sm:$0xff]  }
 0x346   :  { %5960 = vmatpush1.bf16.msra.mxu0 %v8299_v7  ;;  %5469 = vmatprep.subr.bf16.mxu1 %v8304_v8  ;;  %v8383_v7 = vld [vmem:[#allocation8 + $0x8] sm:$0xff]   ;;  %v8384_v8 = vld [vmem:[#allocation8 + $0x50] sm:$0xff]  }
 0x347   :  { %5961 = vmatprep.subr.bf16.mxu0 %v8307_v9  ;;  %v8385_v9 = vld [vmem:[#allocation8 + $0x10] sm:$0xff]  }
 0x349   :  { %5470 = vmatpush1.bf16.msra.mxu1 %v8302_v10  ;;  %v8386_v10 = vld [vmem:[#allocation8 + $0x58] sm:$0xff]  }
 0x34a   :  { %5962 = vmatpush1.bf16.msra.mxu0 %v8305_v11  ;;  %5471 = vmatprep.subr.bf16.mxu1 %v8310_v12  ;;  %v8387_v11 = vld [vmem:[#allocation8 + $0x18] sm:$0xff]   ;;  %v8388_v12 = vld [vmem:[#allocation8 + $0x60] sm:$0xff]  }
 0x34b   :  { %5963 = vmatprep.subr.bf16.mxu0 %v8313_v13  ;;  %v8389_v13 = vld [vmem:[#allocation8 + $0x20] sm:$0xff]  }
 0x34d   :  { %5472 = vmatpush1.bf16.msra.mxu1 %v8308_v14  ;;  %v8390_v14 = vld [vmem:[#allocation8 + $0x68] sm:$0xff]  }
 0x34e   :  { %5964 = vmatpush1.bf16.msra.mxu0 %v8311_v15  ;;  %5473 = vmatprep.subr.bf16.mxu1 %v8316_v16  ;;  %v8391_v15 = vld [vmem:[#allocation8 + $0x28] sm:$0xff]   ;;  %v8392_v16 = vld [vmem:[#allocation8 + $0x70] sm:$0xff]  }
 0x34f   :  { %5965 = vmatprep.subr.bf16.mxu0 %v8319_v17  ;;  %v8393_v17 = vld [vmem:[#allocation8 + $0x30] sm:$0xff]  }
 0x351   :  { %5474 = vmatpush1.bf16.msra.mxu1 %v8314_v18  ;;  %v8394_v18 = vld [vmem:[#allocation8 + $0x78] sm:$0xff]  }
 0x352   :  { %5966 = vmatpush1.bf16.msra.mxu0 %v8317_v19  ;;  %5475 = vmatprep.subr.bf16.mxu1 %v8322_v20  ;;  %v8395_v19 = vld [vmem:[#allocation8 + $0x38] sm:$0xff]  }
 0x353   :  { %5967 = vmatprep.subr.bf16.mxu0 %v8325_v21 }
 0x355   :  { %5476 = vmatpush1.bf16.msra.mxu1 %v8320_v22 }
 0x356   :  { %5968 = vmatpush1.bf16.msra.mxu0 %v8323_v23  ;;  %5477 = vmatprep.subr.bf16.mxu1 %v8328_v24  ;;  %v986_v24 = vlaneseq }
 0x357   :  { %5969 = vmatprep.subr.bf16.mxu0 %v8331_v25 }
 0x358   :  { %v987_v25 = vshrl.u32 %v986_v24, 7 }
 0x359   :  { %5478 = vmatpush1.bf16.msra.mxu1 %v8326_v26 }
 0x35a   :  { %5970 = vmatpush1.bf16.msra.mxu0 %v8329_v27  ;;  %7052 = vmatprep.subr.bf16.mxu1 %v8380_v4  ;;  %v988_v26 = vsub.s32 0, %v987_v25  ;;  %v984_v27 = vld [vmem:[#allocation7] sm:$0x3]  ;;  %v992_v28 = vsub.s32 1, %v987_v25 }
 0x35b   :  { %5980 = vmatprep.subr.bf16.mxu0 %v8334_v30 }
 0x35c   :  { %5480 = vmatmul.mubr.bf16.vlgmr.msra.gmra.mrb[0].mxu1 %v156_v32  ;;  %v989_v29 = vrot.slane %v984_v27, %v988_v26  ;;  %v993_v30 = vrot.slane %v984_v27, %v992_v28 }
 0x35d   :  { %5972 = vmatmul.mubr.bf16.vlgmr.msra.gmra.mrb[0].mxu0 %v180_v33  ;;  %7053 = vmatpush3.bf16.msra.mxu1 %v8381_v5 }
 0x35e   :  { %5981 = vmatpush1.bf16.msra.mxu0 %v8332_v34  ;;  %6012 = vmatprep.mubr.bf16.mxu0 %v183_v35 }
 0x35f   :  { %5982 = vmatprep.subr.bf16.mxu0 %v8337_v36  ;;  %7054 = vmatprep.subr.bf16.mxu1 %v8382_v6 }
 0x361   :  { %7055 = vmatpush3.bf16.msra.mxu1 %v8383_v7 }
 0x362   :  { %5983 = vmatpush1.bf16.msra.mxu0 %v8335_v37  ;;  %7056 = vmatprep.subr.bf16.mxu1 %v8384_v8 }
 0x363   :  { %5984 = vmatprep.subr.bf16.mxu0 %v8340_v38 }
 0x365   :  { %7057 = vmatpush3.bf16.msra.mxu1 %v8385_v9 }
 0x366   :  { %5985 = vmatpush1.bf16.msra.mxu0 %v8338_v39  ;;  %7058 = vmatprep.subr.bf16.mxu1 %v8386_v10 }
 0x367   :  { %5986 = vmatprep.subr.bf16.mxu0 %v8343_v40 }
 0x369   :  { %7059 = vmatpush3.bf16.msra.mxu1 %v8387_v11 }
 0x36a   :  { %5987 = vmatpush1.bf16.msra.mxu0 %v8341_v41  ;;  %7060 = vmatprep.subr.bf16.mxu1 %v8388_v12 }
 0x36b   :  { %5988 = vmatprep.subr.bf16.mxu0 %v8346_v42 }
 0x36d   :  { %7061 = vmatpush3.bf16.msra.mxu1 %v8389_v13 }
 0x36e   :  { %5989 = vmatpush1.bf16.msra.mxu0 %v8344_v43  ;;  %7062 = vmatprep.subr.bf16.mxu1 %v8390_v14  ;;  %v6201_v43 = vand.u32 127, %v986_v24 }
 0x36f   :  { %5990 = vmatprep.subr.bf16.mxu0 %v8349_v44 }
 0x370   :  { %vm6202_vm0 = vcmp.lt.s32.totalorder %v6201_v43, 2  ;;  %vm6203_vm1 = vcmp.eq.s32.totalorder %v6201_v43, 2 }
 0x371   :  { %7063 = vmatpush3.bf16.msra.mxu1 %v8391_v15 }
 0x372   :  { %5991 = vmatpush1.bf16.msra.mxu0 %v8347_v45  ;;  %7064 = vmatprep.subr.bf16.mxu1 %v8392_v16 }
 0x373   :  { %5992 = vmatprep.subr.bf16.mxu0 %v8352_v46  ;;  %v7035_v46 = vld [vmem:[#allocation10] ss:$0 sm:$0xff] }
 0x375   :  { %7065 = vmatpush3.bf16.msra.mxu1 %v8393_v17 }
 0x376   :  { %5993 = vmatpush1.bf16.msra.mxu0 %v8350_v47  ;;  %7066 = vmatprep.subr.bf16.mxu1 %v8394_v18 }
 0x377   :  { %5994 = vmatprep.subr.bf16.mxu0 %v8355_v48 }
 0x379   :  { %7067 = vmatpush3.bf16.msra.mxu1 %v8395_v19 }
 0x37a   :  { %5995 = vmatpush1.bf16.msra.mxu0 %v8353_v49 }
 0x37b   :  { %5996 = vmatprep.subr.bf16.mxu0 %v8358_v50 }
 0x37e   :  { %5997 = vmatpush1.bf16.msra.mxu0 %v8356_v51 }
 0x37f   :  { %5998 = vmatprep.subr.bf16.mxu0 %v8361_v52 }
 0x382   :  { %5999 = vmatpush1.bf16.msra.mxu0 %v8359_v53 }
 0x383   :  { %6000 = vmatprep.subr.bf16.mxu0 %v8364_v54 }
 0x386   :  { %6001 = vmatpush1.bf16.msra.mxu0 %v8362_v55 }
 0x387   :  { %6002 = vmatprep.subr.bf16.mxu0 %v8367_v56 }
 0x38a   :  { %6003 = vmatpush1.bf16.msra.mxu0 %v8365_v57 }
 0x38b   :  { %6004 = vmatprep.subr.bf16.mxu0 %v8370_v58 }
 0x38e   :  { %6005 = vmatpush1.bf16.msra.mxu0 %v8368_v59 }
 0x38f   :  { %6006 = vmatprep.subr.bf16.mxu0 %v8373_v60 }
 0x392   :  { %6007 = vmatpush1.bf16.msra.mxu0 %v8371_v61 }
 0x393   :  { %6008 = vmatprep.subr.bf16.mxu0 %v8376_v62 }
 0x396   :  { %6009 = vmatpush1.bf16.msra.mxu0 %v8374_v63 }
 0x397   :  { %6010 = vmatprep.subr.bf16.mxu0 %v8379_v0 }
 0x39a   :  { %6011 = vmatpush1.bf16.msra.mxu0 %v8377_v1 }
 0x39d   :  { %6013 = vmatmul.mubr.bf16.vlgmr.msra.gmra.mrb[0].mxu0 %v182_v3 }
 0x42f   :  { %v5481_v20 = vpop.f32.mrb[0].mxu1 }
 0x430   :  { %v5483_v21 = vpop.f32.mrb[1].mxu1  ;;  %v7074_v31 = vadd.f32 %v5481_v20, %v989_v29 }
 0x431   :  { %v5485_v22 = vpop.f32.mrb[2].mxu1  ;;  %v7076_v32 = vadd.f32 %v5483_v21, %v993_v30 }
 0x432   :  { %v5486_v23 = vpop.f32.mrb[3].mxu1 }
 0x470   :  { %v6014_v33 = vpop.f32.mrb[0].mxu0 }
 0x471   :  { %v7075_v34 = vadd.f32 %v7074_v31, %v6014_v33  ;;  %v6016_v35 = vpop.f32.mrb[1].mxu0 }
 0x472   :  { %v7077_v36 = vadd.f32 %v7076_v32, %v6016_v35  ;;  %v6018_v37 = vpop.f32.mrb[2].mxu0 }
 0x473   :  { %v6021_v38 = vmax.f32 %v7075_v34, 0.0  ;;  %v6019_v39 = vpop.f32.mrb[3].mxu0 }
 0x474   :  { %v6022_v40 = vmax.f32 %v7077_v36, 0.0 }
 0x475   :  { %v6023_v42 = vpack.c.bf16 %v6021_v38, %v6021_v38 }
 0x476   :  { %v6024_v41 = vpack.c.bf16 %v6022_v40, %v6022_v40 }
 0x478   :  { %6192 = vmatprep.mubr.bf16.mxu1 %v6024_v41 }
 0x479   :  { %6193 = vmatmul.mubr.bf16.vlgmr.msra.gmra.mrb[4].mxu1 %v6023_v42 }
 0x54c   :  { %v7068_v44 = vpop.f32.mrb[4].mxu1 }
 0x54d   :  { %v7069_v45 = vpop.f32.mrb[5].mxu1 }
 0x54e   :  { %v7070_v47 = vadd.f32 %v7069_v45, %v7068_v44  ;;  %v7071_v48 = vpop.f32.mrb[6].mxu1 }
 0x54f   :  { %v7072_v49 = vpop.f32.mrb[7].mxu1 }
 0x550   :  { %v6195_v50 = vadd.f32 %v7070_v47, %v7035_v46 }
 0x552   :  { %v6204_v51 = vsel %vm6202_vm0, %v6195_v50, -1e+30  ;;  %v6215_v52 = vsel %vm6203_vm1, %v6195_v50, 0.0 }
 0x553   :  { %6205 = vmax.xlane.f32.xlu0 %v6204_v51 }
 0x5e0   :  { %v6206_v53 = vpop.xlane.xlu0 %6205 }
 0x5e1   :  { %v6207_v54 = vsub.f32 %v6204_v51, %v6206_v53 }
 0x5e3   :  { %v6208_v55 = vmul.f32 1.442695, %v6207_v54 }
 0x5e5   :  { %8396 = vpow2.f32 %v6208_v55 }
 0x5ef   :  { %v8397_v56 = vpop.eup %8396 }
 0x5f0   :  { %v6210_v57 = vsel %vm6202_vm0, %v8397_v56, 0.0 }
 0x5f1   :  { %6211 = vadd.xlane.f32.xlu0 %v6210_v57 }
 0x67e   :  { %v6212_v58 = vpop.xlane.xlu0 %6211 }
 0x67f   :  { %8398 = vrcp.f32 %v6212_v58 }
 0x689   :  { %v8399_v59 = vpop.eup %8398 }
 0x68a   :  { %v6214_v60 = vmul.f32 %v8399_v59, %v6210_v57 }
 0x68c   :  { %v6216_v61 = vsel %vm6202_vm0, %v6214_v60, %v6215_v52 }
 0x68d   :  { %6217 = vst [vmem:[#allocation11] sm:$0xff] %v6216_v61 }
 0x68e   :  { %8521 = shalt.err (!%p8518_p2)
}
 0x68f   :  { %s8522_s6 = scalar_lea.hbm %s8660_s5, 128 }
 0x690   :  { %p8523_p3 = scmp.ne.s32.totalorder %s8660_s5, %s8522_s6  ;;  %p8526_p4 = scmp.lt.u32.totalorder %s8522_s6, %s8660_s5 }
 0x692   :  { %p8528_p5 = pnand %p8526_p4, %p8523_p3 }
 0x694   :  { %8531 = shalt.err (!%p8528_p5)
}
 0x695   :  { %6227 = dma.vmem_to_hbm [thread:$0]  %s6225_s28, 128, %s8660_s5, [#allocation4]  }
 0x696   :  { %8538 = dma.done.wait [#allocation4], 128  }
 0x697   :  { %8539 = vsyncadd [#allocation4], 4294967168 }
 0x698   :  { %6231 = vsyncpa [#allocation3], 1 }
 0x699   :  { %6232 = vsyncpa [#allocation6], 1 }
 0x69a   :  { %6233 = vsyncpa [#allocation9], 1 }
 0x69b   :  { %6234 = vsyncpa [#allocation4], 1 }

</bundles_post_ra>
